<compile_context>
chip_gen: v6e
topology: v6e:2x2x1
jax: 0.10.0
libtpu: 0.0.40
codegen_flags: <defaults>
</compile_context>

<pallas_src>
import jax
import jax.numpy as jnp
from jax import lax
from jax.experimental import pallas as pl
from jax.experimental.pallas import tpu as pltpu

HIDDEN_DIM = 32
DAMPING = 0.1
LN_EPS = 1e-5


def _round_up(x, m):
    return ((x + m - 1) // m) * m


def _vmem_limit_bytes():
    """Explicit scoped-VMEM limit, derived from the chip (v5e/v6e -> 64 MiB,
    v7x -> ~44 MiB), with a conservative fallback if the query is unavailable."""
    cap = 64 << 20  # conservative default (v7x physical per-core VMEM)
    try:
        cap = int(pltpu.get_tpu_info().vmem_capacity_bytes)
    except Exception:
        pass
    return int(max(32 << 20, min(cap - (20 << 20), 64 << 20)))


def _choose_tile_n(n, s_h, vmem_budget):
    """A-row-tile height: as large as the VMEM budget allows, 256-aligned when
    possible (full MXU M-passes on v6e/v7x), always a multiple of 8, and (since
    n_pad is rounded up to it) a divisor of the padded node count."""
    n_ub = _round_up(n, 256)                  # upper bound on the padded node count
    g_bytes = (2 * n_ub) * s_h * 2            # VMEM-resident bf16 g (single-buffered)
    per_row = (2 * (2 * n_ub) * 2             # double-buffered bf16 A tile row
               + 2 * s_h * 2                  # double-buffered bf16 hn tile row
               + 2 * s_h * 4)                 # double-buffered out tile row (f32 bound)
    avail = vmem_budget - g_bytes - (4 << 20)  # slack for compiler scratch
    t = min(512, n_ub, max(8, avail // per_row))
    for align in (256, 128, 64, 32, 16, 8):
        if t >= align:
            return int((t // align) * align)
    return 8


def _prep_kernel(h_ref, gamma_ref, beta_ref, wfp_ref, wfn_ref, hn_ref, g_ref):
    """LayerNorm + folded-weight projections for all batched stages.

    h_ref:  [S, n_pad, H] f32   (stacked RK stages / time steps)
    hn_ref: [n_pad, S*H]  bf16  (per-stage LayerNorm outputs, lane-concatenated)
    g_ref:  [2*n_pad, S*H] bf16 (rows [:n_pad] = hn_s @ Wfp, rows [n_pad:] = hn_s @ Wfn)
    """
    n_stages, n_pad, _ = h_ref.shape
    gamma = gamma_ref[...]
    beta = beta_ref[...]
    wfp = wfp_ref[...]
    wfn = wfn_ref[...]
    hn_cols, gp_cols, gn_cols = [], [], []
    for s in range(n_stages):                     # static unroll (S is small)
        h = h_ref[s].astype(jnp.float32)
        mu = jnp.mean(h, axis=-1, keepdims=True)
        var = jnp.mean((h - mu) * (h - mu), axis=-1, keepdims=True)
        # NOTE: zero-padded rows come out as hn == beta; this is harmless only
        # because the padded COLUMNS of A_cat are zero and padded output rows
        # are sliced off.  Do not change padding/block-skipping without
        # re-checking this assumption.
        hn = (h - mu) * lax.rsqrt(var + LN_EPS) * gamma + beta
        hn_cols.append(hn.astype(hn_ref.dtype))
        gp_cols.append(jnp.dot(hn, wfp,
                               preferred_element_type=jnp.float32).astype(g_ref.dtype))
        gn_cols.append(jnp.dot(hn, wfn,
                               preferred_element_type=jnp.float32).astype(g_ref.dtype))
    hn_ref[...] = jnp.concatenate(hn_cols, axis=-1)
    g_ref[:n_pad, :] = jnp.concatenate(gp_cols, axis=-1)
    g_ref[n_pad:, :] = jnp.concatenate(gn_cols, axis=-1)


def _odefunc_tile_kernel(a_ref, g_ref, hn_ref, out_ref):
    """Per node-row tile: z = [A_pos | A_neg] @ [g_pos ; g_neg]; tanh; damp; clamp.
    The f32 accumulation and the whole elementwise epilogue stay f32."""
    z = jnp.dot(a_ref[...], g_ref[...], preferred_element_type=jnp.float32)
    delta = jnp.tanh(z)
    delta_h = delta - DAMPING * hn_ref[...].astype(jnp.float32)
    out_ref[...] = jnp.clip(delta_h, -50.0, 50.0).astype(out_ref.dtype)


def _run_tile_kernel(a_cat, g, hn, *, tile_n, n_pad, s_h, out_dtype, vmem_limit):
    def build(single_buffered_g):
        if single_buffered_g:
            g_spec = pl.BlockSpec((2 * n_pad, s_h), lambda i: (0, 0),
                                  pipeline_mode=pl.Buffered(1))
        else:
            g_spec = pl.BlockSpec((2 * n_pad, s_h), lambda i: (0, 0))
        return pl.pallas_call(
            _odefunc_tile_kernel,
            out_shape=jax.ShapeDtypeStruct((n_pad, s_h), out_dtype),
            grid_spec=pltpu.PrefetchScalarGridSpec(
                num_scalar_prefetch=0,
                grid=(n_pad // tile_n,),
                in_specs=[
                    pl.BlockSpec((tile_n, 2 * n_pad), lambda i: (i, 0)),  # A rows: streamed
                    g_spec,                                               # g: VMEM-resident
                    pl.BlockSpec((tile_n, s_h), lambda i: (i, 0)),        # hn rows (bf16)
                ],
                out_specs=pl.BlockSpec((tile_n, s_h), lambda i: (i, 0)),
            ),
            compiler_params=pltpu.CompilerParams(
                dimension_semantics=("parallel",),      # megacore sharding on v7x
                vmem_limit_bytes=vmem_limit),
        )
    try:
        return build(True)(a_cat, g, hn)
    except Exception:
        # pipeline_mode=pl.Buffered(1) unsupported on this jax build: fall back
        # to the default double-buffered (still correct, slightly more VMEM).
        return build(False)(a_cat, g, hn)


def prepare_ode_func(a_pos, a_neg, w_pos, w_neg, w_psi, ln_gamma, ln_beta,
                     num_stages=1):
    """Per-ODE-solve constants: folded psi weights + padded bf16 [N, 2N] adjacency.

    Call once per solve (the graph and weights are constant across RK stages /
    time steps); feed the result to `ode_func_eval` for every function eval."""
    n = a_pos.shape[0]
    hd = w_pos.shape[0]
    s_h = num_stages * hd
    vmem_limit = _vmem_limit_bytes()
    tile_n = _choose_tile_n(n, s_h, vmem_limit)
    n_pad = _round_up(n, tile_n)

    # Fold conv weights into the bias-free psi weights (tiny one-time matmuls).
    w_psi_t = w_psi.T.astype(jnp.float32)                 # [2H, H] (torch layout transposed)
    wfp = w_pos.astype(jnp.float32) @ w_psi_t[:hd, :]     # [H, H]
    wfn = w_neg.astype(jnp.float32) @ w_psi_t[hd:, :]     # [H, H]

    def pad_adj(a):
        return jnp.zeros((n_pad, n_pad), jnp.float32).at[:n, :n].set(
            a.astype(jnp.float32))

    # Concatenated bf16 adjacency [N, 2N]: the dominant HBM stream of the kernel.
    a_cat = jnp.concatenate([pad_adj(a_pos), pad_adj(a_neg)],
                            axis=1).astype(jnp.bfloat16)

    return {
        "a_cat": a_cat, "wfp": wfp, "wfn": wfn,
        "gamma2d": ln_gamma.reshape(1, hd).astype(jnp.float32),
        "beta2d": ln_beta.reshape(1, hd).astype(jnp.float32),
        "n": n, "hd": hd, "num_stages": num_stages,
        "tile_n": tile_n, "n_pad": n_pad, "vmem_limit": vmem_limit,
    }


def ode_func_eval(prep, h_stages):
    """Batched ODEFunc forward: h_stages [S, N, H] -> [S, N, H].

    All S stages (e.g. RK stages) share one streamed pass over the adjacency;
    semantics per stage match the reference ODEFunc.forward."""
    s, n, hd = h_stages.shape
    assert n == prep["n"] and hd == prep["hd"] and s == prep["num_stages"]
    n_pad, tile_n = prep["n_pad"], prep["tile_n"]
    s_h = s * hd

    h_p = jnp.zeros((s, n_pad, hd), jnp.float32).at[:, :n, :].set(
        h_stages.astype(jnp.float32))

    vmem = pl.BlockSpec(memory_space=pltpu.MemorySpace.VMEM)
    hn, g = pl.pallas_call(
        _prep_kernel,
        out_shape=(jax.ShapeDtypeStruct((n_pad, s_h), jnp.bfloat16),
                   jax.ShapeDtypeStruct((2 * n_pad, s_h), jnp.bfloat16)),
        in_specs=[vmem] * 5,
        out_specs=(vmem, vmem),
        compiler_params=pltpu.CompilerParams(vmem_limit_bytes=prep["vmem_limit"]),
    )(h_p, prep["gamma2d"], prep["beta2d"], prep["wfp"], prep["wfn"])

    out = _run_tile_kernel(prep["a_cat"], g, hn,
                           tile_n=tile_n, n_pad=n_pad, s_h=s_h,
                           out_dtype=h_stages.dtype,
                           vmem_limit=prep["vmem_limit"])
    # [n_pad, S*H] -> [S, N, H]
    return out[:n, :].reshape(n, s, hd).transpose(1, 0, 2)


def normalized_adjacency(edge_index, n):
    """GCN-style D^{-1/2}(A + remaining self-loops)D^{-1/2} dense adjacency.
    TODO(synk): replace with the exact pos_conv/neg_conv normalization of the repo."""
    src, dst = edge_index[0], edge_index[1]
    a = jnp.zeros((n, n), jnp.float32).at[dst, src].add(1.0)
    diag = jnp.diagonal(a)
    a = a + jnp.diag(jnp.where(diag == 0, 1.0, 0.0))
    deg = jnp.sum(a, axis=1)
    d_inv_sqrt = jnp.where(deg > 0, 1.0 / jnp.sqrt(deg), 0.0)
    return a * d_inv_sqrt[:, None] * d_inv_sqrt[None, :]


def reference_forward(h, a_pos, a_neg, w_pos, w_neg, w_psi, gamma, beta):
    mu = jnp.mean(h, axis=-1, keepdims=True)
    var = jnp.mean((h - mu) ** 2, axis=-1, keepdims=True)
    hn = (h - mu) / jnp.sqrt(var + LN_EPS) * gamma + beta
    h_pos = (a_pos @ hn) @ w_pos
    h_neg = (a_neg @ hn) @ w_neg
    delta = jnp.tanh(jnp.concatenate([h_pos, h_neg], axis=1) @ w_psi.T)
    return jnp.clip(delta - DAMPING * hn, -50.0, 50.0)


if __name__ == "__main__":
    N = 64          # number of graph nodes
    H = HIDDEN_DIM  # hidden dim = 32
    E = 128         # edges per sign
    S = 4           # batched RK stages / time steps per kernel launch

    key = jax.random.PRNGKey(0)
    kh, kep, ken, kwp, kwn, kpsi = jax.random.split(key, 6)

    h_stages = jax.random.normal(kh, (S, N, H), dtype=jnp.float32)
    edge_index_pos = jax.random.randint(kep, (2, E), 0, N, dtype=jnp.int32)
    edge_index_neg = jax.random.randint(ken, (2, E), 0, N, dtype=jnp.int32)
    a_pos = normalized_adjacency(edge_index_pos, N)
    a_neg = normalized_adjacency(edge_index_neg, N)

    w_pos = jax.random.normal(kwp, (H, H), dtype=jnp.float32) * 0.1
    w_neg = jax.random.normal(kwn, (H, H), dtype=jnp.float32) * 0.1
    w_psi = jax.random.normal(kpsi, (H, 2 * H), dtype=jnp.float32) * 0.1  # torch [out, in]
    ln_gamma = jnp.ones((H,), jnp.float32)
    ln_beta = jnp.zeros((H,), jnp.float32)

    # One-time per-solve preparation (constant across all ODE-function evals).
    prep = prepare_ode_func(a_pos, a_neg, w_pos, w_neg, w_psi,
                            ln_gamma, ln_beta, num_stages=S)

    out = ode_func_eval(prep, h_stages)
    out = jax.block_until_ready(out)
    assert out.shape == (S, N, H)

    ref = jnp.stack([
        reference_forward(h_stages[s], a_pos, a_neg, w_pos, w_neg, w_psi,
                          ln_gamma, ln_beta)
        for s in range(S)
    ])
    # bf16 adjacency / projected operand / hn on the MXU & VPU -> compare
    # against the f32 reference with a correspondingly looser tolerance.
    assert jnp.max(jnp.abs(out - ref)) < 3e-2

    print("KERNEL_OK")
</pallas_src>

<mosaic_0001>
module attributes {stable_mosaic.version = 11 : i64} {
  func.func @_prep_kernel(%arg0: memref<4x256x32xf32, #tpu.memory_space<vmem>>, %arg1: memref<1x32xf32, #tpu.memory_space<vmem>>, %arg2: memref<1x32xf32, #tpu.memory_space<vmem>>, %arg3: memref<32x32xf32, #tpu.memory_space<vmem>>, %arg4: memref<32x32xf32, #tpu.memory_space<vmem>>, %arg5: memref<256x128xbf16, #tpu.memory_space<vmem>>, %arg6: memref<512x128xbf16, #tpu.memory_space<vmem>>) attributes {dimension_semantics = [], scalar_prefetch = 0 : i64, scratch_operands = 0 : i64, tpu.core_type = #tpu.core_type<tc>} {
    %c0 = arith.constant 0 : index
    %c0_0 = arith.constant 0 : index
    %0 = vector.load %arg1[%c0, %c0_0] : memref<1x32xf32, #tpu.memory_space<vmem>>, vector<1x32xf32>
    %c0_1 = arith.constant 0 : index
    %c0_2 = arith.constant 0 : index
    %1 = vector.load %arg2[%c0_1, %c0_2] : memref<1x32xf32, #tpu.memory_space<vmem>>, vector<1x32xf32>
    %c0_3 = arith.constant 0 : index
    %c0_4 = arith.constant 0 : index
    %2 = vector.load %arg3[%c0_3, %c0_4] : memref<32x32xf32, #tpu.memory_space<vmem>>, vector<32x32xf32>
    %c0_5 = arith.constant 0 : index
    %c0_6 = arith.constant 0 : index
    %3 = vector.load %arg4[%c0_5, %c0_6] : memref<32x32xf32, #tpu.memory_space<vmem>>, vector<32x32xf32>
    %c0_7 = arith.constant 0 : index
    %c0_8 = arith.constant 0 : index
    %c0_9 = arith.constant 0 : index
    %4 = vector.load %arg0[%c0_7, %c0_8, %c0_9] : memref<4x256x32xf32, #tpu.memory_space<vmem>>, vector<1x256x32xf32>
    %5 = vector.shape_cast %4 : vector<1x256x32xf32> to vector<256x32xf32>
    %cst = arith.constant dense<0.000000e+00> : vector<256xf32>
    %6 = vector.multi_reduction <add>, %5, %cst [1] : vector<256x32xf32> to vector<256xf32>
    %7 = vector.shape_cast %6 : vector<256xf32> to vector<256x1xf32>
    %cst_10 = arith.constant 3.200000e+01 : f32
    %8 = vector.broadcast %cst_10 : f32 to vector<256x1xf32>
    %9 = arith.divf %7, %8 : vector<256x1xf32>
    %10 = vector.broadcast %9 : vector<256x1xf32> to vector<256x32xf32>
    %11 = arith.subf %5, %10 : vector<256x32xf32>
    %12 = vector.broadcast %9 : vector<256x1xf32> to vector<256x32xf32>
    %13 = arith.subf %5, %12 : vector<256x32xf32>
    %14 = arith.mulf %11, %13 : vector<256x32xf32>
    %cst_11 = arith.constant dense<0.000000e+00> : vector<256xf32>
    %15 = vector.multi_reduction <add>, %14, %cst_11 [1] : vector<256x32xf32> to vector<256xf32>
    %16 = vector.shape_cast %15 : vector<256xf32> to vector<256x1xf32>
    %cst_12 = arith.constant 3.200000e+01 : f32
    %17 = vector.broadcast %cst_12 : f32 to vector<256x1xf32>
    %18 = arith.divf %16, %17 : vector<256x1xf32>
    %19 = vector.broadcast %9 : vector<256x1xf32> to vector<256x32xf32>
    %20 = arith.subf %5, %19 : vector<256x32xf32>
    %cst_13 = arith.constant 9.99999974E-6 : f32
    %21 = vector.broadcast %cst_13 : f32 to vector<256x1xf32>
    %22 = arith.addf %18, %21 : vector<256x1xf32>
    %23 = math.rsqrt %22 : vector<256x1xf32>
    %24 = vector.broadcast %23 : vector<256x1xf32> to vector<256x32xf32>
    %25 = arith.mulf %20, %24 : vector<256x32xf32>
    %26 = vector.broadcast %0 : vector<1x32xf32> to vector<256x32xf32>
    %27 = arith.mulf %25, %26 : vector<256x32xf32>
    %28 = vector.broadcast %1 : vector<1x32xf32> to vector<256x32xf32>
    %29 = arith.addf %27, %28 : vector<256x32xf32>
    %30 = arith.truncf %29 : vector<256x32xf32> to vector<256x32xbf16>
    %cst_14 = arith.constant dense<0.000000e+00> : vector<256x32xf32>
    %31 = tpu.matmul %29, %2, %cst_14 {dimension_numbers = #tpu.dot_dimension_numbers<[1], [0], [0], [1], [0, 0, 1, 1], [], []>} : vector<256x32xf32>, vector<32x32xf32>, vector<256x32xf32> -> vector<256x32xf32>
    %32 = arith.truncf %31 : vector<256x32xf32> to vector<256x32xbf16>
    %cst_15 = arith.constant dense<0.000000e+00> : vector<256x32xf32>
    %33 = tpu.matmul %29, %3, %cst_15 {dimension_numbers = #tpu.dot_dimension_numbers<[1], [0], [0], [1], [0, 0, 1, 1], [], []>} : vector<256x32xf32>, vector<32x32xf32>, vector<256x32xf32> -> vector<256x32xf32>
    %34 = arith.truncf %33 : vector<256x32xf32> to vector<256x32xbf16>
    %c1 = arith.constant 1 : index
    %c0_16 = arith.constant 0 : index
    %c0_17 = arith.constant 0 : index
    %35 = vector.load %arg0[%c1, %c0_16, %c0_17] : memref<4x256x32xf32, #tpu.memory_space<vmem>>, vector<1x256x32xf32>
    %36 = vector.shape_cast %35 : vector<1x256x32xf32> to vector<256x32xf32>
    %cst_18 = arith.constant dense<0.000000e+00> : vector<256xf32>
    %37 = vector.multi_reduction <add>, %36, %cst_18 [1] : vector<256x32xf32> to vector<256xf32>
    %38 = vector.shape_cast %37 : vector<256xf32> to vector<256x1xf32>
    %cst_19 = arith.constant 3.200000e+01 : f32
    %39 = vector.broadcast %cst_19 : f32 to vector<256x1xf32>
    %40 = arith.divf %38, %39 : vector<256x1xf32>
    %41 = vector.broadcast %40 : vector<256x1xf32> to vector<256x32xf32>
    %42 = arith.subf %36, %41 : vector<256x32xf32>
    %43 = vector.broadcast %40 : vector<256x1xf32> to vector<256x32xf32>
    %44 = arith.subf %36, %43 : vector<256x32xf32>
    %45 = arith.mulf %42, %44 : vector<256x32xf32>
    %cst_20 = arith.constant dense<0.000000e+00> : vector<256xf32>
    %46 = vector.multi_reduction <add>, %45, %cst_20 [1] : vector<256x32xf32> to vector<256xf32>
    %47 = vector.shape_cast %46 : vector<256xf32> to vector<256x1xf32>
    %cst_21 = arith.constant 3.200000e+01 : f32
    %48 = vector.broadcast %cst_21 : f32 to vector<256x1xf32>
    %49 = arith.divf %47, %48 : vector<256x1xf32>
    %50 = vector.broadcast %40 : vector<256x1xf32> to vector<256x32xf32>
    %51 = arith.subf %36, %50 : vector<256x32xf32>
    %cst_22 = arith.constant 9.99999974E-6 : f32
    %52 = vector.broadcast %cst_22 : f32 to vector<256x1xf32>
    %53 = arith.addf %49, %52 : vector<256x1xf32>
    %54 = math.rsqrt %53 : vector<256x1xf32>
    %55 = vector.broadcast %54 : vector<256x1xf32> to vector<256x32xf32>
    %56 = arith.mulf %51, %55 : vector<256x32xf32>
    %57 = vector.broadcast %0 : vector<1x32xf32> to vector<256x32xf32>
    %58 = arith.mulf %56, %57 : vector<256x32xf32>
    %59 = vector.broadcast %1 : vector<1x32xf32> to vector<256x32xf32>
    %60 = arith.addf %58, %59 : vector<256x32xf32>
    %61 = arith.truncf %60 : vector<256x32xf32> to vector<256x32xbf16>
    %cst_23 = arith.constant dense<0.000000e+00> : vector<256x32xf32>
    %62 = tpu.matmul %60, %2, %cst_23 {dimension_numbers = #tpu.dot_dimension_numbers<[1], [0], [0], [1], [0, 0, 1, 1], [], []>} : vector<256x32xf32>, vector<32x32xf32>, vector<256x32xf32> -> vector<256x32xf32>
    %63 = arith.truncf %62 : vector<256x32xf32> to vector<256x32xbf16>
    %cst_24 = arith.constant dense<0.000000e+00> : vector<256x32xf32>
    %64 = tpu.matmul %60, %3, %cst_24 {dimension_numbers = #tpu.dot_dimension_numbers<[1], [0], [0], [1], [0, 0, 1, 1], [], []>} : vector<256x32xf32>, vector<32x32xf32>, vector<256x32xf32> -> vector<256x32xf32>
    %65 = arith.truncf %64 : vector<256x32xf32> to vector<256x32xbf16>
    %c2 = arith.constant 2 : index
    %c0_25 = arith.constant 0 : index
    %c0_26 = arith.constant 0 : index
    %66 = vector.load %arg0[%c2, %c0_25, %c0_26] : memref<4x256x32xf32, #tpu.memory_space<vmem>>, vector<1x256x32xf32>
    %67 = vector.shape_cast %66 : vector<1x256x32xf32> to vector<256x32xf32>
    %cst_27 = arith.constant dense<0.000000e+00> : vector<256xf32>
    %68 = vector.multi_reduction <add>, %67, %cst_27 [1] : vector<256x32xf32> to vector<256xf32>
    %69 = vector.shape_cast %68 : vector<256xf32> to vector<256x1xf32>
    %cst_28 = arith.constant 3.200000e+01 : f32
    %70 = vector.broadcast %cst_28 : f32 to vector<256x1xf32>
    %71 = arith.divf %69, %70 : vector<256x1xf32>
    %72 = vector.broadcast %71 : vector<256x1xf32> to vector<256x32xf32>
    %73 = arith.subf %67, %72 : vector<256x32xf32>
    %74 = vector.broadcast %71 : vector<256x1xf32> to vector<256x32xf32>
    %75 = arith.subf %67, %74 : vector<256x32xf32>
    %76 = arith.mulf %73, %75 : vector<256x32xf32>
    %cst_29 = arith.constant dense<0.000000e+00> : vector<256xf32>
    %77 = vector.multi_reduction <add>, %76, %cst_29 [1] : vector<256x32xf32> to vector<256xf32>
    %78 = vector.shape_cast %77 : vector<256xf32> to vector<256x1xf32>
    %cst_30 = arith.constant 3.200000e+01 : f32
    %79 = vector.broadcast %cst_30 : f32 to vector<256x1xf32>
    %80 = arith.divf %78, %79 : vector<256x1xf32>
    %81 = vector.broadcast %71 : vector<256x1xf32> to vector<256x32xf32>
    %82 = arith.subf %67, %81 : vector<256x32xf32>
    %cst_31 = arith.constant 9.99999974E-6 : f32
    %83 = vector.broadcast %cst_31 : f32 to vector<256x1xf32>
    %84 = arith.addf %80, %83 : vector<256x1xf32>
    %85 = math.rsqrt %84 : vector<256x1xf32>
    %86 = vector.broadcast %85 : vector<256x1xf32> to vector<256x32xf32>
    %87 = arith.mulf %82, %86 : vector<256x32xf32>
    %88 = vector.broadcast %0 : vector<1x32xf32> to vector<256x32xf32>
    %89 = arith.mulf %87, %88 : vector<256x32xf32>
    %90 = vector.broadcast %1 : vector<1x32xf32> to vector<256x32xf32>
    %91 = arith.addf %89, %90 : vector<256x32xf32>
    %92 = arith.truncf %91 : vector<256x32xf32> to vector<256x32xbf16>
    %cst_32 = arith.constant dense<0.000000e+00> : vector<256x32xf32>
    %93 = tpu.matmul %91, %2, %cst_32 {dimension_numbers = #tpu.dot_dimension_numbers<[1], [0], [0], [1], [0, 0, 1, 1], [], []>} : vector<256x32xf32>, vector<32x32xf32>, vector<256x32xf32> -> vector<256x32xf32>
    %94 = arith.truncf %93 : vector<256x32xf32> to vector<256x32xbf16>
    %cst_33 = arith.constant dense<0.000000e+00> : vector<256x32xf32>
    %95 = tpu.matmul %91, %3, %cst_33 {dimension_numbers = #tpu.dot_dimension_numbers<[1], [0], [0], [1], [0, 0, 1, 1], [], []>} : vector<256x32xf32>, vector<32x32xf32>, vector<256x32xf32> -> vector<256x32xf32>
    %96 = arith.truncf %95 : vector<256x32xf32> to vector<256x32xbf16>
    %c3 = arith.constant 3 : index
    %c0_34 = arith.constant 0 : index
    %c0_35 = arith.constant 0 : index
    %97 = vector.load %arg0[%c3, %c0_34, %c0_35] : memref<4x256x32xf32, #tpu.memory_space<vmem>>, vector<1x256x32xf32>
    %98 = vector.shape_cast %97 : vector<1x256x32xf32> to vector<256x32xf32>
    %cst_36 = arith.constant dense<0.000000e+00> : vector<256xf32>
    %99 = vector.multi_reduction <add>, %98, %cst_36 [1] : vector<256x32xf32> to vector<256xf32>
    %100 = vector.shape_cast %99 : vector<256xf32> to vector<256x1xf32>
    %cst_37 = arith.constant 3.200000e+01 : f32
    %101 = vector.broadcast %cst_37 : f32 to vector<256x1xf32>
    %102 = arith.divf %100, %101 : vector<256x1xf32>
    %103 = vector.broadcast %102 : vector<256x1xf32> to vector<256x32xf32>
    %104 = arith.subf %98, %103 : vector<256x32xf32>
    %105 = vector.broadcast %102 : vector<256x1xf32> to vector<256x32xf32>
    %106 = arith.subf %98, %105 : vector<256x32xf32>
    %107 = arith.mulf %104, %106 : vector<256x32xf32>
    %cst_38 = arith.constant dense<0.000000e+00> : vector<256xf32>
    %108 = vector.multi_reduction <add>, %107, %cst_38 [1] : vector<256x32xf32> to vector<256xf32>
    %109 = vector.shape_cast %108 : vector<256xf32> to vector<256x1xf32>
    %cst_39 = arith.constant 3.200000e+01 : f32
    %110 = vector.broadcast %cst_39 : f32 to vector<256x1xf32>
    %111 = arith.divf %109, %110 : vector<256x1xf32>
    %112 = vector.broadcast %102 : vector<256x1xf32> to vector<256x32xf32>
    %113 = arith.subf %98, %112 : vector<256x32xf32>
    %cst_40 = arith.constant 9.99999974E-6 : f32
    %114 = vector.broadcast %cst_40 : f32 to vector<256x1xf32>
    %115 = arith.addf %111, %114 : vector<256x1xf32>
    %116 = math.rsqrt %115 : vector<256x1xf32>
    %117 = vector.broadcast %116 : vector<256x1xf32> to vector<256x32xf32>
    %118 = arith.mulf %113, %117 : vector<256x32xf32>
    %119 = vector.broadcast %0 : vector<1x32xf32> to vector<256x32xf32>
    %120 = arith.mulf %118, %119 : vector<256x32xf32>
    %121 = vector.broadcast %1 : vector<1x32xf32> to vector<256x32xf32>
    %122 = arith.addf %120, %121 : vector<256x32xf32>
    %123 = arith.truncf %122 : vector<256x32xf32> to vector<256x32xbf16>
    %cst_41 = arith.constant dense<0.000000e+00> : vector<256x32xf32>
    %124 = tpu.matmul %122, %2, %cst_41 {dimension_numbers = #tpu.dot_dimension_numbers<[1], [0], [0], [1], [0, 0, 1, 1], [], []>} : vector<256x32xf32>, vector<32x32xf32>, vector<256x32xf32> -> vector<256x32xf32>
    %125 = arith.truncf %124 : vector<256x32xf32> to vector<256x32xbf16>
    %cst_42 = arith.constant dense<0.000000e+00> : vector<256x32xf32>
    %126 = tpu.matmul %122, %3, %cst_42 {dimension_numbers = #tpu.dot_dimension_numbers<[1], [0], [0], [1], [0, 0, 1, 1], [], []>} : vector<256x32xf32>, vector<32x32xf32>, vector<256x32xf32> -> vector<256x32xf32>
    %127 = arith.truncf %126 : vector<256x32xf32> to vector<256x32xbf16>
    %128 = tpu.concatenate %30, %61, %92, %123 in 1 : vector<256x32xbf16>, vector<256x32xbf16>, vector<256x32xbf16>, vector<256x32xbf16> -> vector<256x128xbf16>
    %c0_43 = arith.constant 0 : index
    %c0_44 = arith.constant 0 : index
    %129 = vector.load %arg5[%c0_43, %c0_44] : memref<256x128xbf16, #tpu.memory_space<vmem>>, vector<256x128xbf16>
    tpu.vector_store %arg5[%c0_43, %c0_44], %128 {strides = array<i32>} : memref<256x128xbf16, #tpu.memory_space<vmem>>, vector<256x128xbf16>,
    %130 = tpu.concatenate %32, %63, %94, %125 in 1 : vector<256x32xbf16>, vector<256x32xbf16>, vector<256x32xbf16>, vector<256x32xbf16> -> vector<256x128xbf16>
    %c0_45 = arith.constant 0 : index
    %c0_46 = arith.constant 0 : index
    %131 = vector.load %arg6[%c0_45, %c0_46] : memref<512x128xbf16, #tpu.memory_space<vmem>>, vector<256x128xbf16>
    tpu.vector_store %arg6[%c0_45, %c0_46], %130 {strides = array<i32>} : memref<512x128xbf16, #tpu.memory_space<vmem>>, vector<256x128xbf16>,
    %132 = tpu.concatenate %34, %65, %96, %127 in 1 : vector<256x32xbf16>, vector<256x32xbf16>, vector<256x32xbf16>, vector<256x32xbf16> -> vector<256x128xbf16>
    %c256 = arith.constant 256 : index
    %c0_47 = arith.constant 0 : index
    %133 = vector.load %arg6[%c256, %c0_47] : memref<512x128xbf16, #tpu.memory_space<vmem>>, vector<256x128xbf16>
    tpu.vector_store %arg6[%c256, %c0_47], %132 {strides = array<i32>} : memref<512x128xbf16, #tpu.memory_space<vmem>>, vector<256x128xbf16>,
    return
  }
}

</mosaic_0001>

<bundles_post_ra>
// kernel: tpu_custom_call.1
= control target key start
LH: loop header
LB: loop body
LE: loop exit
PB: predicated region body
PF: predicated region fallthrough
CT: control target
= control target key end

     0   :  { %12 = vsyncpa [#allocation3], 0  ;;  %vm66_vm0 = vcmask 261120   ;;  %s11467_s0 = inlined_call_operand.vmem [shape: f32[4,256,32], index: 0, kind: input, shape index: {}]   ;;  %s11468_s1 = inlined_call_operand.vmem [shape: f32[1,32], index: 1, kind: input, shape index: {}]   ;;  %s11469_s2 = inlined_call_operand.vmem [shape: f32[1,32], index: 2, kind: input, shape index: {}]   ;;  %s11470_s3 = inlined_call_operand.vmem [shape: f32[32,32], index: 3, kind: input, shape index: {}]   ;;  %s11471_s4 = inlined_call_operand.vmem [shape: f32[32,32], index: 4, kind: input, shape index: {}]   ;;  %s11472_s5 = inlined_call_operand.hbm [shape: bf16[256,128], index: 5, kind: output, shape index: {0}]   ;;  %s11473_s6 = inlined_call_operand.hbm [shape: bf16[512,128], index: 6, kind: output, shape index: {1}]  }
   0x1   :  { %v7331_v0 = vld [vmem:[%s11467_s0] sm:$0xff]  ;;  %v7336_v1 = vld [vmem:[%s11467_s0 + $0x10] sm:$0xff]  ;;  %v7341_v2 = vld [vmem:[%s11467_s0 + $0x8] sm:$0xff] }
   0x2   :  { %v67_v3 = vsel %vm66_vm0, %v7331_v0, 0.0  ;;  %v73_v4 = vsel %vm66_vm0, %v7336_v1, 0.0  ;;  %v7350_v5 = vld [vmem:[%s11467_s0 + $0x18] sm:$0xff]  ;;  %v70_v6 = vsel %vm66_vm0, %v7341_v2, 0.0  ;;  %v7359_v8 = vld [vmem:[%s11467_s0 + $0x20] sm:$0xff]  ;;  %v7364_v9 = vld [vmem:[%s11467_s0 + $0x28] sm:$0xff] }
   0x3   :  { %68 = vadd.xlane.f32.xlu0 %v67_v3  ;;  %74 = vadd.xlane.f32.xlu1 %v73_v4  ;;  %v76_v7 = vsel %vm66_vm0, %v7350_v5, 0.0  ;;  %v79_v10 = vsel %vm66_vm0, %v7359_v8, 0.0  ;;  %v82_v11 = vsel %vm66_vm0, %v7364_v9, 0.0  ;;  %v7373_v12 = vld [vmem:[%s11467_s0 + $0x30] sm:$0xff]  ;;  %v7378_v13 = vld [vmem:[%s11467_s0 + $0x38] sm:$0xff]  ;;  %v7387_v16 = vld [vmem:[%s11467_s0 + $0x40] sm:$0xff] }
   0x4   :  { %v85_v14 = vsel %vm66_vm0, %v7373_v12, 0.0  ;;  %v88_v15 = vsel %vm66_vm0, %v7378_v13, 0.0  ;;  %v7392_v17 = vld [vmem:[%s11467_s0 + $0x48] sm:$0xff] }
   0x7   :  { %71 = vadd.xlane.f32.xlu0 %v70_v6  ;;  %77 = vadd.xlane.f32.xlu1 %v76_v7 }
   0xb   :  { %80 = vadd.xlane.f32.xlu0 %v79_v10  ;;  %83 = vadd.xlane.f32.xlu1 %v82_v11 }
   0xf   :  { %86 = vadd.xlane.f32.xlu0 %v85_v14  ;;  %89 = vadd.xlane.f32.xlu1 %v88_v15 }
  0x10   :  { %13 = vsyncpa [#allocation5], 0  ;;  %v91_v18 = vsel %vm66_vm0, %v7387_v16, 0.0  ;;  %v94_v19 = vsel %vm66_vm0, %v7392_v17, 0.0  ;;  %v7401_v20 = vld [vmem:[%s11467_s0 + $0x50] sm:$0xff]  ;;  %v7406_v21 = vld [vmem:[%s11467_s0 + $0x58] sm:$0xff] }
  0x11   :  { %v97_v22 = vsel %vm66_vm0, %v7401_v20, 0.0  ;;  %v100_v23 = vsel %vm66_vm0, %v7406_v21, 0.0  ;;  %v7415_v24 = vld [vmem:[%s11467_s0 + $0x60] sm:$0xff]  ;;  %v7420_v25 = vld [vmem:[%s11467_s0 + $0x68] sm:$0xff]  ;;  %v7429_v28 = vld [vmem:[%s11467_s0 + $0x70] sm:$0xff]  ;;  %s7287_s30 = smov 32  }
  0x12   :  { %v103_v26 = vsel %vm66_vm0, %v7415_v24, 0.0  ;;  %v106_v27 = vsel %vm66_vm0, %v7420_v25, 0.0  ;;  %v7434_v29 = vld [vmem:[%s11467_s0 + $0x78] sm:$0xff]  ;;  %v109_v30 = vsel %vm66_vm0, %v7429_v28, 0.0  ;;  %v7443_v32 = vld [vmem:[%s11467_s0 + $0x80] sm:$0xff]  ;;  %v7448_v33 = vld [vmem:[%s11467_s0 + $0x88] sm:$0xff] }
  0x13   :  { %92 = vadd.xlane.f32.xlu0 %v91_v18  ;;  %95 = vadd.xlane.f32.xlu1 %v94_v19  ;;  %v112_v31 = vsel %vm66_vm0, %v7434_v29, 0.0  ;;  %v115_v34 = vsel %vm66_vm0, %v7443_v32, 0.0  ;;  %v118_v35 = vsel %vm66_vm0, %v7448_v33, 0.0  ;;  %v7457_v36 = vld [vmem:[%s11467_s0 + $0x90] sm:$0xff]  ;;  %v7462_v37 = vld [vmem:[%s11467_s0 + $0x98] sm:$0xff]  ;;  %v7471_v40 = vld [vmem:[%s11467_s0 + $0xa0] sm:$0xff] }
  0x14   :  { %v121_v38 = vsel %vm66_vm0, %v7457_v36, 0.0  ;;  %v124_v39 = vsel %vm66_vm0, %v7462_v37, 0.0  ;;  %v7476_v41 = vld [vmem:[%s11467_s0 + $0xa8] sm:$0xff]  ;;  %v127_v42 = vsel %vm66_vm0, %v7471_v40, 0.0  ;;  %v7485_v44 = vld [vmem:[%s11467_s0 + $0xb0] sm:$0xff]  ;;  %v7490_v45 = vld [vmem:[%s11467_s0 + $0xb8] sm:$0xff] }
  0x15   :  { %v130_v43 = vsel %vm66_vm0, %v7476_v41, 0.0  ;;  %v133_v46 = vsel %vm66_vm0, %v7485_v44, 0.0  ;;  %v136_v47 = vsel %vm66_vm0, %v7490_v45, 0.0  ;;  %v7499_v48 = vld [vmem:[%s11467_s0 + $0xc0] sm:$0xff]  ;;  %v7504_v49 = vld [vmem:[%s11467_s0 + $0xc8] sm:$0xff]  ;;  %v7513_v52 = vld [vmem:[%s11467_s0 + $0xd0] sm:$0xff] }
  0x16   :  { %v139_v50 = vsel %vm66_vm0, %v7499_v48, 0.0  ;;  %v142_v51 = vsel %vm66_vm0, %v7504_v49, 0.0  ;;  %v7518_v53 = vld [vmem:[%s11467_s0 + $0xd8] sm:$0xff]  ;;  %v145_v54 = vsel %vm66_vm0, %v7513_v52, 0.0  ;;  %v7527_v56 = vld [vmem:[%s11467_s0 + $0xe0] sm:$0xff]  ;;  %v7532_v57 = vld [vmem:[%s11467_s0 + $0xe8] sm:$0xff] }
  0x17   :  { %98 = vadd.xlane.f32.xlu0 %v97_v22  ;;  %101 = vadd.xlane.f32.xlu1 %v100_v23  ;;  %v148_v55 = vsel %vm66_vm0, %v7518_v53, 0.0  ;;  %v151_v58 = vsel %vm66_vm0, %v7527_v56, 0.0  ;;  %v154_v59 = vsel %vm66_vm0, %v7532_v57, 0.0  ;;  %v7541_v60 = vld [vmem:[%s11467_s0 + $0xf0] sm:$0xff]  ;;  %v7546_v61 = vld [vmem:[%s11467_s0 + $0xf8] sm:$0xff]  ;;  %v7555_v3 = vld [vmem:[%s11467_s0 + $0x100] sm:$0xff] }
  0x18   :  { %v157_v62 = vsel %vm66_vm0, %v7541_v60, 0.0  ;;  %v160_v63 = vsel %vm66_vm0, %v7546_v61, 0.0  ;;  %v7560_v4 = vld [vmem:[%s11467_s0 + $0x108] sm:$0xff]  ;;  %v1187_v6 = vsel %vm66_vm0, %v7555_v3, 0.0  ;;  %v7569_v10 = vld [vmem:[%s11467_s0 + $0x110] sm:$0xff]  ;;  %v7574_v11 = vld [vmem:[%s11467_s0 + $0x118] sm:$0xff] }
  0x19   :  { %v1190_v7 = vsel %vm66_vm0, %v7560_v4, 0.0  ;;  %v1193_v14 = vsel %vm66_vm0, %v7569_v10, 0.0  ;;  %v1196_v15 = vsel %vm66_vm0, %v7574_v11, 0.0  ;;  %v7583_v18 = vld [vmem:[%s11467_s0 + $0x120] sm:$0xff]  ;;  %v7588_v19 = vld [vmem:[%s11467_s0 + $0x128] sm:$0xff]  ;;  %s7288_s7 = smov 64  }
  0x1a   :  { %v1199_v22 = vsel %vm66_vm0, %v7583_v18, 0.0  ;;  %v1202_v23 = vsel %vm66_vm0, %v7588_v19, 0.0  ;;  %s7289_s8 = smov 96   ;;  %vm4667_vm1 = vcmask 523264   ;;  %vm4700_vm2 = vcmask 785408  }
  0x1b   :  { %104 = vadd.xlane.f32.xlu0 %v103_v26  ;;  %107 = vadd.xlane.f32.xlu1 %v106_v27  ;;  %v7597_v26 = vld [vmem:[%s11467_s0 + $0x130] sm:$0xff]  ;;  %v7602_v27 = vld [vmem:[%s11467_s0 + $0x138] sm:$0xff] }
  0x1f   :  { %110 = vadd.xlane.f32.xlu0 %v109_v30  ;;  %113 = vadd.xlane.f32.xlu1 %v112_v31  ;;  %v1205_v30 = vsel %vm66_vm0, %v7597_v26, 0.0  ;;  %v1208_v31 = vsel %vm66_vm0, %v7602_v27, 0.0 }
  0x23   :  { %116 = vadd.xlane.f32.xlu0 %v115_v34  ;;  %119 = vadd.xlane.f32.xlu1 %v118_v35  ;;  %v7611_v34 = vld [vmem:[%s11467_s0 + $0x140] sm:$0xff]  ;;  %v7616_v35 = vld [vmem:[%s11467_s0 + $0x148] sm:$0xff] }
  0x27   :  { %122 = vadd.xlane.f32.xlu0 %v121_v38  ;;  %125 = vadd.xlane.f32.xlu1 %v124_v39  ;;  %v1211_v38 = vsel %vm66_vm0, %v7611_v34, 0.0  ;;  %v1214_v39 = vsel %vm66_vm0, %v7616_v35, 0.0 }
  0x2b   :  { %128 = vadd.xlane.f32.xlu0 %v127_v42  ;;  %131 = vadd.xlane.f32.xlu1 %v130_v43 }
  0x2f   :  { %134 = vadd.xlane.f32.xlu0 %v133_v46  ;;  %137 = vadd.xlane.f32.xlu1 %v136_v47 }
  0x33   :  { %140 = vadd.xlane.f32.xlu0 %v139_v50  ;;  %143 = vadd.xlane.f32.xlu1 %v142_v51 }
  0x37   :  { %146 = vadd.xlane.f32.xlu0 %v145_v54  ;;  %149 = vadd.xlane.f32.xlu1 %v148_v55 }
  0x3b   :  { %152 = vadd.xlane.f32.xlu0 %v151_v58  ;;  %155 = vadd.xlane.f32.xlu1 %v154_v59 }
  0x3f   :  { %158 = vadd.xlane.f32.xlu0 %v157_v62  ;;  %161 = vadd.xlane.f32.xlu1 %v160_v63 }
  0x43   :  { %1188 = vadd.xlane.f32.xlu0 %v1187_v6  ;;  %1191 = vadd.xlane.f32.xlu1 %v1190_v7 }
  0x47   :  { %1194 = vadd.xlane.f32.xlu0 %v1193_v14  ;;  %1197 = vadd.xlane.f32.xlu1 %v1196_v15 }
  0x4b   :  { %1200 = vadd.xlane.f32.xlu0 %v1199_v22  ;;  %1203 = vadd.xlane.f32.xlu1 %v1202_v23 }
  0x4f   :  { %1206 = vadd.xlane.f32.xlu0 %v1205_v30  ;;  %1209 = vadd.xlane.f32.xlu1 %v1208_v31 }
  0x53   :  { %1212 = vadd.xlane.f32.xlu0 %v1211_v38  ;;  %1215 = vadd.xlane.f32.xlu1 %v1214_v39 }
  0x8c   :  { %v69_v42 = vpop.xlane.xlu0 %68  ;;  %v75_v43 = vpop.xlane.xlu1 %74 }
  0x8d   :  { %v164_v46 = vmul.f32 0.03125, %v69_v42  ;;  %v166_v47 = vmul.f32 0.03125, %v75_v43 }
  0x8f   :  { %v7623_v50 = vsub.f32 %v7331_v0, %v164_v46  ;;  %v7626_v51 = vsub.f32 %v7336_v1, %v166_v47 }
  0x90   :  { %v72_v54 = vpop.xlane.xlu0 %71  ;;  %v78_v55 = vpop.xlane.xlu1 %77 }
  0x91   :  { %v165_v58 = vmul.f32 0.03125, %v72_v54  ;;  %v167_v59 = vmul.f32 0.03125, %v78_v55  ;;  %v228_v62 = vmul.f32 %v7623_v50, %v7623_v50  ;;  %v230_v63 = vmul.f32 %v7626_v51, %v7626_v51 }
  0x93   :  { %v7633_v6 = vsub.f32 %v7341_v2, %v165_v58  ;;  %v7636_v7 = vsub.f32 %v7350_v5, %v167_v59  ;;  %v260_v0 = vsel %vm66_vm0, %v228_v62, 0.0  ;;  %v266_v15 = vsel %vm66_vm0, %v230_v63, 0.0 }
  0x94   :  { %261 = vadd.xlane.f32.xlu0 %v260_v0  ;;  %v81_v1 = vpop.xlane.xlu0 %80  ;;  %v84_v14 = vpop.xlane.xlu1 %83 }
  0x95   :  { %v168_v22 = vmul.f32 0.03125, %v81_v1  ;;  %v169_v23 = vmul.f32 0.03125, %v84_v14  ;;  %v229_v30 = vmul.f32 %v7633_v6, %v7633_v6  ;;  %v231_v31 = vmul.f32 %v7636_v7, %v7636_v7 }
  0x97   :  { %v7645_v2 = vsub.f32 %v7359_v8, %v168_v22  ;;  %v7648_v5 = vsub.f32 %v7364_v9, %v169_v23  ;;  %v263_v38 = vsel %vm66_vm0, %v229_v30, 0.0  ;;  %v269_v43 = vsel %vm66_vm0, %v231_v31, 0.0 }
  0x98   :  { %267 = vadd.xlane.f32.xlu0 %v266_v15  ;;  %264 = vadd.xlane.f32.xlu1 %v263_v38  ;;  %v87_v39 = vpop.xlane.xlu0 %86  ;;  %v90_v42 = vpop.xlane.xlu1 %89 }
  0x99   :  { %v170_v46 = vmul.f32 0.03125, %v87_v39  ;;  %v171_v47 = vmul.f32 0.03125, %v90_v42  ;;  %v232_v54 = vmul.f32 %v7645_v2, %v7645_v2  ;;  %v233_v8 = vmul.f32 %v7648_v5, %v7648_v5 }
  0x9b   :  { %v7657_v55 = vsub.f32 %v7373_v12, %v170_v46  ;;  %v7660_v9 = vsub.f32 %v7378_v13, %v171_v47  ;;  %v272_v58 = vsel %vm66_vm0, %v232_v54, 0.0  ;;  %v275_v63 = vsel %vm66_vm0, %v233_v8, 0.0 }
  0x9c   :  { %270 = vadd.xlane.f32.xlu1 %v269_v43  ;;  %273 = vadd.xlane.f32.xlu0 %v272_v58  ;;  %v93_v59 = vpop.xlane.xlu0 %92  ;;  %v96_v62 = vpop.xlane.xlu1 %95 }
  0x9d   :  { %v172_v0 = vmul.f32 0.03125, %v93_v59  ;;  %v173_v1 = vmul.f32 0.03125, %v96_v62  ;;  %v234_v14 = vmul.f32 %v7657_v55, %v7657_v55  ;;  %v235_v12 = vmul.f32 %v7660_v9, %v7660_v9 }
  0x9f   :  { %v7669_v15 = vsub.f32 %v7387_v16, %v172_v0  ;;  %v7672_v13 = vsub.f32 %v7392_v17, %v173_v1  ;;  %v278_v22 = vsel %vm66_vm0, %v234_v14, 0.0  ;;  %v281_v31 = vsel %vm66_vm0, %v235_v12, 0.0 }
  0xa0   :  { %276 = vadd.xlane.f32.xlu1 %v275_v63  ;;  %279 = vadd.xlane.f32.xlu0 %v278_v22  ;;  %v99_v23 = vpop.xlane.xlu0 %98  ;;  %v102_v30 = vpop.xlane.xlu1 %101 }
  0xa1   :  { %v174_v38 = vmul.f32 0.03125, %v99_v23  ;;  %v175_v39 = vmul.f32 0.03125, %v102_v30  ;;  %v236_v42 = vmul.f32 %v7669_v15, %v7669_v15  ;;  %v237_v16 = vmul.f32 %v7672_v13, %v7672_v13 }
  0xa3   :  { %v7681_v43 = vsub.f32 %v7401_v20, %v174_v38  ;;  %v7684_v17 = vsub.f32 %v7406_v21, %v175_v39  ;;  %v284_v46 = vsel %vm66_vm0, %v236_v42, 0.0  ;;  %v287_v8 = vsel %vm66_vm0, %v237_v16, 0.0 }
  0xa4   :  { %282 = vadd.xlane.f32.xlu1 %v281_v31  ;;  %285 = vadd.xlane.f32.xlu0 %v284_v46  ;;  %v105_v47 = vpop.xlane.xlu0 %104  ;;  %v108_v54 = vpop.xlane.xlu1 %107 }
  0xa5   :  { %v176_v58 = vmul.f32 0.03125, %v105_v47  ;;  %v177_v59 = vmul.f32 0.03125, %v108_v54  ;;  %v238_v62 = vmul.f32 %v7681_v43, %v7681_v43  ;;  %v239_v20 = vmul.f32 %v7684_v17, %v7684_v17 }
  0xa7   :  { %v7693_v63 = vsub.f32 %v7415_v24, %v176_v58  ;;  %v7696_v21 = vsub.f32 %v7420_v25, %v177_v59  ;;  %v290_v0 = vsel %vm66_vm0, %v238_v62, 0.0  ;;  %v293_v12 = vsel %vm66_vm0, %v239_v20, 0.0 }
  0xa8   :  { %288 = vadd.xlane.f32.xlu1 %v287_v8  ;;  %291 = vadd.xlane.f32.xlu0 %v290_v0  ;;  %v111_v1 = vpop.xlane.xlu0 %110  ;;  %v114_v14 = vpop.xlane.xlu1 %113 }
  0xa9   :  { %v178_v22 = vmul.f32 0.03125, %v111_v1  ;;  %v179_v23 = vmul.f32 0.03125, %v114_v14  ;;  %v240_v30 = vmul.f32 %v7693_v63, %v7693_v63  ;;  %v241_v24 = vmul.f32 %v7696_v21, %v7696_v21 }
  0xab   :  { %v7705_v31 = vsub.f32 %v7429_v28, %v178_v22  ;;  %v7708_v25 = vsub.f32 %v7434_v29, %v179_v23  ;;  %v296_v38 = vsel %vm66_vm0, %v240_v30, 0.0  ;;  %v299_v16 = vsel %vm66_vm0, %v241_v24, 0.0 }
  0xac   :  { %294 = vadd.xlane.f32.xlu1 %v293_v12  ;;  %297 = vadd.xlane.f32.xlu0 %v296_v38  ;;  %v117_v39 = vpop.xlane.xlu0 %116  ;;  %v120_v42 = vpop.xlane.xlu1 %119  ;;  %v7736_v12 = vld [vmem:[%s11471_s4 + $0x18] sm:$0xff] }
  0xad   :  { %v180_v46 = vmul.f32 0.03125, %v117_v39  ;;  %v181_v47 = vmul.f32 0.03125, %v120_v42  ;;  %v242_v54 = vmul.f32 %v7705_v31, %v7705_v31  ;;  %v243_v28 = vmul.f32 %v7708_v25, %v7708_v25  ;;  %6503 = vmatprep.subr.mxu1 %v7736_v12 }
  0xae   :  { %6504 = vmatpush3.msra.mxu1 %v7736_v12 }
  0xaf   :  { %v7717_v8 = vsub.f32 %v7443_v32, %v180_v46  ;;  %v7720_v29 = vsub.f32 %v7448_v33, %v181_v47  ;;  %v302_v58 = vsel %vm66_vm0, %v242_v54, 0.0  ;;  %v305_v20 = vsel %vm66_vm0, %v243_v28, 0.0  ;;  %v7731_v33 = vld [vmem:[%s11470_s3 + $0x18] sm:$0xff]  ;;  %v7769_v54 = vld [vmem:[%s11470_s3 + $0x8] sm:$0xff] }
  0xb0   :  { %300 = vadd.xlane.f32.xlu1 %v299_v16  ;;  %303 = vadd.xlane.f32.xlu0 %v302_v58  ;;  %v123_v59 = vpop.xlane.xlu0 %122  ;;  %v126_v62 = vpop.xlane.xlu1 %125  ;;  %v7774_v28 = vld [vmem:[%s11471_s4 + $0x8] sm:$0xff] }
  0xb1   :  { %v182_v0 = vmul.f32 0.03125, %v123_v59  ;;  %v183_v1 = vmul.f32 0.03125, %v126_v62  ;;  %v244_v14 = vmul.f32 %v7717_v8, %v7717_v8  ;;  %v245_v32 = vmul.f32 %v7720_v29, %v7720_v29  ;;  %6447 = vmatprep.subr.mxu0 %v7731_v33 }
  0xb2   :  { %6448 = vmatpush3.msra.mxu0 %v7731_v33 }
  0xb3   :  { %v7739_v22 = vsub.f32 %v7457_v36, %v182_v0  ;;  %v7742_v23 = vsub.f32 %v7462_v37, %v183_v1  ;;  %v308_v30 = vsel %vm66_vm0, %v244_v14, 0.0  ;;  %v311_v39 = vsel %vm66_vm0, %v245_v32, 0.0  ;;  %v7751_v36 = vld [vmem:[%s11470_s3 + $0x10] sm:$0xff] }
  0xb4   :  { %306 = vadd.xlane.f32.xlu1 %v305_v20  ;;  %309 = vadd.xlane.f32.xlu0 %v308_v30  ;;  %v129_v24 = vpop.xlane.xlu0 %128  ;;  %v132_v38 = vpop.xlane.xlu1 %131  ;;  %v7756_v37 = vld [vmem:[%s11471_s4 + $0x10] sm:$0xff] }
  0xb5   :  { %v184_v42 = vmul.f32 0.03125, %v129_v24  ;;  %v185_v16 = vmul.f32 0.03125, %v132_v38  ;;  %v246_v46 = vmul.f32 %v7739_v22, %v7739_v22  ;;  %v247_v47 = vmul.f32 %v7742_v23, %v7742_v23  ;;  %6449 = vmatprep.subr.mxu0 %v7751_v36  ;;  %6505 = vmatprep.subr.mxu1 %v7756_v37 }
  0xb6   :  { %6450 = vmatpush3.msra.mxu0 %v7751_v36  ;;  %6506 = vmatpush3.msra.mxu1 %v7756_v37 }
  0xb7   :  { %v7777_v58 = vsub.f32 %v7471_v40, %v184_v42  ;;  %v7780_v59 = vsub.f32 %v7476_v41, %v185_v16  ;;  %v314_v62 = vsel %vm66_vm0, %v246_v46, 0.0  ;;  %v317_v1 = vsel %vm66_vm0, %v247_v47, 0.0  ;;  %v7789_v40 = vld [vmem:[%s11470_s3] sm:$0xff]  ;;  %6451 = vmatprep.subr.mxu0 %v7769_v54  ;;  %6507 = vmatprep.subr.mxu1 %v7774_v28 }
  0xb8   :  { %312 = vadd.xlane.f32.xlu1 %v311_v39  ;;  %315 = vadd.xlane.f32.xlu0 %v314_v62  ;;  %v135_v20 = vpop.xlane.xlu0 %134  ;;  %v138_v0 = vpop.xlane.xlu1 %137  ;;  %v7794_v41 = vld [vmem:[%s11471_s4] sm:$0xff] }
  0xb9   :  { %v186_v14 = vmul.f32 0.03125, %v135_v20  ;;  %v187_v32 = vmul.f32 0.03125, %v138_v0  ;;  %v248_v30 = vmul.f32 %v7777_v58, %v7777_v58  ;;  %v249_v24 = vmul.f32 %v7780_v59, %v7780_v59  ;;  %6452 = vmatpush3.msra.mxu0 %v7769_v54  ;;  %6508 = vmatpush3.msra.mxu1 %v7774_v28 }
  0xba   :  { %6453 = vmatprep.subr.mxu0 %v7789_v40  ;;  %6509 = vmatprep.subr.mxu1 %v7794_v41 }
  0xbb   :  { %v7805_v38 = vsub.f32 %v7485_v44, %v186_v14  ;;  %v7808_v39 = vsub.f32 %v7490_v45, %v187_v32  ;;  %v320_v42 = vsel %vm66_vm0, %v248_v30, 0.0  ;;  %v323_v47 = vsel %vm66_vm0, %v249_v24, 0.0  ;;  %6454 = vmatpush3.msra.mxu0 %v7789_v40  ;;  %6510 = vmatpush3.msra.mxu1 %v7794_v41 }
  0xbc   :  { %318 = vadd.xlane.f32.xlu1 %v317_v1  ;;  %321 = vadd.xlane.f32.xlu0 %v320_v42  ;;  %v141_v16 = vpop.xlane.xlu0 %140  ;;  %v144_v46 = vpop.xlane.xlu1 %143 }
  0xbd   :  { %v188_v62 = vmul.f32 0.03125, %v141_v16  ;;  %v189_v20 = vmul.f32 0.03125, %v144_v46  ;;  %v250_v44 = vmul.f32 %v7805_v38, %v7805_v38  ;;  %v251_v45 = vmul.f32 %v7808_v39, %v7808_v39  ;;  %6559 = vmatprep.subr.mxu0 %v7731_v33  ;;  %6615 = vmatprep.subr.mxu1 %v7736_v12 }
  0xbf   :  { %v7823_v0 = vsub.f32 %v7499_v48, %v188_v62  ;;  %v7826_v1 = vsub.f32 %v7504_v49, %v189_v20  ;;  %v326_v14 = vsel %vm66_vm0, %v250_v44, 0.0  ;;  %v329_v24 = vsel %vm66_vm0, %v251_v45, 0.0 }
  0xc0   :  { %324 = vadd.xlane.f32.xlu1 %v323_v47  ;;  %327 = vadd.xlane.f32.xlu0 %v326_v14  ;;  %v147_v32 = vpop.xlane.xlu0 %146  ;;  %v150_v30 = vpop.xlane.xlu1 %149 }
  0xc1   :  { %v190_v42 = vmul.f32 0.03125, %v147_v32  ;;  %v191_v16 = vmul.f32 0.03125, %v150_v30  ;;  %v252_v46 = vmul.f32 %v7823_v0, %v7823_v0  ;;  %v253_v48 = vmul.f32 %v7826_v1, %v7826_v1 }
  0xc3   :  { %v7835_v62 = vsub.f32 %v7513_v52, %v190_v42  ;;  %v7838_v49 = vsub.f32 %v7518_v53, %v191_v16  ;;  %v332_v47 = vsel %vm66_vm0, %v252_v46, 0.0  ;;  %v335_v45 = vsel %vm66_vm0, %v253_v48, 0.0 }
  0xc4   :  { %330 = vadd.xlane.f32.xlu1 %v329_v24  ;;  %333 = vadd.xlane.f32.xlu0 %v332_v47  ;;  %v153_v20 = vpop.xlane.xlu0 %152  ;;  %v156_v44 = vpop.xlane.xlu1 %155 }
  0xc5   :  { %11607 = vst [vmem:[#allocation8_spill] sm:$0xff] %v7835_v62  ;;  %11608 = vst [vmem:[#allocation9_spill] sm:$0xff] %v7838_v49  ;;  %v192_v14 = vmul.f32 0.03125, %v153_v20  ;;  %v193_v32 = vmul.f32 0.03125, %v156_v44  ;;  %v254_v30 = vmul.f32 %v7835_v62, %v7835_v62  ;;  %v255_v52 = vmul.f32 %v7838_v49, %v7838_v49 }
  0xc7   :  { %v7847_v42 = vsub.f32 %v7527_v56, %v192_v14  ;;  %v7850_v53 = vsub.f32 %v7532_v57, %v193_v32  ;;  %v338_v24 = vsel %vm66_vm0, %v254_v30, 0.0  ;;  %v341_v48 = vsel %vm66_vm0, %v255_v52, 0.0 }
  0xc8   :  { %336 = vadd.xlane.f32.xlu1 %v335_v45  ;;  %339 = vadd.xlane.f32.xlu0 %v338_v24  ;;  %v159_v16 = vpop.xlane.xlu0 %158  ;;  %v162_v46 = vpop.xlane.xlu1 %161 }
  0xc9   :  { %11609 = vst [vmem:[#allocation10_spill] sm:$0xff] %v7847_v42  ;;  %11610 = vst [vmem:[#allocation11_spill] sm:$0xff] %v7850_v53  ;;  %v194_v47 = vmul.f32 0.03125, %v159_v16  ;;  %v195_v20 = vmul.f32 0.03125, %v162_v46  ;;  %v256_v44 = vmul.f32 %v7847_v42, %v7847_v42  ;;  %v257_v56 = vmul.f32 %v7850_v53, %v7850_v53  ;;  %v7882_v46 = vld [vmem:[%s11467_s0 + $0x158] sm:$0xff] }
  0xcb   :  { %v7859_v14 = vsub.f32 %v7541_v60, %v194_v47  ;;  %v7862_v57 = vsub.f32 %v7546_v61, %v195_v20  ;;  %v344_v45 = vsel %vm66_vm0, %v256_v44, 0.0  ;;  %v347_v32 = vsel %vm66_vm0, %v257_v56, 0.0  ;;  %v7873_v60 = vld [vmem:[%s11467_s0 + $0x150] sm:$0xff]  ;;  %v7896_v44 = vld [vmem:[%s11467_s0 + $0x168] sm:$0xff] }
  0xcc   :  { %342 = vadd.xlane.f32.xlu1 %v341_v48  ;;  %345 = vadd.xlane.f32.xlu0 %v344_v45  ;;  %v1217_v16 = vsel %vm66_vm0, %v7873_v60, 0.0  ;;  %v7887_v48 = vld [vmem:[%s11467_s0 + $0x160] sm:$0xff]  ;;  %v1220_v47 = vsel %vm66_vm0, %v7882_v46, 0.0  ;;  %11613 = vst [vmem:[#allocation14_spill] sm:$0xff] %v7896_v44  ;;  %v7901_v56 = vld [vmem:[%s11467_s0 + $0x170] sm:$0xff]  ;;  %v1226_v45 = vsel %vm66_vm0, %v7896_v44, 0.0  ;;  %v1192_v53 = vpop.xlane.xlu1 %1191 }
  0xcd   :  { %11611 = vst [vmem:[#allocation12_spill] sm:$0xff] %v7859_v14  ;;  %11612 = vst [vmem:[#allocation13_spill] sm:$0xff] %v7862_v57  ;;  %v258_v30 = vmul.f32 %v7859_v14, %v7859_v14  ;;  %v259_v52 = vmul.f32 %v7862_v57, %v7862_v57  ;;  %v1223_v20 = vsel %vm66_vm0, %v7887_v48, 0.0  ;;  %v7943_v57 = vld [vmem:[%s11467_s0 + $0x1a0] sm:$0xff]  ;;  %v1189_v14 = vpop.xlane.xlu0 %1188  ;;  %v5805_v44 = vld [vmem:[%s11467_s0 + $0x1f0] sm:$0xff] }
  0xce   :  { %11614 = vst [vmem:[#allocation15_spill] sm:$0xff] %v7901_v56  ;;  %11620 = vst [vmem:[#allocation21_spill] sm:$0xff] %v7943_v57 }
  0xcf   :  { %v350_v61 = vsel %vm66_vm0, %v258_v30, 0.0  ;;  %v353_v24 = vsel %vm66_vm0, %v259_v52, 0.0  ;;  %v7910_v30 = vld [vmem:[%s11467_s0 + $0x178] sm:$0xff]  ;;  %v7915_v52 = vld [vmem:[%s11467_s0 + $0x180] sm:$0xff] }
  0xd0   :  { %348 = vadd.xlane.f32.xlu1 %v347_v32  ;;  %351 = vadd.xlane.f32.xlu0 %v350_v61  ;;  %v1229_v32 = vsel %vm66_vm0, %v7901_v56, 0.0  ;;  %11615 = vst [vmem:[#allocation16_spill] sm:$0xff] %v7910_v30  ;;  %11616 = vst [vmem:[#allocation17_spill] sm:$0xff] %v7915_v52  ;;  %v1232_v61 = vsel %vm66_vm0, %v7910_v30, 0.0  ;;  %v1284_v56 = vmul.f32 0.03125, %v1192_v53 }
  0xd4   :  { %354 = vadd.xlane.f32.xlu1 %v353_v24  ;;  %1218 = vadd.xlane.f32.xlu0 %v1217_v16  ;;  %v1235_v24 = vsel %vm66_vm0, %v7915_v52, 0.0  ;;  %v7924_v16 = vld [vmem:[%s11467_s0 + $0x188] sm:$0xff]  ;;  %v1195_v52 = vpop.xlane.xlu0 %1194 }
  0xd5   :  { %11617 = vst [vmem:[#allocation18_spill] sm:$0xff] %v7924_v16 }
  0xd8   :  { %1221 = vadd.xlane.f32.xlu1 %v1220_v47  ;;  %1224 = vadd.xlane.f32.xlu0 %v1223_v20  ;;  %v7929_v47 = vld [vmem:[%s11467_s0 + $0x190] sm:$0xff]  ;;  %v1238_v20 = vsel %vm66_vm0, %v7924_v16, 0.0  ;;  %v1201_v49 = vpop.xlane.xlu0 %1200 }
  0xd9   :  { %11618 = vst [vmem:[#allocation19_spill] sm:$0xff] %v7929_v47  ;;  %v5797_v16 = vld [vmem:[%s11467_s0 + $0x1b0] sm:$0xff] }
  0xdc   :  { %1227 = vadd.xlane.f32.xlu1 %v1226_v45  ;;  %1230 = vadd.xlane.f32.xlu0 %v1229_v32  ;;  %v1241_v45 = vsel %vm66_vm0, %v7929_v47, 0.0  ;;  %v7938_v32 = vld [vmem:[%s11467_s0 + $0x198] sm:$0xff]  ;;  %v5796_v47 = vld [vmem:[%s11467_s0 + $0x1a8] sm:$0xff] }
  0xdd   :  { %11619 = vst [vmem:[#allocation20_spill] sm:$0xff] %v7938_v32 }
  0xe0   :  { %1233 = vadd.xlane.f32.xlu1 %v1232_v61  ;;  %1236 = vadd.xlane.f32.xlu0 %v1235_v24  ;;  %v1244_v61 = vsel %vm66_vm0, %v7938_v32, 0.0  ;;  %v1247_v24 = vsel %vm66_vm0, %v7943_v57, 0.0  ;;  %v5798_v32 = vld [vmem:[%s11467_s0 + $0x1b8] sm:$0xff]  ;;  %v5799_v57 = vld [vmem:[%s11467_s0 + $0x1c0] sm:$0xff] }
  0xe1   :  { %v1256_v30 = vsel %vm66_vm0, %v5798_v32, 0.0  ;;  %v5803_v32 = vld [vmem:[%s11467_s0 + $0x1e0] sm:$0xff] }
  0xe4   :  { %1239 = vadd.xlane.f32.xlu1 %v1238_v20  ;;  %1242 = vadd.xlane.f32.xlu0 %v1241_v45  ;;  %v1250_v20 = vsel %vm66_vm0, %v5796_v47, 0.0  ;;  %v1253_v45 = vsel %vm66_vm0, %v5797_v16, 0.0  ;;  %v5800_v16 = vld [vmem:[%s11467_s0 + $0x1c8] sm:$0xff]  ;;  %v5801_v47 = vld [vmem:[%s11467_s0 + $0x1d0] sm:$0xff] }
  0xe5   :  { %v1262_v42 = vsel %vm66_vm0, %v5800_v16, 0.0 }
  0xe8   :  { %1245 = vadd.xlane.f32.xlu1 %v1244_v61  ;;  %1248 = vadd.xlane.f32.xlu0 %v1247_v24  ;;  %v1259_v61 = vsel %vm66_vm0, %v5799_v57, 0.0  ;;  %v1198_v24 = vpop.xlane.xlu1 %1197  ;;  %v5802_v57 = vld [vmem:[%s11467_s0 + $0x1d8] sm:$0xff] }
  0xec   :  { %1251 = vadd.xlane.f32.xlu1 %v1250_v20  ;;  %1254 = vadd.xlane.f32.xlu0 %v1253_v45  ;;  %v1265_v20 = vsel %vm66_vm0, %v5801_v47, 0.0  ;;  %v1283_v45 = vmul.f32 0.03125, %v1189_v14  ;;  %v5804_v14 = vld [vmem:[%s11467_s0 + $0x1e8] sm:$0xff]  ;;  %v1285_v47 = vmul.f32 0.03125, %v1195_v52  ;;  %v1204_v62 = vpop.xlane.xlu1 %1203  ;;  %v5806_v52 = vld [vmem:[%s11467_s0 + $0x1f8] sm:$0xff] }
  0xed   :  { %v1274_v53 = vsel %vm66_vm0, %v5804_v14, 0.0 }
  0xee   :  { %v7982_v16 = vsub.f32 %v7555_v3, %v1283_v45  ;;  %v1207_v3 = vpop.xlane.xlu0 %1206  ;;  %v1277_v45 = vsel %vm66_vm0, %v5805_v44, 0.0 }
  0xf0   :  { %1257 = vadd.xlane.f32.xlu1 %v1256_v30  ;;  %1260 = vadd.xlane.f32.xlu0 %v1259_v61  ;;  %v1268_v30 = vsel %vm66_vm0, %v5802_v57, 0.0  ;;  %v1271_v61 = vsel %vm66_vm0, %v5803_v32, 0.0  ;;  %v7996_v57 = vsub.f32 %v7569_v10, %v1285_v47  ;;  %v1347_v32 = vmul.f32 %v7982_v16, %v7982_v16  ;;  %v1210_v44 = vpop.xlane.xlu1 %1209 }
  0xf1   :  { %v1289_v47 = vmul.f32 0.03125, %v1207_v3 }
  0xf4   :  { %1263 = vadd.xlane.f32.xlu1 %v1262_v42  ;;  %1266 = vadd.xlane.f32.xlu0 %v1265_v20  ;;  %v7991_v42 = vsub.f32 %v7560_v4, %v1284_v56  ;;  %v1286_v20 = vmul.f32 0.03125, %v1198_v24  ;;  %v1280_v56 = vsel %vm66_vm0, %v5806_v52, 0.0  ;;  %v1288_v24 = vmul.f32 0.03125, %v1204_v62 }
  0xf6   :  { %v8004_v4 = vsub.f32 %v7574_v11, %v1286_v20  ;;  %v1348_v10 = vmul.f32 %v7991_v42, %v7991_v42  ;;  %v8016_v11 = vsub.f32 %v7588_v19, %v1288_v24  ;;  %v1290_v20 = vmul.f32 0.03125, %v1210_v44 }
  0xf8   :  { %1269 = vadd.xlane.f32.xlu1 %v1268_v30  ;;  %1272 = vadd.xlane.f32.xlu0 %v1271_v61  ;;  %v1287_v30 = vmul.f32 0.03125, %v1201_v49  ;;  %v1379_v61 = vsel %vm66_vm0, %v1347_v32, 0.0  ;;  %v1349_v49 = vmul.f32 %v7996_v57, %v7996_v57  ;;  %v1382_v62 = vsel %vm66_vm0, %v1348_v10, 0.0 }
  0xf9   :  { %v8028_v19 = vsub.f32 %v7602_v27, %v1290_v20  ;;  %v1352_v24 = vmul.f32 %v8016_v11, %v8016_v11 }
  0xfa   :  { %v8011_v14 = vsub.f32 %v7583_v18, %v1287_v30  ;;  %v1385_v52 = vsel %vm66_vm0, %v1349_v49, 0.0  ;;  %v8023_v18 = vsub.f32 %v7597_v26, %v1289_v47  ;;  %v1216_v30 = vpop.xlane.xlu1 %1215 }
  0xfb   :  { %v1292_v44 = vmul.f32 0.03125, %v1216_v30  ;;  %v1394_v49 = vsel %vm66_vm0, %v1352_v24, 0.0 }
  0xfc   :  { %1275 = vadd.xlane.f32.xlu1 %v1274_v53  ;;  %1278 = vadd.xlane.f32.xlu0 %v1277_v45  ;;  %v1213_v53 = vpop.xlane.xlu0 %1212  ;;  %v1350_v45 = vmul.f32 %v8004_v4, %v8004_v4  ;;  %v1351_v3 = vmul.f32 %v8011_v14, %v8011_v14 }
  0xfd   :  { %v1291_v32 = vmul.f32 0.03125, %v1213_v53  ;;  %v8041_v27 = vsub.f32 %v7616_v35, %v1292_v44  ;;  %v1354_v53 = vmul.f32 %v8028_v19, %v8028_v19 }
  0xfe   :  { %v1391_v10 = vsel %vm66_vm0, %v1351_v3, 0.0 }
  0xff   :  { %v8035_v26 = vsub.f32 %v7611_v34, %v1291_v32  ;;  %11622 = vst [vmem:[#allocation23_spill] sm:$0xff] %v8041_v27 }
 0x100   :  { %1281 = vadd.xlane.f32.xlu1 %v1280_v56  ;;  %1380 = vadd.xlane.f32.xlu0 %v1379_v61  ;;  %v1388_v56 = vsel %vm66_vm0, %v1350_v45, 0.0  ;;  %v1353_v61 = vmul.f32 %v8023_v18, %v8023_v18  ;;  %v1356_v45 = vmul.f32 %v8041_v27, %v8041_v27 }
 0x101   :  { %11621 = vst [vmem:[#allocation22_spill] sm:$0xff] %v8035_v26  ;;  %v1355_v34 = vmul.f32 %v8035_v26, %v8035_v26 }
 0x102   :  { %v1397_v47 = vsel %vm66_vm0, %v1353_v61, 0.0  ;;  %v1406_v35 = vsel %vm66_vm0, %v1356_v45, 0.0 }
 0x103   :  { %v1403_v20 = vsel %vm66_vm0, %v1355_v34, 0.0 }
 0x104   :  { %1383 = vadd.xlane.f32.xlu1 %v1382_v62  ;;  %1386 = vadd.xlane.f32.xlu0 %v1385_v52  ;;  %v1400_v62 = vsel %vm66_vm0, %v1354_v53, 0.0 }
 0x108   :  { %1389 = vadd.xlane.f32.xlu1 %v1388_v56  ;;  %1392 = vadd.xlane.f32.xlu0 %v1391_v10 }
 0x10c   :  { %1395 = vadd.xlane.f32.xlu1 %v1394_v49  ;;  %1398 = vadd.xlane.f32.xlu0 %v1397_v47 }
 0x110   :  { %1401 = vadd.xlane.f32.xlu1 %v1400_v62  ;;  %1404 = vadd.xlane.f32.xlu0 %v1403_v20 }
 0x114   :  { %1407 = vadd.xlane.f32.xlu1 %v1406_v35 }
 0x11d   :  { %v262_v52 = vpop.xlane.xlu0 %261 }
 0x11e   :  { %v356_v3 = vmul.f32 0.03125, %v262_v52 }
 0x120   :  { %v388_v32 = vadd.f32 1e-05, %v356_v3 }
 0x121   :  { %v265_v30 = vpop.xlane.xlu1 %264  ;;  %v268_v56 = vpop.xlane.xlu0 %267 }
 0x122   :  { %6901 = vrsqrt.f32 %v388_v32  ;;  %v357_v24 = vmul.f32 0.03125, %v265_v30  ;;  %v358_v10 = vmul.f32 0.03125, %v268_v56 }
 0x124   :  { %v389_v44 = vadd.f32 1e-05, %v357_v24  ;;  %v390_v61 = vadd.f32 1e-05, %v358_v10 }
 0x125   :  { %v271_v49 = vpop.xlane.xlu1 %270  ;;  %v274_v47 = vpop.xlane.xlu0 %273 }
 0x126   :  { %6903 = vrsqrt.f32 %v389_v44  ;;  %v359_v53 = vmul.f32 0.03125, %v271_v49  ;;  %v360_v34 = vmul.f32 0.03125, %v274_v47  ;;  %v8056_v44 = vld [vmem:[%s11468_s1] ss:$0 sm:$0xff] }
 0x127   :  { %6905 = vrsqrt.f32 %v390_v61 }
 0x128   :  { %v391_v62 = vadd.f32 1e-05, %v359_v53  ;;  %v392_v20 = vadd.f32 1e-05, %v360_v34 }
 0x129   :  { %v277_v45 = vpop.xlane.xlu1 %276  ;;  %v280_v35 = vpop.xlane.xlu0 %279 }
 0x12a   :  { %6907 = vrsqrt.f32 %v391_v62  ;;  %v361_v52 = vmul.f32 0.03125, %v277_v45  ;;  %v362_v3 = vmul.f32 0.03125, %v280_v35  ;;  %v8062_v62 = vld [vmem:[%s11469_s2] ss:$0 sm:$0xff] }
 0x12b   :  { %6909 = vrsqrt.f32 %v392_v20 }
 0x12c   :  { %v393_v27 = vadd.f32 1e-05, %v361_v52  ;;  %v394_v32 = vadd.f32 1e-05, %v362_v3 }
 0x12d   :  { %v283_v30 = vpop.xlane.xlu1 %282  ;;  %v286_v56 = vpop.xlane.xlu0 %285 }
 0x12e   :  { %6911 = vrsqrt.f32 %v393_v27  ;;  %v363_v24 = vmul.f32 0.03125, %v283_v30  ;;  %v364_v10 = vmul.f32 0.03125, %v286_v56 }
 0x12f   :  { %v6902_v26 = vpop.eup %6901  ;;  %6913 = vrsqrt.f32 %v394_v32 }
 0x130   :  { %v395_v61 = vadd.f32 1e-05, %v363_v24  ;;  %v396_v49 = vadd.f32 1e-05, %v364_v10  ;;  %v452_v47 = vmul.f32 %v6902_v26, %v7623_v50 }
 0x131   :  { %v289_v53 = vpop.xlane.xlu1 %288  ;;  %v292_v34 = vpop.xlane.xlu0 %291 }
 0x132   :  { %6915 = vrsqrt.f32 %v395_v61  ;;  %v365_v27 = vmul.f32 0.03125, %v289_v53  ;;  %v366_v20 = vmul.f32 0.03125, %v292_v34  ;;  %v490_v45 = vmul.f32 %v8056_v44, %v452_v47 }
 0x133   :  { %v6904_v35 = vpop.eup %6903  ;;  %6917 = vrsqrt.f32 %v396_v49 }
 0x134   :  { %v6906_v52 = vpop.eup %6905  ;;  %v397_v3 = vadd.f32 1e-05, %v365_v27  ;;  %v398_v32 = vadd.f32 1e-05, %v366_v20  ;;  %v8066_v30 = vadd.f32 %v8062_v62, %v490_v45  ;;  %v453_v50 = vmul.f32 %v6904_v35, %v7633_v6 }
 0x135   :  { %v295_v26 = vpop.xlane.xlu1 %294  ;;  %v298_v56 = vpop.xlane.xlu0 %297  ;;  %v454_v24 = vmul.f32 %v6906_v52, %v7626_v51 }
 0x136   :  { %11623 = vst [vmem:[#allocation24_spill] sm:$0xff] %v8066_v30  ;;  %6919 = vrsqrt.f32 %v397_v3  ;;  %v367_v10 = vmul.f32 0.03125, %v295_v26  ;;  %v368_v61 = vmul.f32 0.03125, %v298_v56  ;;  %6455 = vmatprep.mubr.msk.f32.mxu0 %vm66_vm0, %v8066_v30  ;;  %6511 = vmatprep.mubr.msk.f32.mxu1 %vm66_vm0, %v8066_v30  ;;  %v491_v49 = vmul.f32 %v8056_v44, %v453_v50 }
 0x137   :  { %v6908_v47 = vpop.eup %6907  ;;  %6921 = vrsqrt.f32 %v398_v32  ;;  %v492_v53 = vmul.f32 %v8056_v44, %v454_v24 }
 0x138   :  { %v6910_v6 = vpop.eup %6909  ;;  %v399_v34 = vadd.f32 1e-05, %v367_v10  ;;  %v400_v27 = vadd.f32 1e-05, %v368_v61  ;;  %v8077_v51 = vadd.f32 %v8062_v62, %v491_v49  ;;  %v455_v20 = vmul.f32 %v6908_v47, %v7636_v7 }
 0x139   :  { %v301_v45 = vpop.xlane.xlu1 %300  ;;  %v304_v35 = vpop.xlane.xlu0 %303  ;;  %v8081_v52 = vadd.f32 %v8062_v62, %v492_v53  ;;  %v456_v3 = vmul.f32 %v6910_v6, %v7645_v2 }
 0x13a   :  { %11624 = vst [vmem:[#allocation25_spill] sm:$0xff] %v8077_v51  ;;  %6923 = vrsqrt.f32 %v399_v34  ;;  %v369_v50 = vmul.f32 0.03125, %v301_v45  ;;  %v370_v32 = vmul.f32 0.03125, %v304_v35  ;;  %6456 = vmatmul.mubr.msk.f32.vlgmr.msra.gmra.mxu0 %vm66_vm0, %v8077_v51  ;;  %6512 = vmatmul.mubr.msk.f32.vlgmr.msra.gmra.mxu1 %vm66_vm0, %v8077_v51  ;;  %v493_v26 = vmul.f32 %v8056_v44, %v455_v20 }
 0x13b   :  { %11625 = vst [vmem:[#allocation26_spill] sm:$0xff] %v8081_v52  ;;  %v6912_v56 = vpop.eup %6911  ;;  %6925 = vrsqrt.f32 %v400_v27  ;;  %6458 = vmatprep.mubr.msk.f32.mxu0 %vm66_vm0, %v8081_v52  ;;  %6514 = vmatprep.mubr.msk.f32.mxu1 %vm66_vm0, %v8081_v52  ;;  %v494_v7 = vmul.f32 %v8056_v44, %v456_v3 }
 0x13c   :  { %v6914_v2 = vpop.eup %6913  ;;  %v401_v24 = vadd.f32 1e-05, %v369_v50  ;;  %v402_v10 = vadd.f32 1e-05, %v370_v32  ;;  %v8095_v61 = vadd.f32 %v8062_v62, %v493_v26  ;;  %v457_v49 = vmul.f32 %v6912_v56, %v7648_v5  ;;  %6560 = vmatpush3.msra.mxu0 %v7731_v33  ;;  %6616 = vmatpush3.msra.mxu1 %v7736_v12 }
 0x13d   :  { %v307_v47 = vpop.xlane.xlu1 %306  ;;  %v310_v53 = vpop.xlane.xlu0 %309  ;;  %v8101_v6 = vadd.f32 %v8062_v62, %v494_v7  ;;  %v458_v34 = vmul.f32 %v6914_v2, %v7657_v55  ;;  %6561 = vmatprep.subr.mxu0 %v7751_v36  ;;  %6617 = vmatprep.subr.mxu1 %v7756_v37 }
 0x13e   :  { %11626 = vst [vmem:[#allocation27_spill] sm:$0xff] %v8095_v61  ;;  %6927 = vrsqrt.f32 %v401_v24  ;;  %v371_v5 = vmul.f32 0.03125, %v307_v47  ;;  %v372_v20 = vmul.f32 0.03125, %v310_v53  ;;  %6459 = vmatmul.mubr.msk.f32.gmra.mxu0 %vm66_vm0, %v8095_v61  ;;  %6515 = vmatmul.mubr.msk.f32.gmra.mxu1 %vm66_vm0, %v8095_v61  ;;  %v495_v45 = vmul.f32 %v8056_v44, %v457_v49  ;;  %v7183_v61 = vld [vmem:[%s11467_s0 + $0x230] sm:$0xff] }
 0x13f   :  { %11627 = vst [vmem:[#allocation28_spill] sm:$0xff] %v8101_v6  ;;  %v6916_v35 = vpop.eup %6915  ;;  %6929 = vrsqrt.f32 %v402_v10  ;;  %6461 = vmatprep.mubr.msk.f32.mxu0 %vm66_vm0, %v8101_v6  ;;  %6517 = vmatprep.mubr.msk.f32.mxu1 %vm66_vm0, %v8101_v6  ;;  %v496_v55 = vmul.f32 %v8056_v44, %v458_v34 }
 0x140   :  { %v6918_v3 = vpop.eup %6917  ;;  %v403_v50 = vadd.f32 1e-05, %v371_v5  ;;  %v404_v32 = vadd.f32 1e-05, %v372_v20  ;;  %v8119_v26 = vadd.f32 %v8062_v62, %v495_v45  ;;  %v459_v56 = vmul.f32 %v6916_v35, %v7660_v9  ;;  %6562 = vmatpush3.msra.mxu0 %v7751_v36  ;;  %6618 = vmatpush3.msra.mxu1 %v7756_v37 }
 0x141   :  { %v313_v7 = vpop.xlane.xlu1 %312  ;;  %v316_v2 = vpop.xlane.xlu0 %315  ;;  %v8125_v24 = vadd.f32 %v8062_v62, %v496_v55  ;;  %v460_v10 = vmul.f32 %v6918_v3, %v7669_v15  ;;  %6563 = vmatprep.subr.mxu0 %v7769_v54  ;;  %6619 = vmatprep.subr.mxu1 %v7774_v28 }
 0x142   :  { %11628 = vst [vmem:[#allocation29_spill] sm:$0xff] %v8119_v26  ;;  %6931 = vrsqrt.f32 %v403_v50  ;;  %v373_v9 = vmul.f32 0.03125, %v313_v7  ;;  %v374_v47 = vmul.f32 0.03125, %v316_v2  ;;  %6462 = vmatmul.mubr.msk.f32.gmra.mxu0 %vm66_vm0, %v8119_v26  ;;  %6518 = vmatmul.mubr.msk.f32.gmra.mxu1 %vm66_vm0, %v8119_v26  ;;  %v497_v36 = vmul.f32 %v8056_v44, %v459_v56  ;;  %v9273_v26 = vld [vmem:[%s11469_s2] ss:$0 sm:$0xff] }
 0x143   :  { %11629 = vst [vmem:[#allocation30_spill] sm:$0xff] %v8125_v24  ;;  %v6920_v37 = vpop.eup %6919  ;;  %6933 = vrsqrt.f32 %v404_v32  ;;  %6464 = vmatprep.mubr.msk.f32.mxu0 %vm66_vm0, %v8125_v24  ;;  %6520 = vmatprep.mubr.msk.f32.mxu1 %vm66_vm0, %v8125_v24  ;;  %v498_v15 = vmul.f32 %v8056_v44, %v460_v10 }
 0x144   :  { %v6922_v53 = vpop.eup %6921  ;;  %v405_v34 = vadd.f32 1e-05, %v373_v9  ;;  %v406_v5 = vadd.f32 1e-05, %v374_v47  ;;  %v8143_v20 = vadd.f32 %v8062_v62, %v497_v36  ;;  %v461_v45 = vmul.f32 %v6920_v37, %v7672_v13  ;;  %6564 = vmatpush3.msra.mxu0 %v7769_v54  ;;  %6620 = vmatpush3.msra.mxu1 %v7774_v28 }
 0x145   :  { %v319_v35 = vpop.xlane.xlu1 %318  ;;  %v322_v55 = vpop.xlane.xlu0 %321  ;;  %v8149_v3 = vadd.f32 %v8062_v62, %v498_v15  ;;  %v462_v50 = vmul.f32 %v6922_v53, %v7681_v43  ;;  %6565 = vmatprep.subr.mxu0 %v7789_v40  ;;  %6621 = vmatprep.subr.mxu1 %v7794_v41 }
 0x146   :  { %11630 = vst [vmem:[#allocation31_spill] sm:$0xff] %v8143_v20  ;;  %6935 = vrsqrt.f32 %v405_v34  ;;  %v375_v13 = vmul.f32 0.03125, %v319_v35  ;;  %v376_v56 = vmul.f32 0.03125, %v322_v55  ;;  %6465 = vmatmul.mubr.msk.f32.gmra.mxu0 %vm66_vm0, %v8143_v20  ;;  %6521 = vmatmul.mubr.msk.f32.gmra.mxu1 %vm66_vm0, %v8143_v20  ;;  %v499_v54 = vmul.f32 %v8056_v44, %v461_v45 }
 0x147   :  { %11631 = vst [vmem:[#allocation32_spill] sm:$0xff] %v8149_v3  ;;  %v6924_v28 = vpop.eup %6923  ;;  %6937 = vrsqrt.f32 %v406_v5  ;;  %6467 = vmatprep.mubr.msk.f32.mxu0 %vm66_vm0, %v8149_v3  ;;  %6523 = vmatprep.mubr.msk.f32.mxu1 %vm66_vm0, %v8149_v3  ;;  %v500_v43 = vmul.f32 %v8056_v44, %v462_v50 }
 0x148   :  { %v6926_v7 = vpop.eup %6925  ;;  %v407_v2 = vadd.f32 1e-05, %v375_v13  ;;  %v408_v10 = vadd.f32 1e-05, %v376_v56  ;;  %v8167_v9 = vadd.f32 %v8062_v62, %v499_v54  ;;  %v463_v47 = vmul.f32 %v6924_v28, %v7684_v17  ;;  %6566 = vmatpush3.msra.mxu0 %v7789_v40  ;;  %6622 = vmatpush3.msra.mxu1 %v7794_v41 }
 0x149   :  { %v325_v36 = vpop.xlane.xlu1 %324  ;;  %v328_v37 = vpop.xlane.xlu0 %327  ;;  %v8173_v15 = vadd.f32 %v8062_v62, %v500_v43  ;;  %v464_v53 = vmul.f32 %v6926_v7, %v7693_v63  ;;  %6671 = vmatprep.subr.mxu0 %v7731_v33  ;;  %6727 = vmatprep.subr.mxu1 %v7736_v12 }
 0x14a   :  { %11632 = vst [vmem:[#allocation33_spill] sm:$0xff] %v8167_v9  ;;  %6939 = vrsqrt.f32 %v407_v2  ;;  %v377_v17 = vmul.f32 0.03125, %v325_v36  ;;  %v378_v5 = vmul.f32 0.03125, %v328_v37  ;;  %6468 = vmatmul.mubr.msk.f32.gmra.mxu0 %vm66_vm0, %v8167_v9  ;;  %6524 = vmatmul.mubr.msk.f32.gmra.mxu1 %vm66_vm0, %v8167_v9  ;;  %v501_v40 = vmul.f32 %v8056_v44, %v463_v47 }
 0x14b   :  { %11633 = vst [vmem:[#allocation34_spill] sm:$0xff] %v8173_v15  ;;  %v6928_v41 = vpop.eup %6927  ;;  %6941 = vrsqrt.f32 %v408_v10  ;;  %6470 = vmatprep.mubr.msk.f32.mxu0 %vm66_vm0, %v8173_v15  ;;  %6526 = vmatprep.mubr.msk.f32.mxu1 %vm66_vm0, %v8173_v15  ;;  %v502_v63 = vmul.f32 %v8056_v44, %v464_v53 }
 0x14c   :  { %v6930_v33 = vpop.eup %6929  ;;  %v409_v12 = vadd.f32 1e-05, %v377_v17  ;;  %v410_v45 = vadd.f32 1e-05, %v378_v5  ;;  %v8191_v35 = vadd.f32 %v8062_v62, %v501_v40  ;;  %v465_v55 = vmul.f32 %v6928_v41, %v7696_v21 }
 0x14d   :  { %v331_v50 = vpop.xlane.xlu1 %330  ;;  %v334_v13 = vpop.xlane.xlu0 %333  ;;  %v8195_v56 = vadd.f32 %v8062_v62, %v502_v63  ;;  %v466_v54 = vmul.f32 %v6930_v33, %v7705_v31 }
 0x14e   :  { %11634 = vst [vmem:[#allocation35_spill] sm:$0xff] %v8191_v35  ;;  %6943 = vrsqrt.f32 %v409_v12  ;;  %v379_v43 = vmul.f32 0.03125, %v331_v50  ;;  %v380_v7 = vmul.f32 0.03125, %v334_v13  ;;  %6471 = vmatmul.mubr.msk.f32.gmra.mxu0 %vm66_vm0, %v8191_v35  ;;  %6527 = vmatmul.mubr.msk.f32.gmra.mxu1 %vm66_vm0, %v8191_v35  ;;  %v503_v21 = vmul.f32 %v8056_v44, %v465_v55 }
 0x14f   :  { %11635 = vst [vmem:[#allocation36_spill] sm:$0xff] %v8195_v56  ;;  %v6932_v2 = vpop.eup %6931  ;;  %6945 = vrsqrt.f32 %v410_v45  ;;  %6473 = vmatprep.mubr.msk.f32.mxu0 %vm66_vm0, %v8195_v56  ;;  %6529 = vmatprep.mubr.msk.f32.mxu1 %vm66_vm0, %v8195_v56  ;;  %v504_v31 = vmul.f32 %v8056_v44, %v466_v54 }
 0x150   :  { %v6934_v10 = vpop.eup %6933  ;;  %v411_v47 = vadd.f32 1e-05, %v379_v43  ;;  %v412_v36 = vadd.f32 1e-05, %v380_v7  ;;  %v8211_v37 = vadd.f32 %v8062_v62, %v503_v21  ;;  %v467_v53 = vmul.f32 %v6932_v2, %v7708_v25 }
 0x151   :  { %v337_v17 = vpop.xlane.xlu1 %336  ;;  %v340_v5 = vpop.xlane.xlu0 %339  ;;  %v8215_v40 = vadd.f32 %v8062_v62, %v504_v31  ;;  %v468_v41 = vmul.f32 %v6934_v10, %v7717_v8 }
 0x152   :  { %11636 = vst [vmem:[#allocation37_spill] sm:$0xff] %v8211_v37  ;;  %6947 = vrsqrt.f32 %v411_v47  ;;  %v381_v33 = vmul.f32 0.03125, %v337_v17  ;;  %v382_v12 = vmul.f32 0.03125, %v340_v5  ;;  %6474 = vmatmul.mubr.msk.f32.gmra.mxu0 %vm66_vm0, %v8211_v37  ;;  %6530 = vmatmul.mubr.msk.f32.gmra.mxu1 %vm66_vm0, %v8211_v37  ;;  %v505_v25 = vmul.f32 %v8056_v44, %v467_v53 }
 0x153   :  { %11637 = vst [vmem:[#allocation38_spill] sm:$0xff] %v8215_v40  ;;  %v6936_v45 = vpop.eup %6935  ;;  %6949 = vrsqrt.f32 %v412_v36  ;;  %6476 = vmatprep.mubr.msk.f32.mxu0 %vm66_vm0, %v8215_v40  ;;  %6532 = vmatprep.mubr.msk.f32.mxu1 %vm66_vm0, %v8215_v40  ;;  %v506_v8 = vmul.f32 %v8056_v44, %v468_v41  ;;  %v5878_v40 = vld [vmem:[%s11467_s0 + $0x238] sm:$0xff] }
 0x154   :  { %v6938_v55 = vpop.eup %6937  ;;  %v413_v50 = vadd.f32 1e-05, %v381_v33  ;;  %v414_v13 = vadd.f32 1e-05, %v382_v12  ;;  %v8231_v54 = vadd.f32 %v8062_v62, %v505_v25  ;;  %v469_v43 = vmul.f32 %v6936_v45, %v7720_v29 }
 0x155   :  { %v343_v7 = vpop.xlane.xlu1 %342  ;;  %v346_v21 = vpop.xlane.xlu0 %345  ;;  %v8235_v2 = vadd.f32 %v8062_v62, %v506_v8  ;;  %v470_v31 = vmul.f32 %v6938_v55, %v7739_v22 }
 0x156   :  { %11638 = vst [vmem:[#allocation39_spill] sm:$0xff] %v8231_v54  ;;  %6951 = vrsqrt.f32 %v413_v50  ;;  %v383_v47 = vmul.f32 0.03125, %v343_v7  ;;  %v384_v36 = vmul.f32 0.03125, %v346_v21  ;;  %6477 = vmatmul.mubr.msk.f32.gmra.mxu0 %vm66_vm0, %v8231_v54  ;;  %6533 = vmatmul.mubr.msk.f32.gmra.mxu1 %vm66_vm0, %v8231_v54  ;;  %v507_v29 = vmul.f32 %v8056_v44, %v469_v43 }
 0x157   :  { %11639 = vst [vmem:[#allocation40_spill] sm:$0xff] %v8235_v2  ;;  %v6940_v53 = vpop.eup %6939  ;;  %6953 = vrsqrt.f32 %v414_v13  ;;  %6479 = vmatprep.mubr.msk.f32.mxu0 %vm66_vm0, %v8235_v2  ;;  %6535 = vmatprep.mubr.msk.f32.mxu1 %vm66_vm0, %v8235_v2  ;;  %v508_v22 = vmul.f32 %v8056_v44, %v470_v31  ;;  %v5875_v2 = vld [vmem:[%s11467_s0 + $0x220] sm:$0xff] }
 0x158   :  { %v6942_v17 = vpop.eup %6941  ;;  %v415_v5 = vadd.f32 1e-05, %v383_v47  ;;  %v416_v41 = vadd.f32 1e-05, %v384_v36  ;;  %v8251_v33 = vadd.f32 %v8062_v62, %v507_v29  ;;  %v471_v12 = vmul.f32 %v6940_v53, %v7742_v23 }
 0x159   :  { %v349_v25 = vpop.xlane.xlu1 %348  ;;  %v352_v45 = vpop.xlane.xlu0 %351  ;;  %v8255_v8 = vadd.f32 %v8062_v62, %v508_v22  ;;  %v472_v55 = vmul.f32 %v6942_v17, %v7777_v58 }
 0x15a   :  { %11640 = vst [vmem:[#allocation41_spill] sm:$0xff] %v8251_v33  ;;  %6955 = vrsqrt.f32 %v415_v5  ;;  %v385_v13 = vmul.f32 0.03125, %v349_v25  ;;  %v386_v43 = vmul.f32 0.03125, %v352_v45  ;;  %6480 = vmatmul.mubr.msk.f32.gmra.mxu0 %vm66_vm0, %v8251_v33  ;;  %6536 = vmatmul.mubr.msk.f32.gmra.mxu1 %vm66_vm0, %v8251_v33  ;;  %v509_v23 = vmul.f32 %v8056_v44, %v471_v12  ;;  %v5877_v33 = vld [vmem:[%s11467_s0 + $0x230] sm:$0xff] }
 0x15b   :  { %11641 = vst [vmem:[#allocation42_spill] sm:$0xff] %v8255_v8  ;;  %v6944_v7 = vpop.eup %6943  ;;  %6957 = vrsqrt.f32 %v416_v41  ;;  %6482 = vmatprep.mubr.msk.f32.mxu0 %vm66_vm0, %v8255_v8  ;;  %6538 = vmatprep.mubr.msk.f32.mxu1 %vm66_vm0, %v8255_v8  ;;  %v510_v58 = vmul.f32 %v8056_v44, %v472_v55 }
 0x15c   :  { %v6946_v31 = vpop.eup %6945  ;;  %v417_v47 = vadd.f32 1e-05, %v385_v13  ;;  %v418_v36 = vadd.f32 1e-05, %v386_v43  ;;  %v8273_v29 = vadd.f32 %v8062_v62, %v509_v23  ;;  %v473_v53 = vmul.f32 %v6944_v7, %v7780_v59 }
 0x15d   :  { %v355_v22 = vpop.xlane.xlu1 %354  ;;  %v1219_v17 = vpop.xlane.xlu0 %1218  ;;  %v8277_v5 = vadd.f32 %v8062_v62, %v510_v58  ;;  %v474_v41 = vmul.f32 %v6946_v31, %v7805_v38 }
 0x15e   :  { %11642 = vst [vmem:[#allocation43_spill] sm:$0xff] %v8273_v29  ;;  %6959 = vrsqrt.f32 %v417_v47  ;;  %v387_v12 = vmul.f32 0.03125, %v355_v22  ;;  %v1293_v25 = vmul.f32 0.03125, %v1219_v17  ;;  %6483 = vmatmul.mubr.msk.f32.gmra.mxu0 %vm66_vm0, %v8273_v29  ;;  %6539 = vmatmul.mubr.msk.f32.gmra.mxu1 %vm66_vm0, %v8273_v29  ;;  %v511_v45 = vmul.f32 %v8056_v44, %v473_v53 }
 0x15f   :  { %11643 = vst [vmem:[#allocation44_spill] sm:$0xff] %v8277_v5  ;;  %v6948_v55 = vpop.eup %6947  ;;  %6961 = vrsqrt.f32 %v418_v36  ;;  %6485 = vmatprep.mubr.msk.f32.mxu0 %vm66_vm0, %v8277_v5  ;;  %6541 = vmatprep.mubr.msk.f32.mxu1 %vm66_vm0, %v8277_v5  ;;  %v512_v59 = vmul.f32 %v8056_v44, %v474_v41 }
 0x160   :  { %v6950_v38 = vpop.eup %6949  ;;  %v419_v13 = vadd.f32 1e-05, %v387_v12  ;;  %v8291_v43 = vsub.f32 %v7873_v60, %v1293_v25  ;;  %v8294_v23 = vadd.f32 %v8062_v62, %v511_v45  ;;  %v475_v7 = vmul.f32 %v6948_v55, %v7808_v39 }
 0x161   :  { %v1222_v58 = vpop.xlane.xlu1 %1221  ;;  %v1225_v31 = vpop.xlane.xlu0 %1224  ;;  %v8298_v47 = vadd.f32 %v8062_v62, %v512_v59  ;;  %v476_v36 = vmul.f32 %v6950_v38, %v7823_v0 }
 0x162   :  { %11644 = vst [vmem:[#allocation45_spill] sm:$0xff] %v8294_v23  ;;  %6963 = vrsqrt.f32 %v419_v13  ;;  %v1294_v22 = vmul.f32 0.03125, %v1222_v58  ;;  %v1295_v17 = vmul.f32 0.03125, %v1225_v31  ;;  %6486 = vmatmul.mubr.msk.f32.gmra.mxu0 %vm66_vm0, %v8294_v23  ;;  %6542 = vmatmul.mubr.msk.f32.gmra.mxu1 %vm66_vm0, %v8294_v23  ;;  %v1357_v39 = vmul.f32 %v8291_v43, %v8291_v43  ;;  %v8564_v23 = vld [vmem:[%s11467_s0 + $0x210] sm:$0xff] }
 0x163   :  { %11645 = vst [vmem:[#allocation46_spill] sm:$0xff] %v8298_v47  ;;  %v6952_v60 = vpop.eup %6951  ;;  %6488 = vmatprep.mubr.msk.f32.mxu0 %vm66_vm0, %v8298_v47  ;;  %6544 = vmatprep.mubr.msk.f32.mxu1 %vm66_vm0, %v8298_v47  ;;  %v513_v0 = vmul.f32 %v8056_v44, %v475_v7  ;;  %v514_v41 = vmul.f32 %v8056_v44, %v476_v36  ;;  %v11648_v36 = vld [vmem:[#allocation8_spill] sm:$0xff] }
 0x164   :  { %v6954_v25 = vpop.eup %6953  ;;  %v8318_v45 = vsub.f32 %v7882_v46, %v1294_v22  ;;  %v8321_v55 = vsub.f32 %v7887_v48, %v1295_v17  ;;  %v1409_v59 = vsel %vm66_vm0, %v1357_v39, 0.0  ;;  %v477_v38 = vmul.f32 %v6952_v60, %v7826_v1 }
 0x165   :  { %v1228_v13 = vpop.xlane.xlu1 %1227  ;;  %1410 = vadd.xlane.f32.xlu0 %v1409_v59  ;;  %v1231_v58 = vpop.xlane.xlu0 %1230  ;;  %v8326_v7 = vadd.f32 %v8062_v62, %v513_v0  ;;  %v8329_v31 = vadd.f32 %v8062_v62, %v514_v41  ;;  %v478_v12 = vmul.f32 %v6954_v25, %v11648_v36  ;;  %v11649_v25 = vld [vmem:[#allocation14_spill] sm:$0xff] }
 0x166   :  { %v1296_v46 = vmul.f32 0.03125, %v1228_v13  ;;  %v1297_v22 = vmul.f32 0.03125, %v1231_v58  ;;  %v1358_v48 = vmul.f32 %v8318_v45, %v8318_v45  ;;  %v1359_v17 = vmul.f32 %v8321_v55, %v8321_v55  ;;  %v11650_v13 = vld [vmem:[#allocation15_spill] sm:$0xff] }
 0x167   :  { %11646 = vst [vmem:[#allocation47_spill] sm:$0xff] %v8326_v7  ;;  %11647 = vst [vmem:[#allocation48_spill] sm:$0xff] %v8329_v31  ;;  %v6956_v1 = vpop.eup %6955  ;;  %6489 = vmatmul.mubr.msk.f32.gmra.mxu0 %vm66_vm0, %v8326_v7  ;;  %6545 = vmatmul.mubr.msk.f32.gmra.mxu1 %vm66_vm0, %v8326_v7  ;;  %v515_v39 = vmul.f32 %v8056_v44, %v477_v38  ;;  %v516_v60 = vmul.f32 %v8056_v44, %v478_v12 }
 0x168   :  { %v6958_v41 = vpop.eup %6957  ;;  %v8345_v59 = vsub.f32 %v11649_v25, %v1296_v46  ;;  %v8348_v58 = vsub.f32 %v11650_v13, %v1297_v22  ;;  %6491 = vmatprep.mubr.msk.f32.mxu0 %vm66_vm0, %v8329_v31  ;;  %6547 = vmatprep.mubr.msk.f32.mxu1 %vm66_vm0, %v8329_v31  ;;  %v1412_v38 = vsel %vm66_vm0, %v1358_v48, 0.0  ;;  %v1415_v12 = vsel %vm66_vm0, %v1359_v17, 0.0  ;;  %v11653_v25 = vld [vmem:[#allocation9_spill] sm:$0xff] }
 0x169   :  { %1413 = vadd.xlane.f32.xlu1 %v1412_v38  ;;  %v1234_v36 = vpop.xlane.xlu1 %1233  ;;  %1416 = vadd.xlane.f32.xlu0 %v1415_v12  ;;  %v1237_v0 = vpop.xlane.xlu0 %1236  ;;  %v8357_v46 = vadd.f32 %v8062_v62, %v515_v39  ;;  %v8360_v22 = vadd.f32 %v8062_v62, %v516_v60  ;;  %v479_v13 = vmul.f32 %v6956_v1, %v11653_v25  ;;  %v11654_v60 = vld [vmem:[#allocation10_spill] sm:$0xff]  ;;  %v11655_v12 = vld [vmem:[#allocation16_spill] sm:$0xff]  ;;  %v11656_v25 = vld [vmem:[#allocation17_spill] sm:$0xff] }
 0x16a   :  { %v1298_v53 = vmul.f32 0.03125, %v1234_v36  ;;  %v1299_v21 = vmul.f32 0.03125, %v1237_v0  ;;  %v1360_v50 = vmul.f32 %v8345_v59, %v8345_v59  ;;  %v1361_v48 = vmul.f32 %v8348_v58, %v8348_v58 }
 0x16b   :  { %11651 = vst [vmem:[#allocation8_spill] sm:$0xff] %v8357_v46  ;;  %11652 = vst [vmem:[#allocation14_spill] sm:$0xff] %v8360_v22  ;;  %v6960_v17 = vpop.eup %6959  ;;  %6492 = vmatmul.mubr.msk.f32.gmra.mxu0 %vm66_vm0, %v8357_v46  ;;  %6548 = vmatmul.mubr.msk.f32.gmra.mxu1 %vm66_vm0, %v8357_v46  ;;  %v517_v39 = vmul.f32 %v8056_v44, %v479_v13  ;;  %v480_v38 = vmul.f32 %v6958_v41, %v11654_v60 }
 0x16c   :  { %v6962_v0 = vpop.eup %6961  ;;  %v8376_v36 = vsub.f32 %v11655_v12, %v1298_v53  ;;  %v8379_v10 = vsub.f32 %v11656_v25, %v1299_v21  ;;  %6494 = vmatprep.mubr.msk.f32.mxu0 %vm66_vm0, %v8360_v22  ;;  %6550 = vmatprep.mubr.msk.f32.mxu1 %vm66_vm0, %v8360_v22  ;;  %v1418_v13 = vsel %vm66_vm0, %v1360_v50, 0.0  ;;  %v1421_v41 = vsel %vm66_vm0, %v1361_v48, 0.0  ;;  %v11658_v12 = vld [vmem:[#allocation11_spill] sm:$0xff] }
 0x16d   :  { %1419 = vadd.xlane.f32.xlu1 %v1418_v13  ;;  %v1240_v60 = vpop.xlane.xlu1 %1239  ;;  %1422 = vadd.xlane.f32.xlu0 %v1421_v41  ;;  %v1243_v1 = vpop.xlane.xlu0 %1242  ;;  %v8388_v53 = vadd.f32 %v8062_v62, %v517_v39  ;;  %v518_v21 = vmul.f32 %v8056_v44, %v480_v38  ;;  %v481_v25 = vmul.f32 %v6960_v17, %v11658_v12  ;;  %v11660_v38 = vld [vmem:[#allocation12_spill] sm:$0xff]  ;;  %v11661_v13 = vld [vmem:[#allocation18_spill] sm:$0xff] }
 0x16e   :  { %v1300_v63 = vmul.f32 0.03125, %v1240_v60  ;;  %v1301_v28 = vmul.f32 0.03125, %v1243_v1  ;;  %v1362_v34 = vmul.f32 %v8376_v36, %v8376_v36  ;;  %v1363_v50 = vmul.f32 %v8379_v10, %v8379_v10  ;;  %v11662_v60 = vld [vmem:[#allocation19_spill] sm:$0xff] }
 0x16f   :  { %11657 = vst [vmem:[#allocation15_spill] sm:$0xff] %v8388_v53  ;;  %v6964_v48 = vpop.eup %6963  ;;  %6495 = vmatmul.mubr.msk.f32.gmra.mxu0 %vm66_vm0, %v8388_v53  ;;  %6551 = vmatmul.mubr.msk.f32.gmra.mxu1 %vm66_vm0, %v8388_v53  ;;  %v8401_v39 = vadd.f32 %v8062_v62, %v518_v21  ;;  %v519_v17 = vmul.f32 %v8056_v44, %v481_v25 }
 0x170   :  { %v482_v1 = vmul.f32 %v6962_v0, %v11660_v38  ;;  %v8406_v41 = vsub.f32 %v11661_v13, %v1300_v63  ;;  %v8409_v12 = vsub.f32 %v11662_v60, %v1301_v28  ;;  %v1424_v32 = vsel %vm66_vm0, %v1362_v34, 0.0  ;;  %v11664_v38 = vld [vmem:[#allocation13_spill] sm:$0xff] }
 0x171   :  { %11659 = vst [vmem:[#allocation9_spill] sm:$0xff] %v8401_v39  ;;  %v1427_v49 = vsel %vm66_vm0, %v1363_v50, 0.0  ;;  %6497 = vmatprep.mubr.msk.f32.mxu0 %vm66_vm0, %v8401_v39  ;;  %6553 = vmatprep.mubr.msk.f32.mxu1 %vm66_vm0, %v8401_v39  ;;  %v1246_v21 = vpop.xlane.xlu1 %1245  ;;  %v1249_v25 = vpop.xlane.xlu0 %1248  ;;  %v8418_v0 = vadd.f32 %v8062_v62, %v519_v17  ;;  %v483_v28 = vmul.f32 %v6964_v48, %v11664_v38  ;;  %v11666_v48 = vld [vmem:[#allocation20_spill] sm:$0xff] }
 0x172   :  { %v520_v63 = vmul.f32 %v8056_v44, %v482_v1  ;;  %1425 = vadd.xlane.f32.xlu1 %v1424_v32  ;;  %v1302_v13 = vmul.f32 0.03125, %v1246_v21  ;;  %1428 = vadd.xlane.f32.xlu0 %v1427_v49  ;;  %v1303_v34 = vmul.f32 0.03125, %v1249_v25  ;;  %v1364_v50 = vmul.f32 %v8406_v41, %v8406_v41  ;;  %v11667_v21 = vld [vmem:[#allocation21_spill] sm:$0xff] }
 0x173   :  { %11663 = vst [vmem:[#allocation10_spill] sm:$0xff] %v8418_v0  ;;  %v1365_v60 = vmul.f32 %v8409_v12, %v8409_v12  ;;  %6498 = vmatmul.mubr.msk.f32.gmra.mxu0 %vm66_vm0, %v8418_v0  ;;  %6554 = vmatmul.mubr.msk.f32.gmra.mxu1 %vm66_vm0, %v8418_v0  ;;  %v521_v32 = vmul.f32 %v8056_v44, %v483_v28 }
 0x174   :  { %v8431_v17 = vadd.f32 %v8062_v62, %v520_v63  ;;  %v8437_v1 = vsub.f32 %v11666_v48, %v1302_v13  ;;  %v8440_v25 = vsub.f32 %v11667_v21, %v1303_v34  ;;  %v1430_v38 = vsel %vm66_vm0, %v1364_v50, 0.0  ;;  %v7158_v21 = vld [vmem:[%s11467_s0 + $0x1b0] sm:$0xff] }
 0x175   :  { %v1433_v27 = vsel %vm66_vm0, %v1365_v60, 0.0  ;;  %v1252_v44 = vpop.xlane.xlu1 %1251  ;;  %v1255_v63 = vpop.xlane.xlu0 %1254  ;;  %v8449_v28 = vadd.f32 %v8062_v62, %v521_v32 }
 0x176   :  { %11665 = vst [vmem:[#allocation16_spill] sm:$0xff] %v8431_v17  ;;  %6500 = vmatprep.mubr.msk.f32.mxu0 %vm66_vm0, %v8431_v17  ;;  %6556 = vmatprep.mubr.msk.f32.mxu1 %vm66_vm0, %v8431_v17  ;;  %v1304_v34 = vmul.f32 0.03125, %v1252_v44  ;;  %v1305_v50 = vmul.f32 0.03125, %v1255_v63  ;;  %v1366_v60 = vmul.f32 %v8437_v1, %v8437_v1  ;;  %v1367_v48 = vmul.f32 %v8440_v25, %v8440_v25 }
 0x177   :  { %11668 = vst [vmem:[#allocation17_spill] sm:$0xff] %v8449_v28  ;;  %1431 = vadd.xlane.f32.xlu1 %v1430_v38  ;;  %1434 = vadd.xlane.f32.xlu0 %v1433_v27  ;;  %v7157_v27 = vld [vmem:[%s11467_s0 + $0x1a8] sm:$0xff] }
 0x178   :  { %6501 = vmatmul.mubr.msk.f32.gmra.mxu0 %vm66_vm0, %v8449_v28  ;;  %6557 = vmatmul.mubr.msk.f32.gmra.mxu1 %vm66_vm0, %v8449_v28  ;;  %v8466_v32 = vsub.f32 %v7157_v27, %v1304_v34  ;;  %v8471_v38 = vsub.f32 %v7158_v21, %v1305_v50  ;;  %v1436_v44 = vsel %vm66_vm0, %v1366_v60, 0.0  ;;  %v1439_v63 = vsel %vm66_vm0, %v1367_v48, 0.0  ;;  %v7159_v50 = vld [vmem:[%s11467_s0 + $0x1b8] sm:$0xff]  ;;  %v7160_v60 = vld [vmem:[%s11467_s0 + $0x1c0] sm:$0xff] }
 0x179   :  { %v1258_v49 = vpop.xlane.xlu1 %1257  ;;  %v1261_v13 = vpop.xlane.xlu0 %1260 }
 0x17a   :  { %v1306_v62 = vmul.f32 0.03125, %v1258_v49  ;;  %v1307_v17 = vmul.f32 0.03125, %v1261_v13  ;;  %v1368_v34 = vmul.f32 %v8466_v32, %v8466_v32  ;;  %v1369_v27 = vmul.f32 %v8471_v38, %v8471_v38 }
 0x17b   :  { %1437 = vadd.xlane.f32.xlu1 %v1436_v44  ;;  %1440 = vadd.xlane.f32.xlu0 %v1439_v63 }
 0x17c   :  { %v8482_v21 = vsub.f32 %v7159_v50, %v1306_v62  ;;  %v8487_v48 = vsub.f32 %v7160_v60, %v1307_v17  ;;  %v1442_v49 = vsel %vm66_vm0, %v1368_v34, 0.0  ;;  %v1445_v13 = vsel %vm66_vm0, %v1369_v27, 0.0  ;;  %v7161_v17 = vld [vmem:[%s11467_s0 + $0x1c8] sm:$0xff]  ;;  %v7162_v34 = vld [vmem:[%s11467_s0 + $0x1d0] sm:$0xff] }
 0x17d   :  { %v1264_v44 = vpop.xlane.xlu1 %1263  ;;  %v1267_v63 = vpop.xlane.xlu0 %1266 }
 0x17e   :  { %v1308_v28 = vmul.f32 0.03125, %v1264_v44  ;;  %v1309_v39 = vmul.f32 0.03125, %v1267_v63  ;;  %v1370_v62 = vmul.f32 %v8482_v21, %v8482_v21  ;;  %v1371_v50 = vmul.f32 %v8487_v48, %v8487_v48 }
 0x17f   :  { %1443 = vadd.xlane.f32.xlu1 %v1442_v49  ;;  %1446 = vadd.xlane.f32.xlu0 %v1445_v13 }
 0x180   :  { %v8498_v60 = vsub.f32 %v7161_v17, %v1308_v28  ;;  %v8503_v27 = vsub.f32 %v7162_v34, %v1309_v39  ;;  %v1448_v49 = vsel %vm66_vm0, %v1370_v62, 0.0  ;;  %v1451_v13 = vsel %vm66_vm0, %v1371_v50, 0.0  ;;  %v7163_v39 = vld [vmem:[%s11467_s0 + $0x1d8] sm:$0xff]  ;;  %v7164_v62 = vld [vmem:[%s11467_s0 + $0x1e0] sm:$0xff] }
 0x181   :  { %v1270_v44 = vpop.xlane.xlu1 %1269  ;;  %v1273_v63 = vpop.xlane.xlu0 %1272 }
 0x182   :  { %v1310_v0 = vmul.f32 0.03125, %v1270_v44  ;;  %v1311_v22 = vmul.f32 0.03125, %v1273_v63  ;;  %v1372_v28 = vmul.f32 %v8498_v60, %v8498_v60  ;;  %v1373_v17 = vmul.f32 %v8503_v27, %v8503_v27 }
 0x183   :  { %1449 = vadd.xlane.f32.xlu1 %v1448_v49  ;;  %1452 = vadd.xlane.f32.xlu0 %v1451_v13 }
 0x184   :  { %v8514_v34 = vsub.f32 %v7163_v39, %v1310_v0  ;;  %v8519_v50 = vsub.f32 %v7164_v62, %v1311_v22  ;;  %v1454_v49 = vsel %vm66_vm0, %v1372_v28, 0.0  ;;  %v1457_v13 = vsel %vm66_vm0, %v1373_v17, 0.0  ;;  %v7165_v22 = vld [vmem:[%s11467_s0 + $0x1e8] sm:$0xff]  ;;  %v7166_v28 = vld [vmem:[%s11467_s0 + $0x1f0] sm:$0xff] }
 0x185   :  { %v1276_v44 = vpop.xlane.xlu1 %1275  ;;  %v1279_v63 = vpop.xlane.xlu0 %1278 }
 0x186   :  { %v1312_v53 = vmul.f32 0.03125, %v1276_v44  ;;  %v1313_v31 = vmul.f32 0.03125, %v1279_v63  ;;  %v1374_v0 = vmul.f32 %v8514_v34, %v8514_v34  ;;  %v1375_v39 = vmul.f32 %v8519_v50, %v8519_v50 }
 0x187   :  { %1455 = vadd.xlane.f32.xlu1 %v1454_v49  ;;  %1458 = vadd.xlane.f32.xlu0 %v1457_v13 }
 0x188   :  { %v8530_v62 = vsub.f32 %v7165_v22, %v1312_v53  ;;  %v8535_v17 = vsub.f32 %v7166_v28, %v1313_v31  ;;  %v1460_v49 = vsel %vm66_vm0, %v1374_v0, 0.0  ;;  %v1463_v13 = vsel %vm66_vm0, %v1375_v39, 0.0  ;;  %v8550_v0 = vld [vmem:[%s11467_s0 + $0x200] sm:$0xff]  ;;  %v8555_v39 = vld [vmem:[%s11467_s0 + $0x208] sm:$0xff] }
 0x189   :  { %v8539_v44 = vpop.xlane.xlu1 %1281  ;;  %v1381_v63 = vpop.xlane.xlu0 %1380 }
 0x18a   :  { %v1475_v46 = vmul.f32 0.03125, %v1381_v63  ;;  %v1376_v53 = vmul.f32 %v8530_v62, %v8530_v62  ;;  %v1377_v22 = vmul.f32 %v8535_v17, %v8535_v17 }
 0x18b   :  { %1461 = vadd.xlane.f32.xlu1 %v1460_v49  ;;  %1464 = vadd.xlane.f32.xlu0 %v1463_v13 }
 0x18c   :  { %v1507_v47 = vadd.f32 1e-05, %v1475_v46  ;;  %v1466_v31 = vsel %vm66_vm0, %v1376_v53, 0.0  ;;  %v1469_v28 = vsel %vm66_vm0, %v1377_v22, 0.0  ;;  %v2294_v53 = vsel %vm66_vm0, %v8550_v0, 0.0 }
 0x18d   :  { %v1384_v49 = vpop.xlane.xlu1 %1383  ;;  %v1387_v13 = vpop.xlane.xlu0 %1386  ;;  %v2297_v22 = vsel %vm66_vm0, %v8555_v39, 0.0 }
 0x18e   :  { %6965 = vrsqrt.f32 %v1507_v47  ;;  %v1476_v63 = vmul.f32 0.03125, %v1384_v49  ;;  %v1477_v46 = vmul.f32 0.03125, %v1387_v13  ;;  %v5874_v47 = vld [vmem:[%s11467_s0 + $0x218] sm:$0xff] }
 0x18f   :  { %1467 = vadd.xlane.f32.xlu1 %v1466_v31  ;;  %1470 = vadd.xlane.f32.xlu0 %v1469_v28 }
 0x190   :  { %v1508_v7 = vadd.f32 1e-05, %v1476_v63  ;;  %v1509_v5 = vadd.f32 1e-05, %v1477_v46  ;;  %v2300_v63 = vsel %vm66_vm0, %v8564_v23, 0.0  ;;  %v2303_v46 = vsel %vm66_vm0, %v5874_v47, 0.0 }
 0x191   :  { %v1390_v31 = vpop.xlane.xlu1 %1389  ;;  %v1393_v28 = vpop.xlane.xlu0 %1392  ;;  %v2306_v47 = vsel %vm66_vm0, %v5875_v2, 0.0 }
 0x192   :  { %6967 = vrsqrt.f32 %v1508_v7  ;;  %v1478_v49 = vmul.f32 0.03125, %v1390_v31  ;;  %v1479_v13 = vmul.f32 0.03125, %v1393_v28  ;;  %v5876_v7 = vld [vmem:[%s11467_s0 + $0x228] sm:$0xff] }
 0x193   :  { %2295 = vadd.xlane.f32.xlu1 %v2294_v53  ;;  %2298 = vadd.xlane.f32.xlu0 %v2297_v22  ;;  %6969 = vrsqrt.f32 %v1509_v5  ;;  %v2309_v28 = vsel %vm66_vm0, %v5876_v7, 0.0  ;;  %v2312_v7 = vsel %vm66_vm0, %v5877_v33, 0.0 }
 0x194   :  { %v1510_v8 = vadd.f32 1e-05, %v1478_v49  ;;  %v1511_v29 = vadd.f32 1e-05, %v1479_v13 }
 0x195   :  { %v1396_v53 = vpop.xlane.xlu1 %1395  ;;  %v1399_v31 = vpop.xlane.xlu0 %1398 }
 0x196   :  { %6971 = vrsqrt.f32 %v1510_v8  ;;  %v1480_v5 = vmul.f32 0.03125, %v1396_v53  ;;  %v1481_v22 = vmul.f32 0.03125, %v1399_v31  ;;  %v2315_v53 = vsel %vm66_vm0, %v5878_v40, 0.0  ;;  %v8598_v40 = vld [vmem:[%s11468_s1] ss:$0 sm:$0xff] }
 0x197   :  { %2301 = vadd.xlane.f32.xlu1 %v2300_v63  ;;  %2304 = vadd.xlane.f32.xlu0 %v2303_v46  ;;  %6973 = vrsqrt.f32 %v1511_v29 }
 0x198   :  { %v1512_v49 = vadd.f32 1e-05, %v1480_v5  ;;  %v1513_v13 = vadd.f32 1e-05, %v1481_v22  ;;  %v5879_v22 = vld [vmem:[%s11467_s0 + $0x240] sm:$0xff] }
 0x199   :  { %v1402_v8 = vpop.xlane.xlu1 %1401  ;;  %v1405_v63 = vpop.xlane.xlu0 %1404 }
 0x19a   :  { %6975 = vrsqrt.f32 %v1512_v49  ;;  %v1482_v46 = vmul.f32 0.03125, %v1402_v8  ;;  %v1483_v29 = vmul.f32 0.03125, %v1405_v63  ;;  %v5880_v49 = vld [vmem:[%s11467_s0 + $0x248] sm:$0xff]  ;;  %v2318_v63 = vsel %vm66_vm0, %v5879_v22, 0.0 }
 0x19b   :  { %2307 = vadd.xlane.f32.xlu1 %v2306_v47  ;;  %2310 = vadd.xlane.f32.xlu0 %v2309_v28  ;;  %v6966_v2 = vpop.eup %6965  ;;  %6977 = vrsqrt.f32 %v1513_v13 }
 0x19c   :  { %v1514_v31 = vadd.f32 1e-05, %v1482_v46  ;;  %v1515_v5 = vadd.f32 1e-05, %v1483_v29  ;;  %v1571_v47 = vmul.f32 %v6966_v2, %v7982_v16  ;;  %v2321_v46 = vsel %vm66_vm0, %v5880_v49, 0.0 }
 0x19d   :  { %v1408_v28 = vpop.xlane.xlu1 %1407 }
 0x19e   :  { %6979 = vrsqrt.f32 %v1514_v31  ;;  %v1484_v13 = vmul.f32 0.03125, %v1408_v28  ;;  %v1603_v33 = vmul.f32 %v8598_v40, %v1571_v47  ;;  %v5881_v31 = vld [vmem:[%s11467_s0 + $0x250] sm:$0xff] }
 0x19f   :  { %2313 = vadd.xlane.f32.xlu1 %v2312_v7  ;;  %2316 = vadd.xlane.f32.xlu0 %v2315_v53  ;;  %v6968_v8 = vpop.eup %6967  ;;  %6981 = vrsqrt.f32 %v1515_v5  ;;  %v8607_v7 = vld [vmem:[%s11469_s2] ss:$0 sm:$0xff]  ;;  %v5882_v5 = vld [vmem:[%s11467_s0 + $0x258] sm:$0xff]  ;;  %v2324_v47 = vsel %vm66_vm0, %v5881_v31, 0.0 }
 0x1a0   :  { %v6970_v29 = vpop.eup %6969  ;;  %v1572_v16 = vmul.f32 %v6968_v8, %v7991_v42  ;;  %v1516_v2 = vadd.f32 1e-05, %v1484_v13  ;;  %v8610_v53 = vadd.f32 %v8607_v7, %v1603_v33  ;;  %v2327_v28 = vsel %vm66_vm0, %v5882_v5, 0.0  ;;  %v5883_v8 = vld [vmem:[%s11467_s0 + $0x260] sm:$0xff] }
 0x1a1   :  { %v1573_v22 = vmul.f32 %v6970_v29, %v7996_v57 }
 0x1a2   :  { %v1604_v42 = vmul.f32 %v8598_v40, %v1572_v16  ;;  %6983 = vrsqrt.f32 %v1516_v2  ;;  %6567 = vmatprep.mubr.msk.f32.mxu0 %vm66_vm0, %v8610_v53  ;;  %6623 = vmatprep.mubr.msk.f32.mxu1 %vm66_vm0, %v8610_v53 }
 0x1a3   :  { %2319 = vadd.xlane.f32.xlu1 %v2318_v63  ;;  %2322 = vadd.xlane.f32.xlu0 %v2321_v46  ;;  %v6972_v49 = vpop.eup %6971  ;;  %v1605_v13 = vmul.f32 %v8598_v40, %v1573_v22  ;;  %v5884_v63 = vld [vmem:[%s11467_s0 + $0x268] sm:$0xff] }
 0x1a4   :  { %v6974_v33 = vpop.eup %6973  ;;  %v8628_v57 = vadd.f32 %v8607_v7, %v1604_v42  ;;  %v1574_v46 = vmul.f32 %v6972_v49, %v8004_v4  ;;  %v2330_v4 = vsel %vm66_vm0, %v5883_v8, 0.0  ;;  %v2333_v22 = vsel %vm66_vm0, %v5884_v63, 0.0  ;;  %v8672_v63 = vld [vmem:[%s11470_s3 + $0x18] sm:$0xff] }
 0x1a5   :  { %v8638_v29 = vadd.f32 %v8607_v7, %v1605_v13  ;;  %v1575_v16 = vmul.f32 %v6974_v33, %v8011_v14 }
 0x1a6   :  { %v1606_v2 = vmul.f32 %v8598_v40, %v1574_v46  ;;  %6568 = vmatmul.mubr.msk.f32.vlgmr.msra.gmra.mxu0 %vm66_vm0, %v8628_v57  ;;  %6624 = vmatmul.mubr.msk.f32.vlgmr.msra.gmra.mxu1 %vm66_vm0, %v8628_v57  ;;  %v8678_v46 = vld [vmem:[%s11471_s4 + $0x18] sm:$0xff] }
 0x1a7   :  { %2325 = vadd.xlane.f32.xlu1 %v2324_v47  ;;  %2328 = vadd.xlane.f32.xlu0 %v2327_v28  ;;  %v6976_v5 = vpop.eup %6975  ;;  %v1607_v14 = vmul.f32 %v8598_v40, %v1575_v16  ;;  %v5885_v47 = vld [vmem:[%s11467_s0 + $0x270] sm:$0xff]  ;;  %v5886_v28 = vld [vmem:[%s11467_s0 + $0x278] sm:$0xff] }
 0x1a8   :  { %v6978_v42 = vpop.eup %6977  ;;  %6570 = vmatprep.mubr.msk.f32.mxu0 %vm66_vm0, %v8638_v29  ;;  %6626 = vmatprep.mubr.msk.f32.mxu1 %vm66_vm0, %v8638_v29  ;;  %v8656_v49 = vadd.f32 %v8607_v7, %v1606_v2  ;;  %v1576_v13 = vmul.f32 %v6976_v5, %v8016_v11  ;;  %v2336_v2 = vsel %vm66_vm0, %v5885_v47, 0.0  ;;  %v2339_v5 = vsel %vm66_vm0, %v5886_v28, 0.0  ;;  %v5888_v47 = vld [vmem:[%s11467_s0 + $0x288] sm:$0xff] }
 0x1a9   :  { %v8666_v33 = vadd.f32 %v8607_v7, %v1607_v14  ;;  %v1577_v8 = vmul.f32 %v6978_v42, %v8023_v18  ;;  %6672 = vmatpush3.msra.mxu0 %v8672_v63  ;;  %6728 = vmatpush3.msra.mxu1 %v8678_v46  ;;  %v5887_v42 = vld [vmem:[%s11467_s0 + $0x280] sm:$0xff]  ;;  %v7172_v18 = vld [vmem:[%s11471_s4 + $0x10] sm:$0xff] }
 0x1aa   :  { %v1608_v11 = vmul.f32 %v8598_v40, %v1576_v13  ;;  %6571 = vmatmul.mubr.msk.f32.gmra.mxu0 %vm66_vm0, %v8656_v49  ;;  %6627 = vmatmul.mubr.msk.f32.gmra.mxu1 %vm66_vm0, %v8656_v49 }
 0x1ab   :  { %2331 = vadd.xlane.f32.xlu1 %v2330_v4  ;;  %2334 = vadd.xlane.f32.xlu0 %v2333_v22  ;;  %v6980_v16 = vpop.eup %6979  ;;  %v1609_v14 = vmul.f32 %v8598_v40, %v1577_v8  ;;  %v11669_v8 = vld [vmem:[#allocation22_spill] sm:$0xff] }
 0x1ac   :  { %v6982_v4 = vpop.eup %6981  ;;  %6573 = vmatprep.mubr.msk.f32.mxu0 %vm66_vm0, %v8666_v33  ;;  %6629 = vmatprep.mubr.msk.f32.mxu1 %vm66_vm0, %v8666_v33  ;;  %v8696_v22 = vadd.f32 %v8607_v7, %v1608_v11  ;;  %v1578_v28 = vmul.f32 %v6980_v16, %v8028_v19  ;;  %v7171_v11 = vld [vmem:[%s11470_s3 + $0x10] sm:$0xff] }
 0x1ad   :  { %v8706_v13 = vadd.f32 %v8607_v7, %v1609_v14  ;;  %v1579_v31 = vmul.f32 %v6982_v4, %v11669_v8  ;;  %6673 = vmatprep.subr.mxu0 %v7171_v11  ;;  %6729 = vmatprep.subr.mxu1 %v7172_v18  ;;  %v2342_v14 = vsel %vm66_vm0, %v5887_v42, 0.0  ;;  %v2345_v4 = vsel %vm66_vm0, %v5888_v47, 0.0  ;;  %v5890_v42 = vld [vmem:[%s11467_s0 + $0x298] sm:$0xff] }
 0x1ae   :  { %v1610_v54 = vmul.f32 %v8598_v40, %v1578_v28  ;;  %6574 = vmatmul.mubr.msk.f32.gmra.mxu0 %vm66_vm0, %v8696_v22  ;;  %6630 = vmatmul.mubr.msk.f32.gmra.mxu1 %vm66_vm0, %v8696_v22  ;;  %v11670_v47 = vld [vmem:[#allocation23_spill] sm:$0xff] }
 0x1af   :  { %2337 = vadd.xlane.f32.xlu1 %v2336_v2  ;;  %2340 = vadd.xlane.f32.xlu0 %v2339_v5  ;;  %v6984_v16 = vpop.eup %6983  ;;  %v1611_v8 = vmul.f32 %v8598_v40, %v1579_v31  ;;  %v5889_v5 = vld [vmem:[%s11467_s0 + $0x290] sm:$0xff] }
 0x1b0   :  { %6576 = vmatprep.mubr.msk.f32.mxu0 %vm66_vm0, %v8706_v13  ;;  %6632 = vmatprep.mubr.msk.f32.mxu1 %vm66_vm0, %v8706_v13  ;;  %v8730_v2 = vadd.f32 %v8607_v7, %v1610_v54  ;;  %v1580_v28 = vmul.f32 %v6984_v16, %v11670_v47  ;;  %v2348_v16 = vsel %vm66_vm0, %v5889_v5, 0.0  ;;  %v7174_v5 = vld [vmem:[%s11471_s4 + $0x8] sm:$0xff] }
 0x1b1   :  { %v8740_v31 = vadd.f32 %v8607_v7, %v1611_v8  ;;  %6674 = vmatpush3.msra.mxu0 %v7171_v11  ;;  %6730 = vmatpush3.msra.mxu1 %v7172_v18  ;;  %v2351_v8 = vsel %vm66_vm0, %v5890_v42, 0.0  ;;  %v5891_v11 = vld [vmem:[%s11467_s0 + $0x2a0] sm:$0xff] }
 0x1b2   :  { %v1612_v54 = vmul.f32 %v8598_v40, %v1580_v28  ;;  %6577 = vmatmul.mubr.msk.f32.gmra.mxu0 %vm66_vm0, %v8730_v2  ;;  %6633 = vmatmul.mubr.msk.f32.gmra.mxu1 %vm66_vm0, %v8730_v2  ;;  %v2354_v47 = vsel %vm66_vm0, %v5891_v11, 0.0  ;;  %v7176_v11 = vld [vmem:[%s11471_s4] sm:$0xff] }
 0x1b3   :  { %2343 = vadd.xlane.f32.xlu1 %v2342_v14  ;;  %2346 = vadd.xlane.f32.xlu0 %v2345_v4  ;;  %v5892_v14 = vld [vmem:[%s11467_s0 + $0x2a8] sm:$0xff] }
 0x1b4   :  { %6579 = vmatprep.mubr.msk.f32.mxu0 %vm66_vm0, %v8740_v31  ;;  %6635 = vmatprep.mubr.msk.f32.mxu1 %vm66_vm0, %v8740_v31  ;;  %v8756_v18 = vadd.f32 %v8607_v7, %v1612_v54  ;;  %v7173_v4 = vld [vmem:[%s11470_s3 + $0x8] sm:$0xff]  ;;  %v2357_v28 = vsel %vm66_vm0, %v5892_v14, 0.0  ;;  %v5893_v54 = vld [vmem:[%s11467_s0 + $0x2b0] sm:$0xff] }
 0x1b5   :  { %6675 = vmatprep.subr.mxu0 %v7173_v4  ;;  %6731 = vmatprep.subr.mxu1 %v7174_v5  ;;  %v2360_v14 = vsel %vm66_vm0, %v5893_v54, 0.0  ;;  %v5897_v54 = vld [vmem:[%s11467_s0 + $0x2d0] sm:$0xff] }
 0x1b6   :  { %6580 = vmatmul.mubr.msk.f32.gmra.mxu0 %vm66_vm0, %v8756_v18  ;;  %6636 = vmatmul.mubr.msk.f32.gmra.mxu1 %vm66_vm0, %v8756_v18 }
 0x1b7   :  { %2349 = vadd.xlane.f32.xlu1 %v2348_v16  ;;  %2352 = vadd.xlane.f32.xlu0 %v2351_v8  ;;  %v5894_v16 = vld [vmem:[%s11467_s0 + $0x2b8] sm:$0xff]  ;;  %v7175_v8 = vld [vmem:[%s11470_s3] sm:$0xff] }
 0x1b8   :  { %6676 = vmatpush3.msra.mxu0 %v7173_v4  ;;  %6732 = vmatpush3.msra.mxu1 %v7174_v5  ;;  %v2363_v19 = vsel %vm66_vm0, %v5894_v16, 0.0  ;;  %v5895_v4 = vld [vmem:[%s11467_s0 + $0x2c0] sm:$0xff]  ;;  %v5896_v5 = vld [vmem:[%s11467_s0 + $0x2c8] sm:$0xff]  ;;  %v5898_v16 = vld [vmem:[%s11467_s0 + $0x2d8] sm:$0xff] }
 0x1b9   :  { %6677 = vmatprep.subr.mxu0 %v7175_v8  ;;  %6733 = vmatprep.subr.mxu1 %v7176_v11 }
 0x1ba   :  { %6678 = vmatpush3.msra.mxu0 %v7175_v8  ;;  %6734 = vmatpush3.msra.mxu1 %v7176_v11  ;;  %v5900_v8 = vld [vmem:[%s11467_s0 + $0x2e8] sm:$0xff] }
 0x1bb   :  { %2355 = vadd.xlane.f32.xlu1 %v2354_v47  ;;  %2358 = vadd.xlane.f32.xlu0 %v2357_v28  ;;  %v2366_v47 = vsel %vm66_vm0, %v5895_v4, 0.0  ;;  %v2369_v28 = vsel %vm66_vm0, %v5896_v5, 0.0  ;;  %v5901_v4 = vld [vmem:[%s11467_s0 + $0x2f0] sm:$0xff]  ;;  %v5902_v5 = vld [vmem:[%s11467_s0 + $0x2f8] sm:$0xff] }
 0x1bc   :  { %6783 = vmatprep.subr.mxu0 %v8672_v63  ;;  %6839 = vmatprep.subr.mxu1 %v8678_v46  ;;  %v2372_v63 = vsel %vm66_vm0, %v5897_v54, 0.0  ;;  %v2375_v46 = vsel %vm66_vm0, %v5898_v16, 0.0  ;;  %v5967_v54 = vld [vmem:[%s11467_s0 + $0x300] sm:$0xff]  ;;  %v5968_v16 = vld [vmem:[%s11467_s0 + $0x308] sm:$0xff] }
 0x1bf   :  { %2361 = vadd.xlane.f32.xlu1 %v2360_v14  ;;  %2364 = vadd.xlane.f32.xlu0 %v2363_v19  ;;  %v5899_v19 = vld [vmem:[%s11467_s0 + $0x2e0] sm:$0xff]  ;;  %v2381_v14 = vsel %vm66_vm0, %v5900_v8, 0.0  ;;  %v5969_v8 = vld [vmem:[%s11467_s0 + $0x310] sm:$0xff] }
 0x1c0   :  { %v2378_v11 = vsel %vm66_vm0, %v5899_v19, 0.0  ;;  %v3404_v19 = vsel %vm66_vm0, %v5968_v16, 0.0 }
 0x1c3   :  { %2367 = vadd.xlane.f32.xlu1 %v2366_v47  ;;  %2370 = vadd.xlane.f32.xlu0 %v2369_v28  ;;  %v2384_v47 = vsel %vm66_vm0, %v5901_v4, 0.0  ;;  %v2387_v28 = vsel %vm66_vm0, %v5902_v5, 0.0 }
 0x1c7   :  { %2373 = vadd.xlane.f32.xlu1 %v2372_v63  ;;  %2376 = vadd.xlane.f32.xlu0 %v2375_v46  ;;  %v1314_v63 = vmul.f32 0.03125, %v8539_v44  ;;  %v3401_v46 = vsel %vm66_vm0, %v5967_v54, 0.0  ;;  %v3407_v44 = vsel %vm66_vm0, %v5969_v8, 0.0 }
 0x1cb   :  { %2379 = vadd.xlane.f32.xlu1 %v2378_v11  ;;  %2382 = vadd.xlane.f32.xlu0 %v2381_v14  ;;  %v5970_v11 = vld [vmem:[%s11467_s0 + $0x318] sm:$0xff] }
 0x1cc   :  { %v7177_v14 = vld [vmem:[%s11467_s0 + $0x1f8] sm:$0xff]  ;;  %v3410_v5 = vsel %vm66_vm0, %v5970_v11, 0.0 }
 0x1cd   :  { %v8844_v4 = vsub.f32 %v7177_v14, %v1314_v63  ;;  %v5974_v11 = vld [vmem:[%s11467_s0 + $0x338] sm:$0xff] }
 0x1ce   :  { %v3422_v14 = vsel %vm66_vm0, %v5974_v11, 0.0  ;;  %v5979_v11 = vld [vmem:[%s11467_s0 + $0x360] sm:$0xff] }
 0x1cf   :  { %2385 = vadd.xlane.f32.xlu1 %v2384_v47  ;;  %2388 = vadd.xlane.f32.xlu0 %v2387_v28  ;;  %v5971_v47 = vld [vmem:[%s11467_s0 + $0x320] sm:$0xff]  ;;  %v5972_v28 = vld [vmem:[%s11467_s0 + $0x328] sm:$0xff]  ;;  %v1378_v63 = vmul.f32 %v8844_v4, %v8844_v4 }
 0x1d0   :  { %v3413_v54 = vsel %vm66_vm0, %v5971_v47, 0.0  ;;  %v3416_v16 = vsel %vm66_vm0, %v5972_v28, 0.0  ;;  %v5976_v47 = vld [vmem:[%s11467_s0 + $0x348] sm:$0xff] }
 0x1d1   :  { %v3428_v28 = vsel %vm66_vm0, %v5976_v47, 0.0 }
 0x1d3   :  { %3402 = vadd.xlane.f32.xlu1 %v3401_v46  ;;  %3405 = vadd.xlane.f32.xlu0 %v3404_v19  ;;  %v5973_v46 = vld [vmem:[%s11467_s0 + $0x330] sm:$0xff]  ;;  %v1472_v19 = vsel %vm66_vm0, %v1378_v63, 0.0  ;;  %v5978_v63 = vld [vmem:[%s11467_s0 + $0x358] sm:$0xff] }
 0x1d4   :  { %v3419_v8 = vsel %vm66_vm0, %v5973_v46, 0.0 }
 0x1d7   :  { %3408 = vadd.xlane.f32.xlu1 %v3407_v44  ;;  %3411 = vadd.xlane.f32.xlu0 %v3410_v5  ;;  %v5975_v44 = vld [vmem:[%s11467_s0 + $0x340] sm:$0xff] }
 0x1d8   :  { %v3425_v5 = vsel %vm66_vm0, %v5975_v44, 0.0 }
 0x1db   :  { %3414 = vadd.xlane.f32.xlu1 %v3413_v54  ;;  %3417 = vadd.xlane.f32.xlu0 %v3416_v16  ;;  %v5977_v54 = vld [vmem:[%s11467_s0 + $0x350] sm:$0xff] }
 0x1dc   :  { %v3431_v16 = vsel %vm66_vm0, %v5977_v54, 0.0  ;;  %v3437_v54 = vsel %vm66_vm0, %v5979_v11, 0.0 }
 0x1df   :  { %1473 = vadd.xlane.f32.xlu1 %v1472_v19  ;;  %3420 = vadd.xlane.f32.xlu0 %v3419_v8  ;;  %v3434_v8 = vsel %vm66_vm0, %v5978_v63, 0.0 }
 0x1e3   :  { %3423 = vadd.xlane.f32.xlu0 %v3422_v14 }
 0x1e7   :  { %3426 = vadd.xlane.f32.xlu0 %v3425_v5 }
 0x1eb   :  { %3429 = vadd.xlane.f32.xlu0 %v3428_v28 }
 0x1ee   :  { %v1411_v46 = vpop.xlane.xlu0 %1410 }
 0x1ef   :  { %3432 = vadd.xlane.f32.xlu0 %v3431_v16  ;;  %v1485_v19 = vmul.f32 0.03125, %v1411_v46  ;;  %v5980_v16 = vld [vmem:[%s11467_s0 + $0x368] sm:$0xff] }
 0x1f1   :  { %v1517_v14 = vadd.f32 1e-05, %v1485_v19 }
 0x1f2   :  { %v1414_v44 = vpop.xlane.xlu1 %1413  ;;  %v1417_v5 = vpop.xlane.xlu0 %1416 }
 0x1f3   :  { %3435 = vadd.xlane.f32.xlu0 %v3434_v8  ;;  %6985 = vrsqrt.f32 %v1517_v14  ;;  %v1486_v47 = vmul.f32 0.03125, %v1414_v44  ;;  %v1487_v28 = vmul.f32 0.03125, %v1417_v5  ;;  %v3440_v8 = vsel %vm66_vm0, %v5980_v16, 0.0  ;;  %v5981_v14 = vld [vmem:[%s11467_s0 + $0x370] sm:$0xff] }
 0x1f5   :  { %v1518_v46 = vadd.f32 1e-05, %v1486_v47  ;;  %v1519_v42 = vadd.f32 1e-05, %v1487_v28 }
 0x1f6   :  { %v1420_v63 = vpop.xlane.xlu1 %1419  ;;  %v1423_v56 = vpop.xlane.xlu0 %1422 }
 0x1f7   :  { %3438 = vadd.xlane.f32.xlu0 %v3437_v54  ;;  %6987 = vrsqrt.f32 %v1518_v46  ;;  %v1488_v37 = vmul.f32 0.03125, %v1420_v63  ;;  %v1489_v19 = vmul.f32 0.03125, %v1423_v56  ;;  %v3443_v46 = vsel %vm66_vm0, %v5981_v14, 0.0 }
 0x1f8   :  { %6989 = vrsqrt.f32 %v1519_v42 }
 0x1f9   :  { %v1520_v11 = vadd.f32 1e-05, %v1488_v37  ;;  %v1521_v44 = vadd.f32 1e-05, %v1489_v19  ;;  %v5982_v37 = vld [vmem:[%s11467_s0 + $0x378] sm:$0xff] }
 0x1fa   :  { %v8894_v5 = vpop.f32.mrf.mxu0  ;;  %v8896_v47 = vpop.f32.mrf.mxu1 }
 0x1fb   :  { %3441 = vadd.xlane.f32.xlu0 %v3440_v8  ;;  %11671 = vst [vmem:[#allocation11_spill] sm:$0xff] %v8894_v5  ;;  %11672 = vst [vmem:[#allocation12_spill] sm:$0xff] %v8896_v47  ;;  %6991 = vrsqrt.f32 %v1520_v11  ;;  %v1426_v28 = vpop.xlane.xlu1 %1425  ;;  %v1429_v54 = vpop.xlane.xlu0 %1428 }
 0x1fc   :  { %6993 = vrsqrt.f32 %v1521_v44  ;;  %v1490_v56 = vmul.f32 0.03125, %v1426_v28  ;;  %v1491_v16 = vmul.f32 0.03125, %v1429_v54  ;;  %v8899_v42 = vpop.f32.mrf.mxu0  ;;  %v8901_v63 = vpop.f32.mrf.mxu1  ;;  %v3446_v44 = vsel %vm66_vm0, %v5982_v37, 0.0 }
 0x1fd   :  { %11673 = vst [vmem:[#allocation18_spill] sm:$0xff] %v8899_v42  ;;  %11674 = vst [vmem:[#allocation19_spill] sm:$0xff] %v8901_v63 }
 0x1fe   :  { %v1522_v19 = vadd.f32 1e-05, %v1490_v56  ;;  %v1523_v8 = vadd.f32 1e-05, %v1491_v16  ;;  %v8906_v47 = vpop.f32.mrf.mxu0  ;;  %v8908_v11 = vpop.f32.mrf.mxu1 }
 0x1ff   :  { %3444 = vadd.xlane.f32.xlu0 %v3443_v46  ;;  %11675 = vst [vmem:[#allocation13_spill] sm:$0xff] %v8906_v47  ;;  %11676 = vst [vmem:[#allocation20_spill] sm:$0xff] %v8908_v11  ;;  %v5983_v46 = vld [vmem:[%s11467_s0 + $0x380] sm:$0xff] }
 0x200   :  { %v1432_v5 = vpop.xlane.xlu1 %1431  ;;  %v1435_v14 = vpop.xlane.xlu0 %1434  ;;  %6995 = vrsqrt.f32 %v1522_v19 }
 0x201   :  { %v6986_v28 = vpop.eup %6985  ;;  %v1492_v54 = vmul.f32 0.03125, %v1432_v5  ;;  %v1493_v42 = vmul.f32 0.03125, %v1435_v14  ;;  %v8911_v63 = vpop.f32.mrf.mxu0  ;;  %6997 = vrsqrt.f32 %v1523_v8  ;;  %v3449_v14 = vsel %vm66_vm0, %v5983_v46, 0.0 }
 0x202   :  { %11677 = vst [vmem:[#allocation21_spill] sm:$0xff] %v8911_v63  ;;  %v8913_v15 = vpop.f32.mrf.mxu1  ;;  %v1581_v56 = vmul.f32 %v6986_v28, %v8291_v43 }
 0x203   :  { %11678 = vst [vmem:[#allocation22_spill] sm:$0xff] %v8913_v15  ;;  %v1524_v16 = vadd.f32 1e-05, %v1492_v54  ;;  %v1525_v11 = vadd.f32 1e-05, %v1493_v42  ;;  %3447 = vadd.xlane.f32.xlu0 %v3446_v44  ;;  %v8919_v47 = vpop.f32.mrf.mxu0  ;;  %v5984_v42 = vld [vmem:[%s11467_s0 + $0x388] sm:$0xff] }
 0x204   :  { %11679 = vst [vmem:[#allocation23_spill] sm:$0xff] %v8919_v47  ;;  %v8921_v37 = vpop.f32.mrf.mxu1  ;;  %v1438_v5 = vpop.xlane.xlu1 %1437  ;;  %v1613_v15 = vmul.f32 %v8598_v40, %v1581_v56 }
 0x205   :  { %11680 = vst [vmem:[#allocation49_spill] sm:$0xff] %v8921_v37  ;;  %v1441_v19 = vpop.xlane.xlu0 %1440  ;;  %v6988_v63 = vpop.eup %6987  ;;  %6999 = vrsqrt.f32 %v1524_v16  ;;  %v1494_v35 = vmul.f32 0.03125, %v1438_v5 }
 0x206   :  { %v1495_v3 = vmul.f32 0.03125, %v1441_v19  ;;  %v8925_v8 = vpop.f32.mrf.mxu0  ;;  %v8927_v43 = vpop.f32.mrf.mxu1  ;;  %7001 = vrsqrt.f32 %v1525_v11  ;;  %v8933_v28 = vadd.f32 %v8607_v7, %v1613_v15  ;;  %v1582_v5 = vmul.f32 %v6988_v63, %v8318_v45 }
 0x207   :  { %11681 = vst [vmem:[#allocation50_spill] sm:$0xff] %v8925_v8  ;;  %11682 = vst [vmem:[#allocation51_spill] sm:$0xff] %v8927_v43  ;;  %v6990_v44 = vpop.eup %6989  ;;  %v1526_v54 = vadd.f32 1e-05, %v1494_v35  ;;  %3450 = vadd.xlane.f32.xlu0 %v3449_v14  ;;  %v3452_v15 = vsel %vm66_vm0, %v5984_v42, 0.0 }
 0x208   :  { %11683 = vst [vmem:[#allocation52_spill] sm:$0xff] %v8933_v28  ;;  %v1527_v46 = vadd.f32 1e-05, %v1495_v3  ;;  %v8935_v56 = vpop.f32.mrf.mxu0  ;;  %v8937_v16 = vpop.f32.mrf.mxu1  ;;  %v1583_v19 = vmul.f32 %v6990_v44, %v8321_v55  ;;  %6582 = vmatprep.mubr.msk.f32.mxu0 %vm66_vm0, %v8933_v28  ;;  %6638 = vmatprep.mubr.msk.f32.mxu1 %vm66_vm0, %v8933_v28  ;;  %v1614_v45 = vmul.f32 %v8598_v40, %v1582_v5  ;;  %v5985_v55 = vld [vmem:[%s11467_s0 + $0x390] sm:$0xff] }
 0x209   :  { %11684 = vst [vmem:[#allocation53_spill] sm:$0xff] %v8935_v56  ;;  %11685 = vst [vmem:[#allocation54_spill] sm:$0xff] %v8937_v16  ;;  %v1444_v37 = vpop.xlane.xlu1 %1443  ;;  %v1447_v43 = vpop.xlane.xlu0 %1446  ;;  %7003 = vrsqrt.f32 %v1526_v54 }
 0x20a   :  { %v6992_v3 = vpop.eup %6991  ;;  %v1496_v35 = vmul.f32 0.03125, %v1444_v37  ;;  %v1497_v11 = vmul.f32 0.03125, %v1447_v43  ;;  %v8946_v14 = vpop.f32.mrf.mxu0  ;;  %7005 = vrsqrt.f32 %v1527_v46  ;;  %v1615_v44 = vmul.f32 %v8598_v40, %v1583_v19 }
 0x20b   :  { %11686 = vst [vmem:[#allocation55_spill] sm:$0xff] %v8946_v14  ;;  %v8948_v16 = vpop.f32.mrf.mxu1  ;;  %v6994_v63 = vpop.eup %6993  ;;  %3453 = vadd.xlane.f32.xlu0 %v3452_v15  ;;  %v8960_v43 = vadd.f32 %v8607_v7, %v1614_v45  ;;  %v1584_v5 = vmul.f32 %v6992_v3, %v8345_v59  ;;  %v3455_v46 = vsel %vm66_vm0, %v5985_v55, 0.0  ;;  %v5986_v45 = vld [vmem:[%s11467_s0 + $0x398] sm:$0xff] }
 0x20c   :  { %11687 = vst [vmem:[#allocation56_spill] sm:$0xff] %v8948_v16  ;;  %v1528_v56 = vadd.f32 1e-05, %v1496_v35  ;;  %v1529_v42 = vadd.f32 1e-05, %v1497_v11  ;;  %v8955_v54 = vpop.f32.mrf.mxu0  ;;  %v8964_v47 = vadd.f32 %v8607_v7, %v1615_v44  ;;  %v1585_v19 = vmul.f32 %v6994_v63, %v8348_v58 }
 0x20d   :  { %11688 = vst [vmem:[#allocation57_spill] sm:$0xff] %v8955_v54  ;;  %v8957_v37 = vpop.f32.mrf.mxu1  ;;  %11690 = vst [vmem:[#allocation59_spill] sm:$0xff] %v8960_v43  ;;  %v1450_v16 = vpop.xlane.xlu1 %1449  ;;  %6583 = vmatmul.mubr.msk.f32.gmra.mxu0 %vm66_vm0, %v8960_v43  ;;  %6639 = vmatmul.mubr.msk.f32.gmra.mxu1 %vm66_vm0, %v8960_v43  ;;  %v1616_v3 = vmul.f32 %v8598_v40, %v1584_v5 }
 0x20e   :  { %11689 = vst [vmem:[#allocation58_spill] sm:$0xff] %v8957_v37  ;;  %v1453_v14 = vpop.xlane.xlu0 %1452  ;;  %7007 = vrsqrt.f32 %v1528_v56  ;;  %v1498_v15 = vmul.f32 0.03125, %v1450_v16  ;;  %v8972_v11 = vpop.f32.mrf.mxu0  ;;  %6585 = vmatprep.mubr.msk.f32.mxu0 %vm66_vm0, %v8964_v47  ;;  %6641 = vmatprep.mubr.msk.f32.mxu1 %vm66_vm0, %v8964_v47  ;;  %v1617_v56 = vmul.f32 %v8598_v40, %v1585_v19  ;;  %v3458_v19 = vsel %vm66_vm0, %v5986_v45, 0.0 }
 0x20f   :  { %v1499_v35 = vmul.f32 0.03125, %v1453_v14  ;;  %11691 = vst [vmem:[#allocation60_spill] sm:$0xff] %v8972_v11  ;;  %v8974_v59 = vpop.f32.mrf.mxu1  ;;  %v6996_v58 = vpop.eup %6995  ;;  %7009 = vrsqrt.f32 %v1529_v42  ;;  %3456 = vadd.xlane.f32.xlu0 %v3455_v46  ;;  %v8990_v5 = vadd.f32 %v8607_v7, %v1616_v3 }
 0x210   :  { %11692 = vst [vmem:[#allocation61_spill] sm:$0xff] %v8974_v59  ;;  %v6998_v16 = vpop.eup %6997  ;;  %v1530_v14 = vadd.f32 1e-05, %v1498_v15  ;;  %v8985_v63 = vpop.f32.mrf.mxu0  ;;  %v1586_v42 = vmul.f32 %v6996_v58, %v8376_v36  ;;  %v8994_v54 = vadd.f32 %v8607_v7, %v1617_v56 }
 0x211   :  { %v1531_v55 = vadd.f32 1e-05, %v1499_v35  ;;  %11693 = vst [vmem:[#allocation62_spill] sm:$0xff] %v8985_v63  ;;  %v8987_v44 = vpop.f32.mrf.mxu1  ;;  %v1456_v37 = vpop.xlane.xlu1 %1455  ;;  %v1587_v15 = vmul.f32 %v6998_v16, %v8379_v10  ;;  %6586 = vmatmul.mubr.msk.f32.gmra.mxu0 %vm66_vm0, %v8990_v5  ;;  %6642 = vmatmul.mubr.msk.f32.gmra.mxu1 %vm66_vm0, %v8990_v5  ;;  %v5987_v10 = vld [vmem:[%s11467_s0 + $0x3a0] sm:$0xff] }
 0x212   :  { %11694 = vst [vmem:[#allocation63_spill] sm:$0xff] %v8987_v44  ;;  %v1459_v59 = vpop.xlane.xlu0 %1458  ;;  %11695 = vst [vmem:[#allocation64_spill] sm:$0xff] %v8994_v54  ;;  %7011 = vrsqrt.f32 %v1530_v14  ;;  %v1500_v35 = vmul.f32 0.03125, %v1456_v37  ;;  %v9004_v36 = vpop.f32.mrf.mxu0  ;;  %v1618_v45 = vmul.f32 %v8598_v40, %v1586_v42  ;;  %6588 = vmatprep.mubr.msk.f32.mxu0 %vm66_vm0, %v8994_v54  ;;  %6644 = vmatprep.mubr.msk.f32.mxu1 %vm66_vm0, %v8994_v54 }
 0x213   :  { %v1501_v44 = vmul.f32 0.03125, %v1459_v59  ;;  %11696 = vst [vmem:[#allocation65_spill] sm:$0xff] %v9004_v36  ;;  %v9006_v3 = vpop.f32.mrf.mxu1  ;;  %v7000_v58 = vpop.eup %6999  ;;  %7013 = vrsqrt.f32 %v1531_v55  ;;  %v1619_v37 = vmul.f32 %v8598_v40, %v1587_v15  ;;  %3459 = vadd.xlane.f32.xlu0 %v3458_v19  ;;  %v3461_v15 = vsel %vm66_vm0, %v5987_v10, 0.0 }
 0x214   :  { %11697 = vst [vmem:[#allocation66_spill] sm:$0xff] %v9006_v3  ;;  %v7002_v59 = vpop.eup %7001  ;;  %v1532_v56 = vadd.f32 1e-05, %v1500_v35  ;;  %v9017_v14 = vpop.f32.mrf.mxu0  ;;  %v9022_v46 = vadd.f32 %v8607_v7, %v1618_v45  ;;  %v1588_v55 = vmul.f32 %v7000_v58, %v8406_v41 }
 0x215   :  { %v1533_v16 = vadd.f32 1e-05, %v1501_v44  ;;  %11698 = vst [vmem:[#allocation67_spill] sm:$0xff] %v9017_v14  ;;  %v9019_v42 = vpop.f32.mrf.mxu1  ;;  %v1462_v3 = vpop.xlane.xlu1 %1461  ;;  %v9026_v36 = vadd.f32 %v8607_v7, %v1619_v37  ;;  %v1589_v35 = vmul.f32 %v7002_v59, %v8409_v12  ;;  %v5988_v12 = vld [vmem:[%s11467_s0 + $0x3a8] sm:$0xff] }
 0x216   :  { %11699 = vst [vmem:[#allocation68_spill] sm:$0xff] %v9019_v42  ;;  %11700 = vst [vmem:[#allocation69_spill] sm:$0xff] %v9022_v46  ;;  %v1465_v63 = vpop.xlane.xlu0 %1464  ;;  %7015 = vrsqrt.f32 %v1532_v56  ;;  %v1502_v19 = vmul.f32 0.03125, %v1462_v3  ;;  %6589 = vmatmul.mubr.msk.f32.gmra.mxu0 %vm66_vm0, %v9022_v46  ;;  %6645 = vmatmul.mubr.msk.f32.gmra.mxu1 %vm66_vm0, %v9022_v46  ;;  %v9036_v41 = vpop.f32.mrf.mxu0  ;;  %v1620_v10 = vmul.f32 %v8598_v40, %v1588_v55 }
 0x217   :  { %11701 = vst [vmem:[#allocation70_spill] sm:$0xff] %v9026_v36  ;;  %v1503_v42 = vmul.f32 0.03125, %v1465_v63  ;;  %11702 = vst [vmem:[#allocation71_spill] sm:$0xff] %v9036_v41  ;;  %v9038_v45 = vpop.f32.mrf.mxu1  ;;  %v7004_v58 = vpop.eup %7003  ;;  %7017 = vrsqrt.f32 %v1533_v16  ;;  %6591 = vmatprep.mubr.msk.f32.mxu0 %vm66_vm0, %v9026_v36  ;;  %6647 = vmatprep.mubr.msk.f32.mxu1 %vm66_vm0, %v9026_v36  ;;  %v1621_v63 = vmul.f32 %v8598_v40, %v1589_v35  ;;  %v3464_v35 = vsel %vm66_vm0, %v5988_v12, 0.0 }
 0x218   :  { %11703 = vst [vmem:[#allocation72_spill] sm:$0xff] %v9038_v45  ;;  %v7006_v3 = vpop.eup %7005  ;;  %v1534_v37 = vadd.f32 1e-05, %v1502_v19  ;;  %3462 = vadd.xlane.f32.xlu0 %v3461_v15  ;;  %v9049_v56 = vpop.f32.mrf.mxu0  ;;  %v9054_v44 = vadd.f32 %v8607_v7, %v1620_v10  ;;  %v1590_v16 = vmul.f32 %v7004_v58, %v8437_v1 }
 0x219   :  { %v1535_v59 = vadd.f32 1e-05, %v1503_v42  ;;  %11704 = vst [vmem:[#allocation73_spill] sm:$0xff] %v9049_v56  ;;  %v9051_v55 = vpop.f32.mrf.mxu1  ;;  %v1468_v45 = vpop.xlane.xlu1 %1467  ;;  %v9058_v41 = vadd.f32 %v8607_v7, %v1621_v63  ;;  %v1591_v19 = vmul.f32 %v7006_v3, %v8440_v25  ;;  %v9076_v25 = vld [vmem:[%s11467_s0 + $0x3b0] sm:$0xff] }
 0x21a   :  { %11705 = vst [vmem:[#allocation74_spill] sm:$0xff] %v9051_v55  ;;  %11706 = vst [vmem:[#allocation75_spill] sm:$0xff] %v9054_v44  ;;  %v1471_v14 = vpop.xlane.xlu0 %1470  ;;  %7019 = vrsqrt.f32 %v1534_v37  ;;  %v1504_v15 = vmul.f32 0.03125, %v1468_v45  ;;  %6592 = vmatmul.mubr.msk.f32.gmra.mxu0 %vm66_vm0, %v9054_v44  ;;  %6648 = vmatmul.mubr.msk.f32.gmra.mxu1 %vm66_vm0, %v9054_v44  ;;  %v9068_v1 = vpop.f32.mrf.mxu0  ;;  %v1622_v12 = vmul.f32 %v8598_v40, %v1590_v16 }
 0x21b   :  { %11707 = vst [vmem:[#allocation76_spill] sm:$0xff] %v9058_v41  ;;  %v1505_v55 = vmul.f32 0.03125, %v1471_v14  ;;  %11708 = vst [vmem:[#allocation77_spill] sm:$0xff] %v9068_v1  ;;  %v9070_v10 = vpop.f32.mrf.mxu1  ;;  %v7008_v58 = vpop.eup %7007  ;;  %7021 = vrsqrt.f32 %v1535_v59  ;;  %6594 = vmatprep.mubr.msk.f32.mxu0 %vm66_vm0, %v9058_v41  ;;  %6650 = vmatprep.mubr.msk.f32.mxu1 %vm66_vm0, %v9058_v41  ;;  %v1623_v14 = vmul.f32 %v8598_v40, %v1591_v19  ;;  %v3467_v19 = vsel %vm66_vm0, %v9076_v25, 0.0 }
 0x21c   :  { %11709 = vst [vmem:[#allocation78_spill] sm:$0xff] %v9070_v10  ;;  %v7010_v45 = vpop.eup %7009  ;;  %v1536_v63 = vadd.f32 1e-05, %v1504_v15  ;;  %3465 = vadd.xlane.f32.xlu0 %v3464_v35  ;;  %v9083_v37 = vpop.f32.mrf.mxu0  ;;  %v9088_v42 = vadd.f32 %v8607_v7, %v1622_v12  ;;  %v1592_v59 = vmul.f32 %v7008_v58, %v8466_v32  ;;  %v9100_v35 = vld [vmem:[%s11467_s0 + $0x3b8] sm:$0xff] }
 0x21d   :  { %v1537_v3 = vadd.f32 1e-05, %v1505_v55  ;;  %11710 = vst [vmem:[#allocation79_spill] sm:$0xff] %v9083_v37  ;;  %v9085_v16 = vpop.f32.mrf.mxu1  ;;  %v2296_v10 = vpop.xlane.xlu1 %2295  ;;  %v9092_v1 = vadd.f32 %v8607_v7, %v1623_v14  ;;  %v1593_v55 = vmul.f32 %v7010_v45, %v8471_v38 }
 0x21e   :  { %11711 = vst [vmem:[#allocation80_spill] sm:$0xff] %v9085_v16  ;;  %11712 = vst [vmem:[#allocation81_spill] sm:$0xff] %v9088_v42  ;;  %v2299_v56 = vpop.xlane.xlu0 %2298  ;;  %7023 = vrsqrt.f32 %v1536_v63  ;;  %v2390_v32 = vmul.f32 0.03125, %v2296_v10  ;;  %6595 = vmatmul.mubr.msk.f32.gmra.mxu0 %vm66_vm0, %v9088_v42  ;;  %6651 = vmatmul.mubr.msk.f32.gmra.mxu1 %vm66_vm0, %v9088_v42  ;;  %v9108_v58 = vpop.f32.mrf.mxu0  ;;  %v1624_v14 = vmul.f32 %v8598_v40, %v1592_v59 }
 0x21f   :  { %11713 = vst [vmem:[#allocation82_spill] sm:$0xff] %v9092_v1  ;;  %v2391_v12 = vmul.f32 0.03125, %v2299_v56  ;;  %11714 = vst [vmem:[#allocation83_spill] sm:$0xff] %v9108_v58  ;;  %v9110_v38 = vpop.f32.mrf.mxu1  ;;  %v7012_v45 = vpop.eup %7011  ;;  %7025 = vrsqrt.f32 %v1537_v3  ;;  %6597 = vmatprep.mubr.msk.f32.mxu0 %vm66_vm0, %v9092_v1  ;;  %6653 = vmatprep.mubr.msk.f32.mxu1 %vm66_vm0, %v9092_v1  ;;  %v1625_v10 = vmul.f32 %v8598_v40, %v1593_v55  ;;  %v3470_v56 = vsel %vm66_vm0, %v9100_v35, 0.0  ;;  %v9138_v55 = vld [vmem:[%s11467_s0 + $0x3c0] sm:$0xff] }
 0x220   :  { %11715 = vst [vmem:[#allocation84_spill] sm:$0xff] %v9110_v38  ;;  %v7014_v63 = vpop.eup %7013  ;;  %v9123_v11 = vsub.f32 %v8550_v0, %v2390_v32  ;;  %3468 = vadd.xlane.f32.xlu0 %v3467_v19  ;;  %v9125_v3 = vpop.f32.mrf.mxu0  ;;  %v9130_v15 = vadd.f32 %v8607_v7, %v1624_v14  ;;  %v1594_v38 = vmul.f32 %v7012_v45, %v8482_v21  ;;  %v3473_v58 = vsel %vm66_vm0, %v9138_v55, 0.0 }
 0x221   :  { %11716 = vst [vmem:[#allocation85_spill] sm:$0xff] %v9125_v3  ;;  %v9127_v59 = vpop.f32.mrf.mxu1  ;;  %v9141_v0 = vsub.f32 %v8555_v39, %v2391_v12  ;;  %v2302_v19 = vpop.xlane.xlu1 %2301  ;;  %v9144_v16 = vadd.f32 %v8607_v7, %v1625_v10  ;;  %v1595_v14 = vmul.f32 %v7014_v63, %v8487_v48 }
 0x222   :  { %11717 = vst [vmem:[#allocation86_spill] sm:$0xff] %v9127_v59  ;;  %11718 = vst [vmem:[#allocation87_spill] sm:$0xff] %v9130_v15  ;;  %v2305_v32 = vpop.xlane.xlu0 %2304  ;;  %v2392_v37 = vmul.f32 0.03125, %v2302_v19  ;;  %6598 = vmatmul.mubr.msk.f32.gmra.mxu0 %vm66_vm0, %v9130_v15  ;;  %6654 = vmatmul.mubr.msk.f32.gmra.mxu1 %vm66_vm0, %v9130_v15  ;;  %v9153_v21 = vpop.f32.mrf.mxu0  ;;  %v2454_v12 = vmul.f32 %v9123_v11, %v9123_v11  ;;  %v1626_v45 = vmul.f32 %v8598_v40, %v1594_v38 }
 0x223   :  { %11719 = vst [vmem:[#allocation88_spill] sm:$0xff] %v9144_v16  ;;  %11720 = vst [vmem:[#allocation89_spill] sm:$0xff] %v9153_v21  ;;  %v9155_v39 = vpop.f32.mrf.mxu1  ;;  %v7016_v48 = vpop.eup %7015  ;;  %6600 = vmatprep.mubr.msk.f32.mxu0 %vm66_vm0, %v9144_v16  ;;  %6656 = vmatprep.mubr.msk.f32.mxu1 %vm66_vm0, %v9144_v16  ;;  %v1627_v19 = vmul.f32 %v8598_v40, %v1595_v14  ;;  %v2393_v9 = vmul.f32 0.03125, %v2305_v32 }
 0x224   :  { %11721 = vst [vmem:[#allocation90_spill] sm:$0xff] %v9155_v39  ;;  %v7018_v8 = vpop.eup %7017  ;;  %v9172_v38 = vsub.f32 %v8564_v23, %v2392_v37  ;;  %3471 = vadd.xlane.f32.xlu0 %v3470_v56  ;;  %v2486_v10 = vsel %vm66_vm0, %v2454_v12, 0.0  ;;  %v9175_v63 = vpop.f32.mrf.mxu0  ;;  %v9180_v59 = vadd.f32 %v8607_v7, %v1626_v45  ;;  %v2455_v23 = vmul.f32 %v9141_v0, %v9141_v0 }
 0x225   :  { %11722 = vst [vmem:[#allocation91_spill] sm:$0xff] %v9175_v63  ;;  %v9177_v39 = vpop.f32.mrf.mxu1  ;;  %2487 = vadd.xlane.f32.xlu1 %v2486_v10  ;;  %v2308_v14 = vpop.xlane.xlu1 %2307  ;;  %v9183_v3 = vadd.f32 %v8607_v7, %v1627_v19  ;;  %v1596_v37 = vmul.f32 %v7016_v48, %v8498_v60  ;;  %v1597_v56 = vmul.f32 %v7018_v8, %v8503_v27  ;;  %v9211_v48 = vld [vmem:[%s11467_s0 + $0x3c8] sm:$0xff]  ;;  %v7178_v60 = vld [vmem:[%s11467_s0 + $0x218] sm:$0xff] }
 0x226   :  { %11723 = vst [vmem:[#allocation92_spill] sm:$0xff] %v9177_v39  ;;  %11724 = vst [vmem:[#allocation93_spill] sm:$0xff] %v9180_v59  ;;  %v2311_v21 = vpop.xlane.xlu0 %2310  ;;  %6601 = vmatmul.mubr.msk.f32.gmra.mxu0 %vm66_vm0, %v9180_v59  ;;  %6657 = vmatmul.mubr.msk.f32.gmra.mxu1 %vm66_vm0, %v9180_v59  ;;  %v9193_v32 = vpop.f32.mrf.mxu0  ;;  %v2456_v45 = vmul.f32 %v9172_v38, %v9172_v38  ;;  %v2394_v19 = vmul.f32 0.03125, %v2308_v14  ;;  %v2489_v27 = vsel %vm66_vm0, %v2455_v23, 0.0  ;;  %v3476_v23 = vsel %vm66_vm0, %v9211_v48, 0.0 }
 0x227   :  { %11725 = vst [vmem:[#allocation94_spill] sm:$0xff] %v9183_v3  ;;  %11726 = vst [vmem:[#allocation95_spill] sm:$0xff] %v9193_v32  ;;  %v9195_v12 = vpop.f32.mrf.mxu1  ;;  %v7020_v10 = vpop.eup %7019  ;;  %6603 = vmatprep.mubr.msk.f32.mxu0 %vm66_vm0, %v9183_v3  ;;  %6659 = vmatprep.mubr.msk.f32.mxu1 %vm66_vm0, %v9183_v3  ;;  %v1628_v8 = vmul.f32 %v8598_v40, %v1596_v37  ;;  %v9216_v32 = vsub.f32 %v7178_v60, %v2393_v9 }
 0x228   :  { %11727 = vst [vmem:[#allocation96_spill] sm:$0xff] %v9195_v12  ;;  %v7022_v14 = vpop.eup %7021  ;;  %3474 = vadd.xlane.f32.xlu0 %v3473_v58  ;;  %v1629_v12 = vmul.f32 %v8598_v40, %v1597_v56  ;;  %v1598_v24 = vmul.f32 %v7020_v10, %v8514_v34  ;;  %v9227_v6 = vpop.f32.mrf.mxu0  ;;  %v2492_v56 = vsel %vm66_vm0, %v2456_v45, 0.0  ;;  %v2395_v10 = vmul.f32 0.03125, %v2311_v21 }
 0x229   :  { %v2314_v39 = vpop.xlane.xlu1 %2313  ;;  %2490 = vadd.xlane.f32.xlu1 %v2489_v27  ;;  %v9223_v63 = vadd.f32 %v8607_v7, %v1628_v8  ;;  %v1599_v20 = vmul.f32 %v7022_v14, %v8519_v50  ;;  %11729 = vst [vmem:[#allocation98_spill] sm:$0xff] %v9227_v6  ;;  %v9229_v9 = vpop.f32.mrf.mxu1  ;;  %v7179_v27 = vld [vmem:[%s11467_s0 + $0x220] sm:$0xff] }
 0x22a   :  { %v9220_v37 = vpop.xlane.xlu0 %2316  ;;  %11730 = vst [vmem:[#allocation99_spill] sm:$0xff] %v9229_v9  ;;  %v9232_v58 = vadd.f32 %v8607_v7, %v1629_v12  ;;  %v9240_v34 = vsub.f32 %v7179_v27, %v2394_v19  ;;  %v1630_v50 = vmul.f32 %v8598_v40, %v1598_v24  ;;  %v9251_v12 = vld [vmem:[%s11467_s0 + $0x3d0] sm:$0xff]  ;;  %v9253_v8 = vpop.f32.mrf.mxu0  ;;  %v2457_v24 = vmul.f32 %v9216_v32, %v9216_v32 }
 0x22b   :  { %11728 = vst [vmem:[#allocation97_spill] sm:$0xff] %v9223_v63  ;;  %v7024_v60 = vpop.eup %7023  ;;  %6604 = vmatmul.mubr.msk.f32.gmra.mxu0 %vm66_vm0, %v9223_v63  ;;  %6660 = vmatmul.mubr.msk.f32.gmra.mxu1 %vm66_vm0, %v9223_v63  ;;  %v1631_v7 = vmul.f32 %v8598_v40, %v1599_v20  ;;  %11732 = vst [vmem:[#allocation101_spill] sm:$0xff] %v9253_v8  ;;  %v9255_v19 = vpop.f32.mrf.mxu1 }
 0x22c   :  { %11731 = vst [vmem:[#allocation100_spill] sm:$0xff] %v9232_v58  ;;  %v7026_v45 = vpop.eup %7025  ;;  %11733 = vst [vmem:[#allocation102_spill] sm:$0xff] %v9255_v19  ;;  %6606 = vmatprep.mubr.msk.f32.mxu0 %vm66_vm0, %v9232_v58  ;;  %6662 = vmatprep.mubr.msk.f32.mxu1 %vm66_vm0, %v9232_v58  ;;  %v1600_v20 = vmul.f32 %v7024_v60, %v8530_v62  ;;  %v9276_v52 = vadd.f32 %v9273_v26, %v1630_v50  ;;  %v9278_v62 = vpop.f32.mrf.mxu0  ;;  %v2396_v19 = vmul.f32 0.03125, %v2314_v39  ;;  %v7182_v39 = vld [vmem:[%s11467_s0 + $0x228] sm:$0xff] }
 0x22d   :  { %3477 = vadd.xlane.f32.xlu0 %v3476_v23  ;;  %v2320_v14 = vpop.xlane.xlu1 %2319  ;;  %2493 = vadd.xlane.f32.xlu1 %v2492_v56  ;;  %11735 = vst [vmem:[#allocation104_spill] sm:$0xff] %v9278_v62  ;;  %v9280_v60 = vpop.f32.mrf.mxu1  ;;  %v9283_v40 = vadd.f32 %v9273_v26, %v1631_v7  ;;  %v3479_v23 = vsel %vm66_vm0, %v9251_v12, 0.0  ;;  %v9290_v56 = vld [vmem:[%s11468_s1] ss:$0 sm:$0xff]  ;;  %v1601_v50 = vmul.f32 %v7026_v45, %v8535_v17  ;;  %v9301_v7 = vld [vmem:[%s11467_s0 + $0x3d8] sm:$0xff]  ;;  %v2495_v17 = vsel %vm66_vm0, %v2457_v24, 0.0 }
 0x22e   :  { %v9268_v27 = vpop.xlane.xlu0 %2322  ;;  %11734 = vst [vmem:[#allocation103_spill] sm:$0xff] %v9276_v52  ;;  %11736 = vst [vmem:[#allocation105_spill] sm:$0xff] %v9280_v60  ;;  %v1632_v21 = vmul.f32 %v9290_v56, %v1600_v20  ;;  %v2458_v9 = vmul.f32 %v9240_v34, %v9240_v34  ;;  %v9308_v20 = vsub.f32 %v7182_v39, %v2395_v10  ;;  %v9310_v8 = vpop.f32.mrf.mxu0 }
 0x22f   :  { %11737 = vst [vmem:[#allocation106_spill] sm:$0xff] %v9283_v40  ;;  %6607 = vmatmul.mubr.msk.f32.gmra.mxu0 %vm66_vm0, %v9276_v52  ;;  %6663 = vmatmul.mubr.msk.f32.gmra.mxu1 %vm66_vm0, %v9276_v52  ;;  %11738 = vst [vmem:[#allocation107_spill] sm:$0xff] %v9310_v8  ;;  %v9312_v6 = vpop.f32.mrf.mxu1  ;;  %v1633_v51 = vmul.f32 %v9290_v56, %v1601_v50  ;;  %v9340_v10 = vsub.f32 %v7183_v61, %v2396_v19 }
 0x230   :  { %11739 = vst [vmem:[#allocation108_spill] sm:$0xff] %v9312_v6  ;;  %6609 = vmatprep.mubr.msk.f32.mxu0 %vm66_vm0, %v9283_v40  ;;  %6665 = vmatprep.mubr.msk.f32.mxu1 %vm66_vm0, %v9283_v40  ;;  %v9320_v45 = vadd.f32 %v9273_v26, %v1632_v21  ;;  %v9331_v41 = vpop.f32.mrf.mxu0  ;;  %v3482_v21 = vsel %vm66_vm0, %v9301_v7, 0.0  ;;  %v2498_v50 = vsel %vm66_vm0, %v2458_v9, 0.0  ;;  %v2459_v60 = vmul.f32 %v9308_v20, %v9308_v20 }
 0x231   :  { %3480 = vadd.xlane.f32.xlu0 %v3479_v23  ;;  %v9326_v39 = vpop.xlane.xlu1 %2325  ;;  %2496 = vadd.xlane.f32.xlu1 %v2495_v17  ;;  %11741 = vst [vmem:[#allocation110_spill] sm:$0xff] %v9331_v41  ;;  %v9333_v24 = vpop.f32.mrf.mxu1  ;;  %v9347_v23 = vadd.f32 %v9273_v26, %v1633_v51  ;;  %v9353_v17 = vld [vmem:[%s11467_s0 + $0x3e0] sm:$0xff]  ;;  %v2397_v9 = vmul.f32 0.03125, %v9220_v37 }
 0x232   :  { %11740 = vst [vmem:[#allocation109_spill] sm:$0xff] %v9320_v45  ;;  %v9328_v30 = vpop.xlane.xlu0 %2328  ;;  %11742 = vst [vmem:[#allocation111_spill] sm:$0xff] %v9333_v24  ;;  %v9357_v19 = vpop.f32.mrf.mxu0  ;;  %v3485_v62 = vsel %vm66_vm0, %v9353_v17, 0.0  ;;  %v2460_v24 = vmul.f32 %v9340_v10, %v9340_v10  ;;  %v2501_v52 = vsel %vm66_vm0, %v2459_v60, 0.0 }
 0x233   :  { %6610 = vmatmul.mubr.msk.f32.gmra.mxu0 %vm66_vm0, %v9320_v45  ;;  %6666 = vmatmul.mubr.msk.f32.gmra.mxu1 %vm66_vm0, %v9320_v45  ;;  %11743 = vst [vmem:[#allocation112_spill] sm:$0xff] %v9347_v23  ;;  %11744 = vst [vmem:[#allocation113_spill] sm:$0xff] %v9357_v19  ;;  %v9359_v6 = vpop.f32.mrf.mxu1 }
 0x234   :  { %11745 = vst [vmem:[#allocation114_spill] sm:$0xff] %v9359_v6  ;;  %6612 = vmatprep.mubr.msk.f32.mxu0 %vm66_vm0, %v9347_v23  ;;  %6668 = vmatprep.mubr.msk.f32.mxu1 %vm66_vm0, %v9347_v23  ;;  %v9378_v37 = vpop.f32.mrf.mxu0  ;;  %v2398_v6 = vmul.f32 0.03125, %v2320_v14  ;;  %v7184_v14 = vld [vmem:[%s11467_s0 + $0x238] sm:$0xff]  ;;  %v2504_v19 = vsel %vm66_vm0, %v2460_v24, 0.0 }
 0x235   :  { %v2332_v61 = vpop.xlane.xlu1 %2331  ;;  %3483 = vadd.xlane.f32.xlu0 %v3482_v21  ;;  %2499 = vadd.xlane.f32.xlu1 %v2498_v50  ;;  %11746 = vst [vmem:[#allocation115_spill] sm:$0xff] %v9378_v37  ;;  %v9380_v8 = vpop.f32.mrf.mxu1  ;;  %v9397_v50 = vld [vmem:[%s11467_s0 + $0x3e8] sm:$0xff]  ;;  %v9402_v23 = vsub.f32 %v7184_v14, %v2397_v9  ;;  %v7185_v9 = vld [vmem:[%s11467_s0 + $0x240] sm:$0xff]  ;;  %v2400_v37 = vmul.f32 0.03125, %v9326_v39 }
 0x236   :  { %v9374_v42 = vpop.xlane.xlu0 %2334  ;;  %11747 = vst [vmem:[#allocation116_spill] sm:$0xff] %v9380_v8  ;;  %v9390_v51 = vpop.f32.mrf.mxu0  ;;  %v9418_v14 = vsub.f32 %v7185_v9, %v2398_v6  ;;  %v3488_v41 = vsel %vm66_vm0, %v9397_v50, 0.0  ;;  %v9451_v9 = vld [vmem:[%s11467_s0 + $0x3f8] sm:$0xff] }
 0x237   :  { %11748 = vst [vmem:[#allocation117_spill] sm:$0xff] %v9390_v51  ;;  %v9392_v21 = vpop.f32.mrf.mxu1  ;;  %v2461_v51 = vmul.f32 %v9402_v23, %v9402_v23  ;;  %v3494_v59 = vsel %vm66_vm0, %v9451_v9, 0.0  ;;  %v2403_v15 = vmul.f32 0.03125, %v9374_v42 }
 0x238   :  { %11749 = vst [vmem:[#allocation118_spill] sm:$0xff] %v9392_v21  ;;  %v9411_v45 = vpop.f32.mrf.mxu0  ;;  %v2462_v6 = vmul.f32 %v9418_v14, %v9418_v14 }
 0x239   :  { %v2338_v58 = vpop.xlane.xlu1 %2337  ;;  %3486 = vadd.xlane.f32.xlu0 %v3485_v62  ;;  %2502 = vadd.xlane.f32.xlu1 %v2501_v52  ;;  %11750 = vst [vmem:[#allocation119_spill] sm:$0xff] %v9411_v45  ;;  %v9413_v16 = vpop.f32.mrf.mxu1  ;;  %v9430_v52 = vld [vmem:[%s11467_s0 + $0x3f0] sm:$0xff]  ;;  %v2399_v62 = vmul.f32 0.03125, %v9268_v27  ;;  %v2507_v39 = vsel %vm66_vm0, %v2461_v51, 0.0 }
 0x23a   :  { %v9409_v40 = vpop.xlane.xlu0 %2340  ;;  %11751 = vst [vmem:[#allocation120_spill] sm:$0xff] %v9413_v16  ;;  %v9423_v60 = vpop.f32.mrf.mxu0  ;;  %v3491_v27 = vsel %vm66_vm0, %v9430_v52, 0.0 }
 0x23b   :  { %11752 = vst [vmem:[#allocation121_spill] sm:$0xff] %v9423_v60  ;;  %v9425_v21 = vpop.f32.mrf.mxu1  ;;  %v7187_v60 = vld [vmem:[%s11467_s0 + $0x250] sm:$0xff] }
 0x23c   :  { %11753 = vst [vmem:[#allocation122_spill] sm:$0xff] %v9425_v21  ;;  %v7186_v21 = vld [vmem:[%s11467_s0 + $0x248] sm:$0xff]  ;;  %v9466_v45 = vsub.f32 %v7187_v60, %v2400_v37  ;;  %v7188_v60 = vld [vmem:[%s11467_s0 + $0x258] sm:$0xff] }
 0x23d   :  { %v9437_v8 = vpop.xlane.xlu1 %2343  ;;  %3489 = vadd.xlane.f32.xlu0 %v3488_v41  ;;  %2505 = vadd.xlane.f32.xlu1 %v2504_v19  ;;  %v9456_v16 = vsub.f32 %v7186_v21, %v2399_v62  ;;  %v2510_v21 = vsel %vm66_vm0, %v2462_v6, 0.0  ;;  %v2401_v62 = vmul.f32 0.03125, %v9328_v30 }
 0x23e   :  { %v9439_v24 = vpop.xlane.xlu0 %2346  ;;  %v2464_v37 = vmul.f32 %v9466_v45, %v9466_v45 }
 0x23f   :  { %v9483_v6 = vsub.f32 %v7188_v60, %v2401_v62  ;;  %v2404_v60 = vmul.f32 0.03125, %v2338_v58  ;;  %v7191_v58 = vld [vmem:[%s11467_s0 + $0x270] sm:$0xff] }
 0x241   :  { %v9458_v41 = vpop.xlane.xlu1 %2349  ;;  %3492 = vadd.xlane.f32.xlu0 %v3491_v27  ;;  %2508 = vadd.xlane.f32.xlu1 %v2507_v39  ;;  %v2463_v27 = vmul.f32 %v9456_v16, %v9456_v16  ;;  %v2402_v39 = vmul.f32 0.03125, %v2332_v61 }
 0x242   :  { %v9461_v19 = vpop.xlane.xlu0 %2352 }
 0x243   :  { %v2513_v63 = vsel %vm66_vm0, %v2463_v27, 0.0  ;;  %v2465_v27 = vmul.f32 %v9483_v6, %v9483_v6 }
 0x245   :  { %v9472_v3 = vpop.xlane.xlu1 %2355  ;;  %3495 = vadd.xlane.f32.xlu0 %v3494_v59  ;;  %2511 = vadd.xlane.f32.xlu1 %v2510_v21  ;;  %v7189_v59 = vld [vmem:[%s11467_s0 + $0x260] sm:$0xff]  ;;  %v2516_v21 = vsel %vm66_vm0, %v2464_v37, 0.0  ;;  %v2519_v42 = vsel %vm66_vm0, %v2465_v27, 0.0  ;;  %v2405_v27 = vmul.f32 0.03125, %v9409_v40 }
 0x246   :  { %v9474_v51 = vpop.xlane.xlu0 %2358  ;;  %v9493_v61 = vsub.f32 %v7189_v59, %v2402_v39  ;;  %v7190_v39 = vld [vmem:[%s11467_s0 + $0x268] sm:$0xff] }
 0x247   :  { %v9508_v59 = vsub.f32 %v7190_v39, %v2403_v15  ;;  %v7192_v15 = vld [vmem:[%s11467_s0 + $0x2d0] sm:$0xff] }
 0x248   :  { %11754 = vst [vmem:[#allocation123_spill] sm:$0xff] %v9493_v61 }
 0x249   :  { %v9485_v30 = vpop.xlane.xlu1 %2361  ;;  %2514 = vadd.xlane.f32.xlu1 %v2513_v63  ;;  %v2466_v63 = vmul.f32 %v9493_v61, %v9493_v61  ;;  %11755 = vst [vmem:[#allocation124_spill] sm:$0xff] %v9508_v59  ;;  %v2408_v61 = vmul.f32 0.03125, %v9458_v41 }
 0x24a   :  { %v9488_v1 = vpop.xlane.xlu0 %2364 }
 0x24b   :  { %v2522_v44 = vsel %vm66_vm0, %v2466_v63, 0.0  ;;  %v2406_v63 = vmul.f32 0.03125, %v9437_v8 }
 0x24d   :  { %v9497_v54 = vpop.xlane.xlu1 %2367  ;;  %2517 = vadd.xlane.f32.xlu1 %v2516_v21  ;;  %v9516_v21 = vsub.f32 %v7191_v58, %v2404_v60 }
 0x24e   :  { %v9499_v62 = vpop.xlane.xlu0 %2370 }
 0x24f   :  { %11756 = vst [vmem:[#allocation125_spill] sm:$0xff] %v9516_v21  ;;  %v2468_v58 = vmul.f32 %v9516_v21, %v9516_v21 }
 0x251   :  { %v2374_v37 = vpop.xlane.xlu1 %2373  ;;  %2520 = vadd.xlane.f32.xlu1 %v2519_v42 }
 0x252   :  { %v9511_v46 = vpop.xlane.xlu0 %2376  ;;  %v2416_v36 = vmul.f32 0.03125, %v2374_v37  ;;  %v2467_v37 = vmul.f32 %v9508_v59, %v9508_v59 }
 0x254   :  { %v9522_v39 = vsub.f32 %v7192_v15, %v2416_v36  ;;  %v7193_v36 = vld [vmem:[%s11467_s0 + $0x2e0] sm:$0xff]  ;;  %v2525_v8 = vsel %vm66_vm0, %v2467_v37, 0.0 }
 0x255   :  { %v2380_v28 = vpop.xlane.xlu1 %2379  ;;  %2523 = vadd.xlane.f32.xlu1 %v2522_v44 }
 0x256   :  { %11757 = vst [vmem:[#allocation126_spill] sm:$0xff] %v9522_v39  ;;  %v9525_v43 = vpop.xlane.xlu0 %2382  ;;  %v2418_v42 = vmul.f32 0.03125, %v2380_v28  ;;  %v2480_v60 = vmul.f32 %v9522_v39, %v9522_v39  ;;  %v7194_v28 = vld [vmem:[%s11467_s0 + $0x278] sm:$0xff] }
 0x257   :  { %v9543_v44 = vsub.f32 %v7194_v28, %v2405_v27  ;;  %v2528_v27 = vsel %vm66_vm0, %v2468_v58, 0.0  ;;  %v2407_v28 = vmul.f32 0.03125, %v9439_v24  ;;  %v7197_v24 = vld [vmem:[%s11467_s0 + $0x300] sm:$0xff] }
 0x258   :  { %v9537_v40 = vsub.f32 %v7193_v36, %v2418_v42  ;;  %v2564_v15 = vsel %vm66_vm0, %v2480_v60, 0.0  ;;  %v7195_v60 = vld [vmem:[%s11467_s0 + $0x280] sm:$0xff] }
 0x259   :  { %11759 = vst [vmem:[#allocation128_spill] sm:$0xff] %v9543_v44  ;;  %v2386_v39 = vpop.xlane.xlu1 %2385  ;;  %2565 = vadd.xlane.f32.xlu0 %v2564_v15  ;;  %2526 = vadd.xlane.f32.xlu1 %v2525_v8  ;;  %v9553_v36 = vsub.f32 %v7195_v60, %v2406_v63  ;;  %v7196_v15 = vld [vmem:[%s11467_s0 + $0x2f0] sm:$0xff]  ;;  %v2469_v63 = vmul.f32 %v9543_v44, %v9543_v44  ;;  %v2410_v44 = vmul.f32 0.03125, %v9472_v3 }
 0x25a   :  { %11758 = vst [vmem:[#allocation127_spill] sm:$0xff] %v9537_v40  ;;  %v9546_v59 = vpop.xlane.xlu0 %2388  ;;  %v2420_v21 = vmul.f32 0.03125, %v2386_v39  ;;  %v2482_v42 = vmul.f32 %v9537_v40, %v9537_v40 }
 0x25b   :  { %11760 = vst [vmem:[#allocation129_spill] sm:$0xff] %v9553_v36  ;;  %v2531_v41 = vsel %vm66_vm0, %v2469_v63, 0.0 }
 0x25c   :  { %v9559_v37 = vsub.f32 %v7196_v15, %v2420_v21  ;;  %v2570_v39 = vsel %vm66_vm0, %v2482_v42, 0.0  ;;  %v2470_v21 = vmul.f32 %v9553_v36, %v9553_v36 }
 0x25d   :  { %v3403_v8 = vpop.xlane.xlu1 %3402  ;;  %2571 = vadd.xlane.f32.xlu0 %v2570_v39  ;;  %2529 = vadd.xlane.f32.xlu1 %v2528_v27  ;;  %v7198_v27 = vld [vmem:[%s11467_s0 + $0x288] sm:$0xff] }
 0x25e   :  { %11761 = vst [vmem:[#allocation130_spill] sm:$0xff] %v9559_v37  ;;  %v9563_v40 = vpop.xlane.xlu0 %3405  ;;  %v3497_v60 = vmul.f32 0.03125, %v3403_v8  ;;  %v2484_v58 = vmul.f32 %v9559_v37, %v9559_v37  ;;  %v9581_v39 = vsub.f32 %v7198_v27, %v2407_v28  ;;  %v2534_v28 = vsel %vm66_vm0, %v2470_v21, 0.0 }
 0x260   :  { %v9575_v42 = vsub.f32 %v7197_v24, %v3497_v60  ;;  %v2576_v15 = vsel %vm66_vm0, %v2484_v58, 0.0  ;;  %11763 = vst [vmem:[#allocation132_spill] sm:$0xff] %v9581_v39  ;;  %v7199_v58 = vld [vmem:[%s11467_s0 + $0x290] sm:$0xff] }
 0x261   :  { %v3409_v8 = vpop.xlane.xlu1 %3408  ;;  %2577 = vadd.xlane.f32.xlu0 %v2576_v15  ;;  %2532 = vadd.xlane.f32.xlu1 %v2531_v41  ;;  %v9591_v24 = vsub.f32 %v7199_v58, %v2408_v61  ;;  %v7200_v15 = vld [vmem:[%s11467_s0 + $0x310] sm:$0xff]  ;;  %v2471_v61 = vmul.f32 %v9581_v39, %v9581_v39 }
 0x262   :  { %11762 = vst [vmem:[#allocation131_spill] sm:$0xff] %v9575_v42  ;;  %v9584_v37 = vpop.xlane.xlu0 %3411  ;;  %v3499_v36 = vmul.f32 0.03125, %v3409_v8  ;;  %v3561_v60 = vmul.f32 %v9575_v42, %v9575_v42  ;;  %v2409_v8 = vmul.f32 0.03125, %v9461_v19  ;;  %v7201_v19 = vld [vmem:[%s11467_s0 + $0x320] sm:$0xff] }
 0x263   :  { %11764 = vst [vmem:[#allocation133_spill] sm:$0xff] %v9591_v24  ;;  %v2537_v3 = vsel %vm66_vm0, %v2471_v61, 0.0  ;;  %v7204_v61 = vld [vmem:[%s11467_s0 + $0x330] sm:$0xff] }
 0x264   :  { %v9597_v63 = vsub.f32 %v7200_v15, %v3499_v36  ;;  %v3593_v27 = vsel %vm66_vm0, %v3561_v60, 0.0  ;;  %v2472_v36 = vmul.f32 %v9591_v24, %v9591_v24 }
 0x265   :  { %v3415_v41 = vpop.xlane.xlu1 %3414  ;;  %3594 = vadd.xlane.f32.xlu0 %v3593_v27  ;;  %2535 = vadd.xlane.f32.xlu1 %v2534_v28  ;;  %v7202_v28 = vld [vmem:[%s11467_s0 + $0x298] sm:$0xff] }
 0x266   :  { %11765 = vst [vmem:[#allocation134_spill] sm:$0xff] %v9597_v63  ;;  %v9601_v42 = vpop.xlane.xlu0 %3417  ;;  %v3501_v58 = vmul.f32 0.03125, %v3415_v41  ;;  %v3563_v21 = vmul.f32 %v9597_v63, %v9597_v63  ;;  %v9619_v27 = vsub.f32 %v7202_v28, %v2409_v8  ;;  %v2540_v8 = vsel %vm66_vm0, %v2472_v36, 0.0 }
 0x267   :  { %v2412_v36 = vmul.f32 0.03125, %v9485_v30  ;;  %v7206_v30 = vld [vmem:[%s11467_s0 + $0x2b0] sm:$0xff] }
 0x268   :  { %v9613_v60 = vsub.f32 %v7201_v19, %v3501_v58  ;;  %v3599_v15 = vsel %vm66_vm0, %v3563_v21, 0.0  ;;  %v7203_v21 = vld [vmem:[%s11467_s0 + $0x2a0] sm:$0xff] }
 0x269   :  { %v1474_v41 = vpop.xlane.xlu1 %1473  ;;  %3600 = vadd.xlane.f32.xlu0 %v3599_v15  ;;  %2538 = vadd.xlane.f32.xlu1 %v2537_v3  ;;  %v9627_v19 = vsub.f32 %v7203_v21, %v2410_v44  ;;  %v2473_v44 = vmul.f32 %v9619_v27, %v9619_v27 }
 0x26a   :  { %11766 = vst [vmem:[#allocation135_spill] sm:$0xff] %v9613_v60  ;;  %v3421_v63 = vpop.xlane.xlu0 %3420  ;;  %v1506_v24 = vmul.f32 0.03125, %v1474_v41  ;;  %v3565_v58 = vmul.f32 %v9613_v60, %v9613_v60  ;;  %v2411_v41 = vmul.f32 0.03125, %v9474_v51  ;;  %v7205_v51 = vld [vmem:[%s11467_s0 + $0x2a8] sm:$0xff] }
 0x26b   :  { %v3503_v39 = vmul.f32 0.03125, %v3421_v63 }
 0x26c   :  { %v1538_v28 = vadd.f32 1e-05, %v1506_v24  ;;  %v3605_v63 = vsel %vm66_vm0, %v3565_v58, 0.0  ;;  %v9650_v21 = vsub.f32 %v7205_v51, %v2411_v41 }
 0x26d   :  { %v9633_v15 = vsub.f32 %v7204_v61, %v3503_v39  ;;  %3606 = vadd.xlane.f32.xlu0 %v3605_v63  ;;  %2541 = vadd.xlane.f32.xlu1 %v2540_v8  ;;  %v2474_v39 = vmul.f32 %v9627_v19, %v9627_v19  ;;  %v2543_v61 = vsel %vm66_vm0, %v2473_v44, 0.0  ;;  %v9656_v63 = vsub.f32 %v7206_v30, %v2412_v36 }
 0x26e   :  { %v9637_v3 = vpop.xlane.xlu0 %3423  ;;  %7027 = vrsqrt.f32 %v1538_v28  ;;  %v2413_v44 = vmul.f32 0.03125, %v9488_v1  ;;  %v2475_v51 = vmul.f32 %v9650_v21, %v9650_v21  ;;  %v7208_v1 = vld [vmem:[%s11467_s0 + $0x2b8] sm:$0xff] }
 0x26f   :  { %11767 = vst [vmem:[#allocation136_spill] sm:$0xff] %v9633_v15  ;;  %v3567_v24 = vmul.f32 %v9633_v15, %v9633_v15  ;;  %v7207_v15 = vld [vmem:[%s11467_s0 + $0x340] sm:$0xff] }
 0x271   :  { %v3611_v58 = vsel %vm66_vm0, %v3567_v24, 0.0  ;;  %2544 = vadd.xlane.f32.xlu1 %v2543_v61  ;;  %v2546_v24 = vsel %vm66_vm0, %v2474_v39, 0.0  ;;  %v2414_v61 = vmul.f32 0.03125, %v9497_v54  ;;  %v2476_v39 = vmul.f32 %v9656_v63, %v9656_v63  ;;  %v7209_v54 = vld [vmem:[%s11467_s0 + $0x2c0] sm:$0xff] }
 0x272   :  { %3612 = vadd.xlane.f32.xlu0 %v3611_v58  ;;  %v3427_v8 = vpop.xlane.xlu0 %3426 }
 0x273   :  { %v3505_v28 = vmul.f32 0.03125, %v3427_v8  ;;  %v9684_v60 = vsub.f32 %v7209_v54, %v2414_v61 }
 0x275   :  { %v9662_v41 = vsub.f32 %v7207_v15, %v3505_v28  ;;  %2547 = vadd.xlane.f32.xlu1 %v2546_v24  ;;  %v9678_v15 = vsub.f32 %v7208_v1, %v2413_v44  ;;  %v2549_v28 = vsel %vm66_vm0, %v2475_v51, 0.0  ;;  %v7210_v44 = vld [vmem:[%s11467_s0 + $0x350] sm:$0xff]  ;;  %v2478_v54 = vmul.f32 %v9684_v60, %v9684_v60 }
 0x276   :  { %v9665_v58 = vpop.xlane.xlu0 %3429 }
 0x277   :  { %11768 = vst [vmem:[#allocation137_spill] sm:$0xff] %v9662_v41  ;;  %v3569_v36 = vmul.f32 %v9662_v41, %v9662_v41 }
 0x279   :  { %v3617_v8 = vsel %vm66_vm0, %v3569_v36, 0.0  ;;  %2550 = vadd.xlane.f32.xlu1 %v2549_v28  ;;  %v2552_v36 = vsel %vm66_vm0, %v2476_v39, 0.0 }
 0x27a   :  { %3618 = vadd.xlane.f32.xlu0 %v3617_v8  ;;  %v3433_v30 = vpop.xlane.xlu0 %3432  ;;  %v2415_v8 = vmul.f32 0.03125, %v9499_v62  ;;  %v7211_v62 = vld [vmem:[%s11467_s0 + $0x2c8] sm:$0xff] }
 0x27b   :  { %v3507_v24 = vmul.f32 0.03125, %v3433_v30  ;;  %v7028_v41 = vpop.eup %7027  ;;  %v2477_v30 = vmul.f32 %v9678_v15, %v9678_v15 }
 0x27c   :  { %v1602_v51 = vmul.f32 %v7028_v41, %v8844_v4  ;;  %v9710_v41 = vsub.f32 %v7211_v62, %v2415_v8  ;;  %v7212_v8 = vld [vmem:[%s11467_s0 + $0x360] sm:$0xff] }
 0x27d   :  { %v9690_v1 = vsub.f32 %v7210_v44, %v3507_v24  ;;  %2553 = vadd.xlane.f32.xlu1 %v2552_v36  ;;  %v2417_v36 = vmul.f32 0.03125, %v9511_v46  ;;  %v2555_v44 = vsel %vm66_vm0, %v2477_v30, 0.0  ;;  %v7213_v46 = vld [vmem:[%s11467_s0 + $0x2d8] sm:$0xff] }
 0x27e   :  { %v9694_v28 = vpop.xlane.xlu0 %3435  ;;  %v1634_v39 = vmul.f32 %v9290_v56, %v1602_v51  ;;  %11770 = vst [vmem:[#allocation139_spill] sm:$0xff] %v9710_v41 }
 0x27f   :  { %11769 = vst [vmem:[#allocation138_spill] sm:$0xff] %v9690_v1  ;;  %v3571_v61 = vmul.f32 %v9690_v1, %v9690_v1  ;;  %v9727_v30 = vsub.f32 %v7213_v46, %v2417_v36  ;;  %v2421_v36 = vmul.f32 0.03125, %v9546_v59 }
 0x280   :  { %v9705_v4 = vadd.f32 %v9273_v26, %v1634_v39 }
 0x281   :  { %v3623_v24 = vsel %vm66_vm0, %v3571_v61, 0.0  ;;  %2556 = vadd.xlane.f32.xlu1 %v2555_v44  ;;  %v2558_v61 = vsel %vm66_vm0, %v2478_v54, 0.0  ;;  %v2479_v44 = vmul.f32 %v9710_v41, %v9710_v41 }
 0x282   :  { %3624 = vadd.xlane.f32.xlu0 %v3623_v24  ;;  %v3439_v51 = vpop.xlane.xlu0 %3438  ;;  %6613 = vmatmul.mubr.msk.f32.gmra.mxu0 %vm66_vm0, %v9705_v4  ;;  %v2419_v24 = vmul.f32 0.03125, %v9525_v43 }
 0x283   :  { %v3509_v1 = vmul.f32 0.03125, %v3439_v51  ;;  %6669 = vmatmul.mubr.msk.f32.gmra.mxu1 %vm66_vm0, %v9705_v4  ;;  %v7214_v51 = vld [vmem:[%s11467_s0 + $0x2e8] sm:$0xff]  ;;  %v2561_v43 = vsel %vm66_vm0, %v2479_v44, 0.0  ;;  %v3498_v44 = vmul.f32 0.03125, %v9563_v40  ;;  %v3500_v40 = vmul.f32 0.03125, %v9584_v37 }
 0x285   :  { %v9722_v39 = vsub.f32 %v7212_v8, %v3509_v1  ;;  %2559 = vadd.xlane.f32.xlu1 %v2558_v61  ;;  %v9740_v8 = vsub.f32 %v7214_v51, %v2419_v24  ;;  %v2481_v61 = vmul.f32 %v9727_v30, %v9727_v30  ;;  %v7216_v24 = vld [vmem:[%s11467_s0 + $0x2f8] sm:$0xff] }
 0x286   :  { %v9730_v62 = vpop.xlane.xlu0 %3441  ;;  %v9754_v59 = vsub.f32 %v7216_v24, %v2421_v36  ;;  %v7217_v36 = vld [vmem:[%s11467_s0 + $0x308] sm:$0xff] }
 0x287   :  { %11771 = vst [vmem:[#allocation140_spill] sm:$0xff] %v9722_v39  ;;  %v3573_v54 = vmul.f32 %v9722_v39, %v9722_v39  ;;  %11772 = vst [vmem:[#allocation141_spill] sm:$0xff] %v9740_v8 }
 0x289   :  { %v3629_v1 = vsel %vm66_vm0, %v3573_v54, 0.0  ;;  %2562 = vadd.xlane.f32.xlu1 %v2561_v43  ;;  %v7215_v54 = vld [vmem:[%s11467_s0 + $0x370] sm:$0xff]  ;;  %v2483_v43 = vmul.f32 %v9740_v8, %v9740_v8 }
 0x28a   :  { %3630 = vadd.xlane.f32.xlu0 %v3629_v1  ;;  %v3445_v46 = vpop.xlane.xlu0 %3444  ;;  %v2567_v1 = vsel %vm66_vm0, %v2481_v61, 0.0 }
 0x28b   :  { %v3511_v41 = vmul.f32 0.03125, %v3445_v46  ;;  %v2573_v61 = vsel %vm66_vm0, %v2483_v43, 0.0  ;;  %v3502_v43 = vmul.f32 0.03125, %v9601_v42  ;;  %v3504_v42 = vmul.f32 0.03125, %v9637_v3 }
 0x28d   :  { %v9749_v39 = vsub.f32 %v7215_v54, %v3511_v41  ;;  %2568 = vadd.xlane.f32.xlu1 %v2567_v1  ;;  %v9768_v54 = vsub.f32 %v7217_v36, %v3498_v44  ;;  %v2485_v1 = vmul.f32 %v9754_v59, %v9754_v59  ;;  %v7219_v44 = vld [vmem:[%s11467_s0 + $0x318] sm:$0xff] }
 0x28e   :  { %v9758_v51 = vpop.xlane.xlu0 %3447  ;;  %v9782_v37 = vsub.f32 %v7219_v44, %v3500_v40 }
 0x28f   :  { %11773 = vst [vmem:[#allocation142_spill] sm:$0xff] %v9749_v39  ;;  %v3575_v41 = vmul.f32 %v9749_v39, %v9749_v39  ;;  %11774 = vst [vmem:[#allocation143_spill] sm:$0xff] %v9768_v54 }
 0x290   :  { %11776 = vst [vmem:[#allocation145_spill] sm:$0xff] %v9782_v37 }
 0x291   :  { %v3635_v46 = vsel %vm66_vm0, %v3575_v41, 0.0  ;;  %2574 = vadd.xlane.f32.xlu1 %v2573_v61  ;;  %v7218_v41 = vld [vmem:[%s11467_s0 + $0x380] sm:$0xff]  ;;  %v3562_v61 = vmul.f32 %v9768_v54, %v9768_v54 }
 0x292   :  { %3636 = vadd.xlane.f32.xlu0 %v3635_v46  ;;  %v3451_v24 = vpop.xlane.xlu0 %3450  ;;  %v2579_v46 = vsel %vm66_vm0, %v2485_v1, 0.0 }
 0x293   :  { %v3513_v8 = vmul.f32 0.03125, %v3451_v24  ;;  %v3596_v1 = vsel %vm66_vm0, %v3562_v61, 0.0  ;;  %v3506_v61 = vmul.f32 0.03125, %v9665_v58  ;;  %v3508_v58 = vmul.f32 0.03125, %v9694_v28  ;;  %v7225_v28 = vld [vmem:[%s11467_s0 + $0x358] sm:$0xff] }
 0x295   :  { %v9777_v39 = vsub.f32 %v7218_v41, %v3513_v8  ;;  %2580 = vadd.xlane.f32.xlu1 %v2579_v46  ;;  %v7220_v41 = vld [vmem:[%s11467_s0 + $0x328] sm:$0xff]  ;;  %v3564_v46 = vmul.f32 %v9782_v37, %v9782_v37 }
 0x296   :  { %v3454_v36 = vpop.xlane.xlu0 %3453  ;;  %v9794_v40 = vsub.f32 %v7220_v41, %v3502_v43  ;;  %v7222_v43 = vld [vmem:[%s11467_s0 + $0x338] sm:$0xff] }
 0x297   :  { %11775 = vst [vmem:[#allocation144_spill] sm:$0xff] %v9777_v39  ;;  %v3577_v24 = vmul.f32 %v9777_v39, %v9777_v39  ;;  %v9808_v3 = vsub.f32 %v7222_v43, %v3504_v42 }
 0x298   :  { %11777 = vst [vmem:[#allocation146_spill] sm:$0xff] %v9794_v40 }
 0x299   :  { %v3641_v8 = vsel %vm66_vm0, %v3577_v24, 0.0  ;;  %3597 = vadd.xlane.f32.xlu1 %v3596_v1  ;;  %v7221_v24 = vld [vmem:[%s11467_s0 + $0x390] sm:$0xff]  ;;  %v3566_v1 = vmul.f32 %v9794_v40, %v9794_v40 }
 0x29a   :  { %3642 = vadd.xlane.f32.xlu0 %v3641_v8  ;;  %v3457_v44 = vpop.xlane.xlu0 %3456  ;;  %v3602_v8 = vsel %vm66_vm0, %v3564_v46, 0.0 }
 0x29b   :  { %v3515_v54 = vmul.f32 0.03125, %v3457_v44  ;;  %v3608_v46 = vsel %vm66_vm0, %v3566_v1, 0.0 }
 0x29d   :  { %v9803_v39 = vsub.f32 %v7221_v24, %v3515_v54  ;;  %3603 = vadd.xlane.f32.xlu1 %v3602_v8  ;;  %v7223_v24 = vld [vmem:[%s11467_s0 + $0x348] sm:$0xff]  ;;  %v3568_v8 = vmul.f32 %v9808_v3, %v9808_v3 }
 0x29e   :  { %v3460_v41 = vpop.xlane.xlu0 %3459  ;;  %v9820_v42 = vsub.f32 %v7223_v24, %v3506_v61  ;;  %v9835_v61 = vsub.f32 %v7225_v28, %v3508_v58  ;;  %v3512_v58 = vmul.f32 0.03125, %v9758_v51 }
 0x29f   :  { %11778 = vst [vmem:[#allocation147_spill] sm:$0xff] %v9803_v39  ;;  %v3579_v44 = vmul.f32 %v9803_v39, %v9803_v39  ;;  %v3510_v39 = vmul.f32 0.03125, %v9730_v62  ;;  %v3614_v1 = vsel %vm66_vm0, %v3568_v8, 0.0 }
 0x2a0   :  { %11779 = vst [vmem:[#allocation148_spill] sm:$0xff] %v9820_v42  ;;  %11781 = vst [vmem:[#allocation150_spill] sm:$0xff] %v9835_v61  ;;  %v3570_v24 = vmul.f32 %v9820_v42, %v9820_v42  ;;  %v3572_v28 = vmul.f32 %v9835_v61, %v9835_v61 }
 0x2a1   :  { %v3647_v54 = vsel %vm66_vm0, %v3579_v44, 0.0  ;;  %3609 = vadd.xlane.f32.xlu1 %v3608_v46  ;;  %v7224_v44 = vld [vmem:[%s11467_s0 + $0x3a0] sm:$0xff] }
 0x2a2   :  { %3648 = vadd.xlane.f32.xlu0 %v3647_v54  ;;  %v3463_v43 = vpop.xlane.xlu0 %3462  ;;  %v3620_v8 = vsel %vm66_vm0, %v3570_v24, 0.0  ;;  %v3514_v24 = vmul.f32 0.03125, %v3454_v36  ;;  %v3516_v36 = vmul.f32 0.03125, %v3460_v41 }
 0x2a3   :  { %v3517_v40 = vmul.f32 0.03125, %v3463_v43 }
 0x2a5   :  { %v9830_v37 = vsub.f32 %v7224_v44, %v3517_v40  ;;  %3615 = vadd.xlane.f32.xlu1 %v3614_v1  ;;  %v7226_v40 = vld [vmem:[%s11467_s0 + $0x368] sm:$0xff] }
 0x2a6   :  { %v3466_v54 = vpop.xlane.xlu0 %3465  ;;  %v9845_v46 = vsub.f32 %v7226_v40, %v3510_v39  ;;  %v3626_v40 = vsel %vm66_vm0, %v3572_v28, 0.0 }
 0x2a7   :  { %11780 = vst [vmem:[#allocation149_spill] sm:$0xff] %v9830_v37  ;;  %v3581_v62 = vmul.f32 %v9830_v37, %v9830_v37  ;;  %v3518_v42 = vmul.f32 0.03125, %v3466_v54 }
 0x2a8   :  { %11782 = vst [vmem:[#allocation151_spill] sm:$0xff] %v9845_v46  ;;  %v3574_v39 = vmul.f32 %v9845_v46, %v9845_v46  ;;  %v7228_v46 = vld [vmem:[%s11467_s0 + $0x388] sm:$0xff] }
 0x2a9   :  { %v3653_v43 = vsel %vm66_vm0, %v3581_v62, 0.0  ;;  %3621 = vadd.xlane.f32.xlu1 %v3620_v8  ;;  %v7227_v62 = vld [vmem:[%s11467_s0 + $0x378] sm:$0xff] }
 0x2aa   :  { %3654 = vadd.xlane.f32.xlu0 %v3653_v43  ;;  %v3469_v44 = vpop.xlane.xlu0 %3468  ;;  %v9860_v51 = vsub.f32 %v7227_v62, %v3512_v58  ;;  %v9870_v58 = vsub.f32 %v7228_v46, %v3514_v24  ;;  %v7229_v46 = vld [vmem:[%s11467_s0 + $0x398] sm:$0xff] }
 0x2ab   :  { %v3519_v1 = vmul.f32 0.03125, %v3469_v44  ;;  %v3632_v44 = vsel %vm66_vm0, %v3574_v39, 0.0  ;;  %v9880_v41 = vsub.f32 %v7229_v46, %v3516_v36 }
 0x2ac   :  { %11784 = vst [vmem:[#allocation153_spill] sm:$0xff] %v9870_v58 }
 0x2ad   :  { %v9853_v37 = vsub.f32 %v9076_v25, %v3519_v1  ;;  %3627 = vadd.xlane.f32.xlu1 %v3626_v40  ;;  %v3576_v40 = vmul.f32 %v9860_v51, %v9860_v51  ;;  %v3580_v46 = vmul.f32 %v9880_v41, %v9880_v41 }
 0x2ae   :  { %v3472_v43 = vpop.xlane.xlu0 %3471  ;;  %v2488_v61 = vpop.xlane.xlu1 %2487 }
 0x2af   :  { %11783 = vst [vmem:[#allocation152_spill] sm:$0xff] %v9853_v37  ;;  %v3583_v8 = vmul.f32 %v9853_v37, %v9853_v37  ;;  %v2582_v25 = vmul.f32 0.03125, %v2488_v61 }
 0x2b1   :  { %v3659_v1 = vsel %vm66_vm0, %v3583_v8, 0.0  ;;  %v2614_v62 = vadd.f32 1e-05, %v2582_v25  ;;  %3633 = vadd.xlane.f32.xlu1 %v3632_v44  ;;  %v3638_v25 = vsel %vm66_vm0, %v3576_v40, 0.0  ;;  %v3578_v44 = vmul.f32 %v9870_v58, %v9870_v58 }
 0x2b2   :  { %3660 = vadd.xlane.f32.xlu0 %v3659_v1  ;;  %v3475_v28 = vpop.xlane.xlu0 %3474  ;;  %v2491_v61 = vpop.xlane.xlu1 %2490 }
 0x2b3   :  { %v3521_v37 = vmul.f32 0.03125, %v3475_v28  ;;  %7029 = vrsqrt.f32 %v2614_v62  ;;  %v2583_v39 = vmul.f32 0.03125, %v2491_v61  ;;  %v3520_v28 = vmul.f32 0.03125, %v3472_v43 }
 0x2b5   :  { %v9875_v8 = vsub.f32 %v9138_v55, %v3521_v37  ;;  %v2615_v24 = vadd.f32 1e-05, %v2583_v39  ;;  %3639 = vadd.xlane.f32.xlu1 %v3638_v25  ;;  %v7230_v37 = vld [vmem:[%s11467_s0 + $0x3a8] sm:$0xff]  ;;  %v3644_v39 = vsel %vm66_vm0, %v3578_v44, 0.0  ;;  %v9897_v58 = vsub.f32 %v9100_v35, %v3520_v28 }
 0x2b6   :  { %v3478_v1 = vpop.xlane.xlu0 %3477  ;;  %v2494_v62 = vpop.xlane.xlu1 %2493  ;;  %v9890_v36 = vsub.f32 %v7230_v37, %v3518_v42 }
 0x2b7   :  { %11785 = vst [vmem:[#allocation154_spill] sm:$0xff] %v9875_v8  ;;  %v3585_v54 = vmul.f32 %v9875_v8, %v9875_v8  ;;  %7031 = vrsqrt.f32 %v2615_v24  ;;  %v2584_v55 = vmul.f32 0.03125, %v2494_v62  ;;  %11786 = vst [vmem:[#allocation155_spill] sm:$0xff] %v9897_v58  ;;  %v3522_v43 = vmul.f32 0.03125, %v3478_v1 }
 0x2b8   :  { %v3582_v42 = vmul.f32 %v9890_v36, %v9890_v36  ;;  %v3584_v1 = vmul.f32 %v9897_v58, %v9897_v58 }
 0x2b9   :  { %v3665_v40 = vsel %vm66_vm0, %v3585_v54, 0.0  ;;  %v2616_v61 = vadd.f32 1e-05, %v2584_v55  ;;  %3645 = vadd.xlane.f32.xlu1 %v3644_v39  ;;  %v3650_v55 = vsel %vm66_vm0, %v3580_v46, 0.0 }
 0x2ba   :  { %3666 = vadd.xlane.f32.xlu0 %v3665_v40  ;;  %v3481_v25 = vpop.xlane.xlu0 %3480  ;;  %v2497_v24 = vpop.xlane.xlu1 %2496  ;;  %v3656_v28 = vsel %vm66_vm0, %v3582_v42, 0.0  ;;  %v3662_v58 = vsel %vm66_vm0, %v3584_v1, 0.0 }
 0x2bb   :  { %7033 = vrsqrt.f32 %v2616_v61  ;;  %v3523_v62 = vmul.f32 0.03125, %v3481_v25  ;;  %v2585_v8 = vmul.f32 0.03125, %v2497_v24 }
 0x2bd   :  { %v9902_v54 = vsub.f32 %v9251_v12, %v3523_v62  ;;  %v2617_v44 = vadd.f32 1e-05, %v2585_v8  ;;  %3651 = vadd.xlane.f32.xlu1 %v3650_v55  ;;  %v9911_v12 = vsub.f32 %v9211_v48, %v3522_v43 }
 0x2be   :  { %v3484_v37 = vpop.xlane.xlu0 %3483  ;;  %v2500_v40 = vpop.xlane.xlu1 %2499 }
 0x2bf   :  { %11787 = vst [vmem:[#allocation156_spill] sm:$0xff] %v9902_v54  ;;  %7035 = vrsqrt.f32 %v2617_v44  ;;  %v3587_v61 = vmul.f32 %v9902_v54, %v9902_v54  ;;  %v2586_v35 = vmul.f32 0.03125, %v2500_v40  ;;  %v3524_v8 = vmul.f32 0.03125, %v3484_v37 }
 0x2c0   :  { %v7030_v39 = vpop.eup %7029  ;;  %v3586_v37 = vmul.f32 %v9911_v12, %v9911_v12 }
 0x2c1   :  { %v3671_v46 = vsel %vm66_vm0, %v3587_v61, 0.0  ;;  %v2678_v25 = vmul.f32 %v7030_v39, %v9123_v11  ;;  %v2618_v24 = vadd.f32 1e-05, %v2586_v35  ;;  %3657 = vadd.xlane.f32.xlu1 %v3656_v28  ;;  %v9919_v43 = vsub.f32 %v9301_v7, %v3524_v8 }
 0x2c2   :  { %3672 = vadd.xlane.f32.xlu0 %v3671_v46  ;;  %v3487_v62 = vpop.xlane.xlu0 %3486  ;;  %v2503_v44 = vpop.xlane.xlu1 %2502 }
 0x2c3   :  { %v2710_v55 = vmul.f32 %v9290_v56, %v2678_v25  ;;  %7037 = vrsqrt.f32 %v2618_v24  ;;  %v3525_v42 = vmul.f32 0.03125, %v3487_v62  ;;  %v2587_v54 = vmul.f32 0.03125, %v2503_v44 }
 0x2c4   :  { %v7032_v40 = vpop.eup %7031  ;;  %v3588_v46 = vmul.f32 %v9919_v43, %v9919_v43 }
 0x2c5   :  { %v2679_v48 = vmul.f32 %v7032_v40, %v9141_v0  ;;  %v9922_v11 = vadd.f32 %v9273_v26, %v2710_v55  ;;  %v9927_v61 = vsub.f32 %v9353_v17, %v3525_v42  ;;  %v2619_v39 = vadd.f32 1e-05, %v2587_v54  ;;  %3663 = vadd.xlane.f32.xlu1 %v3662_v58 }
 0x2c6   :  { %v3490_v28 = vpop.xlane.xlu0 %3489  ;;  %v2506_v1 = vpop.xlane.xlu1 %2505  ;;  %v3668_v54 = vsel %vm66_vm0, %v3586_v37, 0.0 }
 0x2c7   :  { %v2711_v35 = vmul.f32 %v9290_v56, %v2679_v48  ;;  %6679 = vmatprep.mubr.msk.f32.mxu0 %vm66_vm0, %v9922_v11  ;;  %6735 = vmatprep.mubr.msk.f32.mxu1 %vm66_vm0, %v9922_v11  ;;  %7039 = vrsqrt.f32 %v2619_v39  ;;  %v3526_v7 = vmul.f32 0.03125, %v3490_v28  ;;  %v2588_v8 = vmul.f32 0.03125, %v2506_v1 }
 0x2c8   :  { %v7034_v0 = vpop.eup %7033  ;;  %v3589_v17 = vmul.f32 %v9927_v61, %v9927_v61 }
 0x2c9   :  { %v9938_v58 = vadd.f32 %v9273_v26, %v2711_v35  ;;  %v2680_v25 = vmul.f32 %v7034_v0, %v9172_v38  ;;  %v9944_v24 = vsub.f32 %v9397_v50, %v3526_v7  ;;  %v2620_v62 = vadd.f32 1e-05, %v2588_v8  ;;  %3669 = vadd.xlane.f32.xlu1 %v3668_v54  ;;  %v7231_v38 = vld [vmem:[%s11470_s3 + $0x18] sm:$0xff]  ;;  %v7232_v0 = vld [vmem:[%s11470_s3 + $0x10] sm:$0xff] }
 0x2ca   :  { %v3677_v44 = vsel %vm66_vm0, %v3589_v17, 0.0  ;;  %v3493_v55 = vpop.xlane.xlu0 %3492  ;;  %v2509_v40 = vpop.xlane.xlu1 %2508  ;;  %v3674_v50 = vsel %vm66_vm0, %v3588_v46, 0.0  ;;  %v7233_v7 = vld [vmem:[%s11471_s4 + $0x18] sm:$0xff] }
 0x2cb   :  { %3678 = vadd.xlane.f32.xlu0 %v3677_v44  ;;  %6680 = vmatmul.mubr.msk.f32.vlgmr.msra.gmra.mxu0 %vm66_vm0, %v9938_v58  ;;  %v2712_v42 = vmul.f32 %v9290_v56, %v2680_v25  ;;  %7041 = vrsqrt.f32 %v2620_v62  ;;  %v3527_v37 = vmul.f32 0.03125, %v3493_v55  ;;  %v2589_v39 = vmul.f32 0.03125, %v2509_v40  ;;  %v7234_v44 = vld [vmem:[%s11470_s3 + $0x8] sm:$0xff]  ;;  %v7235_v55 = vld [vmem:[%s11471_s4 + $0x10] sm:$0xff] }
 0x2cc   :  { %v7036_v48 = vpop.eup %7035  ;;  %6736 = vmatmul.mubr.msk.f32.vlgmr.msra.gmra.mxu1 %vm66_vm0, %v9938_v58  ;;  %6784 = vmatpush3.msra.mxu0 %v7231_v38  ;;  %v3590_v28 = vmul.f32 %v9944_v24, %v9944_v24 }
 0x2cd   :  { %v9957_v35 = vadd.f32 %v9273_v26, %v2712_v42  ;;  %v2681_v1 = vmul.f32 %v7036_v48, %v9216_v32  ;;  %6785 = vmatprep.subr.mxu0 %v7232_v0  ;;  %6840 = vmatpush3.msra.mxu1 %v7233_v7  ;;  %v9969_v8 = vsub.f32 %v9430_v52, %v3527_v37  ;;  %v2621_v17 = vadd.f32 1e-05, %v2589_v39 }
 0x2ce   :  { %3675 = vadd.xlane.f32.xlu1 %v3674_v50  ;;  %6786 = vmatpush3.msra.mxu0 %v7232_v0  ;;  %v3496_v54 = vpop.xlane.xlu0 %3495  ;;  %v2512_v46 = vpop.xlane.xlu1 %2511  ;;  %v3680_v42 = vsel %vm66_vm0, %v3590_v28, 0.0 }
 0x2cf   :  { %6682 = vmatprep.mubr.msk.f32.mxu0 %vm66_vm0, %v9957_v35  ;;  %6738 = vmatprep.mubr.msk.f32.mxu1 %vm66_vm0, %v9957_v35  ;;  %v2713_v32 = vmul.f32 %v9290_v56, %v2681_v1  ;;  %7043 = vrsqrt.f32 %v2621_v17  ;;  %v3528_v25 = vmul.f32 0.03125, %v3496_v54  ;;  %v2590_v62 = vmul.f32 0.03125, %v2512_v46  ;;  %v7236_v1 = vld [vmem:[%s11470_s3] sm:$0xff]  ;;  %v7237_v17 = vld [vmem:[%s11471_s4 + $0x8] sm:$0xff] }
 0x2d0   :  { %v3591_v52 = vmul.f32 %v9969_v8, %v9969_v8  ;;  %6787 = vmatprep.subr.mxu0 %v7234_v44  ;;  %6841 = vmatprep.subr.mxu1 %v7235_v55  ;;  %v7038_v40 = vpop.eup %7037 }
 0x2d1   :  { %v9986_v48 = vadd.f32 %v9273_v26, %v2713_v32  ;;  %6788 = vmatpush3.msra.mxu0 %v7234_v44  ;;  %6842 = vmatpush3.msra.mxu1 %v7235_v55  ;;  %v9989_v37 = vsub.f32 %v9451_v9, %v3528_v25  ;;  %v2622_v39 = vadd.f32 1e-05, %v2590_v62  ;;  %v2682_v50 = vmul.f32 %v7038_v40, %v9240_v34  ;;  %v10022_v40 = vld [vmem:[%s11469_s2] ss:$0 sm:$0xff] }
 0x2d2   :  { %3681 = vadd.xlane.f32.xlu1 %v3680_v42  ;;  %v3683_v38 = vsel %vm66_vm0, %v3591_v52, 0.0  ;;  %6789 = vmatprep.subr.mxu0 %v7236_v1  ;;  %v2515_v28 = vpop.xlane.xlu1 %2514  ;;  %v7238_v52 = vld [vmem:[%s11471_s4] sm:$0xff] }
 0x2d3   :  { %3684 = vadd.xlane.f32.xlu0 %v3683_v38  ;;  %6683 = vmatmul.mubr.msk.f32.gmra.mxu0 %vm66_vm0, %v9986_v48  ;;  %7045 = vrsqrt.f32 %v2622_v39  ;;  %v2591_v0 = vmul.f32 0.03125, %v2515_v28  ;;  %v3592_v9 = vmul.f32 %v9989_v37, %v9989_v37  ;;  %v2714_v34 = vmul.f32 %v9290_v56, %v2682_v50 }
 0x2d4   :  { %6739 = vmatmul.mubr.msk.f32.gmra.mxu1 %vm66_vm0, %v9986_v48  ;;  %6790 = vmatpush3.msra.mxu0 %v7236_v1  ;;  %v7040_v7 = vpop.eup %7039 }
 0x2d5   :  { %6843 = vmatprep.subr.mxu1 %v7237_v17  ;;  %v2623_v54 = vadd.f32 1e-05, %v2591_v0  ;;  %v3686_v46 = vsel %vm66_vm0, %v3592_v9, 0.0  ;;  %v10008_v32 = vadd.f32 %v9273_v26, %v2714_v34  ;;  %v2683_v25 = vmul.f32 %v7040_v7, %v9308_v20 }
 0x2d6   :  { %6844 = vmatpush3.msra.mxu1 %v7237_v17  ;;  %3687 = vadd.xlane.f32.xlu1 %v3686_v46  ;;  %v2518_v62 = vpop.xlane.xlu1 %2517 }
 0x2d7   :  { %6845 = vmatprep.subr.mxu1 %v7238_v52  ;;  %7047 = vrsqrt.f32 %v2623_v54  ;;  %v2592_v44 = vmul.f32 0.03125, %v2518_v62  ;;  %6685 = vmatprep.mubr.msk.f32.mxu0 %vm66_vm0, %v10008_v32  ;;  %v2715_v26 = vmul.f32 %v9290_v56, %v2683_v25  ;;  %v10035_v56 = vld [vmem:[%s11468_s1] ss:$0 sm:$0xff] }
 0x2d8   :  { %6741 = vmatprep.mubr.msk.f32.mxu1 %vm66_vm0, %v10008_v32  ;;  %v7042_v55 = vpop.eup %7041  ;;  %6846 = vmatpush3.msra.mxu1 %v7238_v52 }
 0x2d9   :  { %v2624_v20 = vadd.f32 1e-05, %v2592_v44  ;;  %v10025_v42 = vadd.f32 %v10022_v40, %v2715_v26  ;;  %v2684_v39 = vmul.f32 %v7042_v55, %v9340_v10 }
 0x2da   :  { %v2521_v38 = vpop.xlane.xlu1 %2520 }
 0x2db   :  { %7049 = vrsqrt.f32 %v2624_v20  ;;  %v2593_v50 = vmul.f32 0.03125, %v2521_v38  ;;  %6686 = vmatmul.mubr.msk.f32.gmra.mxu0 %vm66_vm0, %v10025_v42  ;;  %6742 = vmatmul.mubr.msk.f32.gmra.mxu1 %vm66_vm0, %v10025_v42  ;;  %v2716_v1 = vmul.f32 %v10035_v56, %v2684_v39 }
 0x2dc   :  { %v7044_v28 = vpop.eup %7043 }
 0x2dd   :  { %v2625_v0 = vadd.f32 1e-05, %v2593_v50  ;;  %v10039_v10 = vadd.f32 %v10022_v40, %v2716_v1  ;;  %v2685_v9 = vmul.f32 %v7044_v28, %v9402_v23  ;;  %v11788_v50 = vpack.c.bf16 %v8656_v49, %v8638_v29 }
 0x2de   :  { %v2524_v34 = vpop.xlane.xlu1 %2523 }
 0x2df   :  { %7051 = vrsqrt.f32 %v2625_v0  ;;  %v2594_v7 = vmul.f32 0.03125, %v2524_v34  ;;  %6688 = vmatprep.mubr.msk.f32.mxu0 %vm66_vm0, %v10039_v10  ;;  %6744 = vmatprep.mubr.msk.f32.mxu1 %vm66_vm0, %v10039_v10  ;;  %v2717_v17 = vmul.f32 %v10035_v56, %v2685_v9  ;;  %v11789_v0 = vpack.c.bf16 %v8628_v57, %v8610_v53 }
 0x2e0   :  { %v7046_v54 = vpop.eup %7045 }
 0x2e1   :  { %v2626_v46 = vadd.f32 1e-05, %v2594_v7  ;;  %v10048_v25 = vadd.f32 %v10022_v40, %v2717_v17  ;;  %v2686_v62 = vmul.f32 %v7046_v54, %v9418_v14  ;;  %v11790_v7 = vpack.c.bf16 %v8696_v22, %v8666_v33 }
 0x2e2   :  { %v2527_v52 = vpop.xlane.xlu1 %2526  ;;  %v11791_v17 = vpack.c.bf16 %v8756_v18, %v8740_v31 }
 0x2e3   :  { %7053 = vrsqrt.f32 %v2626_v46  ;;  %v2595_v23 = vmul.f32 0.03125, %v2527_v52  ;;  %6689 = vmatmul.mubr.msk.f32.gmra.mxu0 %vm66_vm0, %v10048_v25  ;;  %6745 = vmatmul.mubr.msk.f32.gmra.mxu1 %vm66_vm0, %v10048_v25  ;;  %v2718_v44 = vmul.f32 %v10035_v56, %v2686_v62  ;;  %v11792_v62 = vpack.c.bf16 %v8730_v2, %v8706_v13  ;;  %v11794_v13 = vld [vmem:[#allocation123_spill] sm:$0xff] }
 0x2e4   :  { %v7048_v26 = vpop.eup %7047  ;;  %v11793_v52 = vpack.c.bf16 %v8990_v5, %v8964_v47 }
 0x2e5   :  { %v2627_v55 = vadd.f32 1e-05, %v2595_v23  ;;  %v10057_v20 = vadd.f32 %v10022_v40, %v2718_v44  ;;  %v2687_v39 = vmul.f32 %v7048_v26, %v9456_v16 }
 0x2e6   :  { %v2530_v38 = vpop.xlane.xlu1 %2529 }
 0x2e7   :  { %7055 = vrsqrt.f32 %v2627_v55  ;;  %v2596_v14 = vmul.f32 0.03125, %v2530_v38  ;;  %4493 = vrot.lane.b32.xlu1 %v11788_v50, %s7287_s30  ;;  %6691 = vmatprep.mubr.msk.f32.mxu0 %vm66_vm0, %v10057_v20  ;;  %v2719_v1 = vmul.f32 %v10035_v56, %v2687_v39  ;;  %v11795_v55 = vld [vmem:[#allocation59_spill] sm:$0xff]  ;;  %v11796_v39 = vld [vmem:[#allocation52_spill] sm:$0xff]  ;;  %v11799_v50 = vld [vmem:[#allocation70_spill] sm:$0xff] }
 0x2e8   :  { %v7050_v28 = vpop.eup %7049  ;;  %6747 = vmatprep.mubr.msk.f32.mxu1 %vm66_vm0, %v10057_v20  ;;  %v11797_v38 = vpack.c.bf16 %v11795_v55, %v11796_v39 }
 0x2e9   :  { %4491 = vrot.lane.b32.xlu0 %v11789_v0, %s7287_s30  ;;  %v2628_v16 = vadd.f32 1e-05, %v2596_v14  ;;  %v10074_v9 = vadd.f32 %v10022_v40, %v2719_v1  ;;  %v2688_v29 = vmul.f32 %v7050_v28, %v9466_v45  ;;  %v11798_v14 = vld [vmem:[#allocation75_spill] sm:$0xff] }
 0x2ea   :  { %v2533_v49 = vpop.xlane.xlu1 %2532  ;;  %v11800_v1 = vpack.c.bf16 %v11798_v14, %v11799_v50 }
 0x2eb   :  { %7057 = vrsqrt.f32 %v2628_v16  ;;  %v2597_v34 = vmul.f32 0.03125, %v2533_v49  ;;  %4495 = vrot.lane.b32.xlu1 %v11790_v7, %s7287_s30  ;;  %6692 = vmatmul.mubr.msk.f32.gmra.mxu0 %vm66_vm0, %v10074_v9  ;;  %v2720_v53 = vmul.f32 %v10035_v56, %v2688_v29  ;;  %v11801_v16 = vld [vmem:[#allocation124_spill] sm:$0xff]  ;;  %v11802_v7 = vld [vmem:[#allocation69_spill] sm:$0xff] }
 0x2ec   :  { %v7052_v57 = vpop.eup %7051  ;;  %6748 = vmatmul.mubr.msk.f32.gmra.mxu1 %vm66_vm0, %v10074_v9 }
 0x2ed   :  { %4499 = vrot.lane.b32.xlu0 %v11791_v17, %s7287_s30  ;;  %v2629_v45 = vadd.f32 1e-05, %v2597_v34  ;;  %v10091_v54 = vadd.f32 %v10022_v40, %v2720_v53  ;;  %v2689_v33 = vmul.f32 %v7052_v57, %v9483_v6  ;;  %v11803_v53 = vld [vmem:[#allocation64_spill] sm:$0xff] }
 0x2ee   :  { %v2536_v22 = vpop.xlane.xlu1 %2535  ;;  %v11804_v57 = vpack.c.bf16 %v11802_v7, %v11803_v53  ;;  %v11816_v7 = vld [vmem:[#allocation93_spill] sm:$0xff]  ;;  %v11817_v53 = vld [vmem:[#allocation88_spill] sm:$0xff] }
 0x2ef   :  { %7059 = vrsqrt.f32 %v2629_v45  ;;  %v2598_v46 = vmul.f32 0.03125, %v2536_v22  ;;  %4497 = vrot.lane.b32.xlu1 %v11792_v62, %s7287_s30  ;;  %6694 = vmatprep.mubr.msk.f32.mxu0 %vm66_vm0, %v10091_v54  ;;  %v2721_v31 = vmul.f32 %v10035_v56, %v2689_v33  ;;  %v11805_v33 = vld [vmem:[#allocation87_spill] sm:$0xff]  ;;  %v11806_v22 = vld [vmem:[#allocation82_spill] sm:$0xff]  ;;  %v2566_v62 = vpop.xlane.xlu0 %2565 }
 0x2f0   :  { %v7054_v18 = vpop.eup %7053  ;;  %6750 = vmatprep.mubr.msk.f32.mxu1 %vm66_vm0, %v10091_v54 }
 0x2f1   :  { %4503 = vrot.lane.b32.xlu0 %v11793_v52, %s7287_s30  ;;  %v2630_v6 = vadd.f32 1e-05, %v2598_v46  ;;  %v10108_v23 = vadd.f32 %v10022_v40, %v2721_v31  ;;  %v2690_v2 = vmul.f32 %v7054_v18, %v11794_v13  ;;  %v11807_v46 = vpack.c.bf16 %v11805_v33, %v11806_v22  ;;  %v11808_v52 = vld [vmem:[#allocation125_spill] sm:$0xff]  ;;  %v11820_v22 = vld [vmem:[#allocation106_spill] sm:$0xff] }
 0x2f2   :  { %v2539_v44 = vpop.xlane.xlu1 %2538  ;;  %v11819_v33 = vld [vmem:[#allocation109_spill] sm:$0xff] }
 0x2f3   :  { %7061 = vrsqrt.f32 %v2630_v6  ;;  %v2599_v26 = vmul.f32 0.03125, %v2539_v44  ;;  %4501 = vrot.lane.b32.xlu1 %v11797_v38, %s7287_s30  ;;  %6695 = vmatmul.mubr.msk.f32.gmra.mxu0 %vm66_vm0, %v10108_v23  ;;  %v2722_v47 = vmul.f32 %v10035_v56, %v2690_v2  ;;  %v11809_v44 = vld [vmem:[#allocation81_spill] sm:$0xff] }
 0x2f4   :  { %v7056_v5 = vpop.eup %7055  ;;  %6751 = vmatmul.mubr.msk.f32.gmra.mxu1 %vm66_vm0, %v10108_v23 }
 0x2f5   :  { %4507 = vrot.lane.b32.xlu0 %v11800_v1, %s7287_s30  ;;  %v2631_v28 = vadd.f32 1e-05, %v2599_v26  ;;  %v10125_v0 = vadd.f32 %v10022_v40, %v2722_v47  ;;  %v2691_v29 = vmul.f32 %v7056_v5, %v11801_v16  ;;  %v11810_v26 = vld [vmem:[#allocation76_spill] sm:$0xff]  ;;  %v11812_v47 = vld [vmem:[#allocation97_spill] sm:$0xff]  ;;  %v11813_v5 = vld [vmem:[#allocation94_spill] sm:$0xff] }
 0x2f6   :  { %v2542_v49 = vpop.xlane.xlu1 %2541  ;;  %v11811_v55 = vpack.c.bf16 %v11809_v44, %v11810_v26  ;;  %v11814_v14 = vpack.c.bf16 %v11812_v47, %v11813_v5  ;;  %v2774_v44 = vpack.c.bf16 %v9938_v58, %v9922_v11 }
 0x2f7   :  { %7063 = vrsqrt.f32 %v2631_v28  ;;  %v2600_v34 = vmul.f32 0.03125, %v2542_v49  ;;  %4505 = vrot.lane.b32.xlu1 %v11804_v57, %s7287_s30  ;;  %6697 = vmatprep.mubr.msk.f32.mxu0 %vm66_vm0, %v10125_v0  ;;  %v2723_v17 = vmul.f32 %v10035_v56, %v2691_v29  ;;  %v11815_v28 = vld [vmem:[#allocation128_spill] sm:$0xff]  ;;  %v2572_v49 = vpop.xlane.xlu0 %2571  ;;  %v11818_v57 = vpack.c.bf16 %v11816_v7, %v11817_v53 }
 0x2f8   :  { %v7058_v45 = vpop.eup %7057  ;;  %6753 = vmatprep.mubr.msk.f32.mxu1 %vm66_vm0, %v10125_v0  ;;  %v2776_v7 = vpack.c.bf16 %v10025_v42, %v10008_v32  ;;  %v11828_v32 = vld [vmem:[#allocation133_spill] sm:$0xff] }
 0x2f9   :  { %4511 = vrot.lane.b32.xlu0 %v11807_v46, %s7287_s30  ;;  %v2632_v31 = vadd.f32 1e-05, %v2600_v34  ;;  %v10142_v18 = vadd.f32 %v10022_v40, %v2723_v17  ;;  %v2692_v6 = vmul.f32 %v7058_v45, %v11808_v52  ;;  %v11821_v46 = vpack.c.bf16 %v11819_v33, %v11820_v22 }
 0x2fa   :  { %v2545_v13 = vpop.xlane.xlu1 %2544  ;;  %v2608_v22 = vmul.f32 0.03125, %v2566_v62 }
 0x2fb   :  { %7065 = vrsqrt.f32 %v2632_v31  ;;  %v2601_v2 = vmul.f32 0.03125, %v2545_v13  ;;  %4509 = vrot.lane.b32.xlu1 %v11811_v55, %s7287_s30  ;;  %6698 = vmatmul.mubr.msk.f32.gmra.mxu0 %vm66_vm0, %v10142_v18  ;;  %v2724_v39 = vmul.f32 %v10035_v56, %v2692_v6  ;;  %v11822_v6 = vld [vmem:[#allocation129_spill] sm:$0xff]  ;;  %v11823_v55 = vld [vmem:[#allocation103_spill] sm:$0xff]  ;;  %v2578_v11 = vpop.xlane.xlu0 %2577 }
 0x2fc   :  { %v7060_v38 = vpop.eup %7059  ;;  %6754 = vmatmul.mubr.msk.f32.gmra.mxu1 %vm66_vm0, %v10142_v18  ;;  %v2640_v62 = vadd.f32 1e-05, %v2608_v22 }
 0x2fd   :  { %4515 = vrot.lane.b32.xlu0 %v11814_v14, %s7287_s30  ;;  %v2633_v50 = vadd.f32 1e-05, %v2601_v2  ;;  %v10159_v1 = vadd.f32 %v10022_v40, %v2724_v39  ;;  %v2693_v16 = vmul.f32 %v7060_v38, %v11815_v28  ;;  %v11824_v39 = vld [vmem:[#allocation100_spill] sm:$0xff] }
 0x2fe   :  { %v2548_v29 = vpop.xlane.xlu1 %2547  ;;  %v11825_v38 = vpack.c.bf16 %v11823_v55, %v11824_v39  ;;  %v11826_v14 = vld [vmem:[#allocation112_spill] sm:$0xff]  ;;  %v2780_v39 = vpack.c.bf16 %v10142_v18, %v10125_v0 }
 0x2ff   :  { %7067 = vrsqrt.f32 %v2633_v50  ;;  %v2602_v34 = vmul.f32 0.03125, %v2548_v29  ;;  %4513 = vrot.lane.b32.xlu1 %v11818_v57, %s7287_s30  ;;  %6700 = vmatprep.mubr.msk.f32.mxu0 %vm66_vm0, %v10159_v1  ;;  %v2725_v17 = vmul.f32 %v10035_v56, %v2693_v16  ;;  %v1682_v50 = vpack.c.bf16 %v9705_v4, %v11826_v14  ;;  %v11827_v16 = vld [vmem:[#allocation132_spill] sm:$0xff] }
 0x300   :  { %v7062_v45 = vpop.eup %7061  ;;  %6756 = vmatprep.mubr.msk.f32.mxu1 %vm66_vm0, %v10159_v1 }
 0x301   :  { %4519 = vrot.lane.b32.xlu0 %v11821_v46, %s7287_s30  ;;  %v2634_v31 = vadd.f32 1e-05, %v2602_v34  ;;  %v10176_v52 = vadd.f32 %v10022_v40, %v2725_v17  ;;  %v2694_v13 = vmul.f32 %v7062_v45, %v11822_v6  ;;  %v2775_v45 = vpack.c.bf16 %v9986_v48, %v9957_v35  ;;  %v3595_v6 = vpop.xlane.xlu0 %3594 }
 0x302   :  { %v2551_v2 = vpop.xlane.xlu1 %2550  ;;  %v2777_v48 = vpack.c.bf16 %v10048_v25, %v10039_v10  ;;  %v2779_v25 = vpack.c.bf16 %v10108_v23, %v10091_v54 }
 0x303   :  { %7069 = vrsqrt.f32 %v2634_v31  ;;  %v2603_v26 = vmul.f32 0.03125, %v2551_v2  ;;  %4517 = vrot.lane.b32.xlu1 %v11825_v38, %s7287_s30  ;;  %6701 = vmatmul.mubr.msk.f32.gmra.mxu0 %vm66_vm0, %v10176_v52  ;;  %v2726_v47 = vmul.f32 %v10035_v56, %v2694_v13  ;;  %v2778_v31 = vpack.c.bf16 %v10074_v9, %v10057_v20 }
 0x304   :  { %v7064_v5 = vpop.eup %7063  ;;  %6757 = vmatmul.mubr.msk.f32.gmra.mxu1 %vm66_vm0, %v10176_v52  ;;  %v2781_v23 = vpack.c.bf16 %v10176_v52, %v10159_v1 }
 0x305   :  { %4539 = vrot.lane.b32.xlu0 %v2774_v44, %s7288_s7  ;;  %v2635_v58 = vadd.f32 1e-05, %v2603_v26  ;;  %v2758_v28 = vadd.f32 %v10022_v40, %v2726_v47  ;;  %v2695_v29 = vmul.f32 %v7064_v5, %v11827_v16  ;;  %v2610_v26 = vmul.f32 0.03125, %v2572_v49  ;;  %v10228_v16 = vpop.f32.mrf.mxu0 }
 0x306   :  { %v2554_v34 = vpop.xlane.xlu1 %2553 }
 0x307   :  { %7071 = vrsqrt.f32 %v2635_v58  ;;  %v2604_v53 = vmul.f32 0.03125, %v2554_v34  ;;  %4521 = vrot.lane.b32.xlu1 %v1682_v50, %s7287_s30  ;;  %6703 = vmatprep.mubr.msk.f32.mxu0 %vm66_vm0, %v2758_v28  ;;  %v2727_v57 = vmul.f32 %v10035_v56, %v2695_v29  ;;  %v2642_v49 = vadd.f32 1e-05, %v2610_v26 }
 0x308   :  { %v7066_v17 = vpop.eup %7065  ;;  %6759 = vmatprep.mubr.msk.f32.mxu1 %vm66_vm0, %v2758_v28  ;;  %v2612_v58 = vmul.f32 0.03125, %v2578_v11 }
 0x309   :  { %4543 = vrot.lane.b32.xlu0 %v2776_v7, %s7288_s7  ;;  %v2636_v4 = vadd.f32 1e-05, %v2604_v53  ;;  %v2759_v33 = vadd.f32 %v10022_v40, %v2727_v57  ;;  %v2696_v42 = vmul.f32 %v7066_v17, %v11828_v32  ;;  %v3689_v53 = vmul.f32 0.03125, %v3595_v6  ;;  %v10239_v17 = vpop.f32.mrf.mxu0 }
 0x30a   :  { %v2557_v46 = vpop.xlane.xlu1 %2556  ;;  %v2644_v7 = vadd.f32 1e-05, %v2612_v58 }
 0x30b   :  { %7073 = vrsqrt.f32 %v2636_v4  ;;  %v2605_v13 = vmul.f32 0.03125, %v2557_v46  ;;  %4541 = vrot.lane.b32.xlu1 %v2775_v45, %s7288_s7  ;;  %6704 = vmatmul.mubr.msk.f32.gmra.mxu0 %vm66_vm0, %v2759_v33  ;;  %v2728_v2 = vmul.f32 %v10035_v56, %v2696_v42  ;;  %v2782_v50 = vpack.c.bf16 %v2759_v33, %v2758_v28  ;;  %v10247_v6 = vpop.f32.mrf.mxu0 }
 0x30c   :  { %v7068_v44 = vpop.eup %7067  ;;  %6760 = vmatmul.mubr.msk.f32.gmra.mxu1 %vm66_vm0, %v2759_v33  ;;  %v3721_v22 = vadd.f32 1e-05, %v3689_v53 }
 0x30d   :  { %4547 = vrot.lane.b32.xlu0 %v2778_v31, %s7288_s7  ;;  %v2637_v35 = vadd.f32 1e-05, %v2605_v13  ;;  %v2760_v20 = vadd.f32 %v10022_v40, %v2728_v2  ;;  %v2697_v9 = vmul.f32 %v7068_v44, %v9619_v27  ;;  %v3601_v27 = vpop.xlane.xlu0 %3600 }
 0x30e   :  { %v2560_v55 = vpop.xlane.xlu1 %2559  ;;  %v3691_v46 = vmul.f32 0.03125, %v3601_v27 }
 0x30f   :  { %7075 = vrsqrt.f32 %v2637_v35  ;;  %v2606_v38 = vmul.f32 0.03125, %v2560_v55  ;;  %4545 = vrot.lane.b32.xlu1 %v2777_v48, %s7288_s7  ;;  %6706 = vmatprep.mubr.msk.f32.mxu0 %vm66_vm0, %v2760_v20  ;;  %v2729_v47 = vmul.f32 %v10035_v56, %v2697_v9 }
 0x310   :  { %v7070_v5 = vpop.eup %7069  ;;  %6762 = vmatprep.mubr.msk.f32.mxu1 %vm66_vm0, %v2760_v20  ;;  %7077 = vrsqrt.f32 %v2640_v62  ;;  %v3723_v26 = vadd.f32 1e-05, %v3691_v46 }
 0x311   :  { %4551 = vrot.lane.b32.xlu0 %v2780_v39, %s7288_s7  ;;  %v2638_v10 = vadd.f32 1e-05, %v2606_v38  ;;  %v2761_v0 = vadd.f32 %v10022_v40, %v2729_v47  ;;  %v2698_v18 = vmul.f32 %v7070_v5, %v9627_v19  ;;  %v3607_v4 = vpop.xlane.xlu0 %3606  ;;  %v10256_v38 = vpop.f32.mrf.mxu0 }
 0x312   :  { %v2563_v14 = vpop.xlane.xlu1 %2562  ;;  %v3693_v48 = vmul.f32 0.03125, %v3607_v4  ;;  %v11830_v4 = vld [vmem:[#allocation139_spill] sm:$0xff] }
 0x313   :  { %7079 = vrsqrt.f32 %v2638_v10  ;;  %v2607_v29 = vmul.f32 0.03125, %v2563_v14  ;;  %4549 = vrot.lane.b32.xlu1 %v2779_v25, %s7288_s7  ;;  %6707 = vmatmul.mubr.msk.f32.gmra.mxu0 %vm66_vm0, %v2761_v0  ;;  %v2730_v34 = vmul.f32 %v10035_v56, %v2698_v18  ;;  %v11829_v14 = vld [vmem:[#allocation126_spill] sm:$0xff] }
 0x314   :  { %v7072_v54 = vpop.eup %7071  ;;  %6763 = vmatmul.mubr.msk.f32.gmra.mxu1 %vm66_vm0, %v2761_v0  ;;  %7081 = vrsqrt.f32 %v2642_v49  ;;  %v3725_v10 = vadd.f32 1e-05, %v3693_v48 }
 0x315   :  { %4555 = vrot.lane.b32.xlu0 %v2782_v50, %s7288_s7  ;;  %v2639_v19 = vadd.f32 1e-05, %v2607_v29  ;;  %v2762_v11 = vadd.f32 %v10022_v40, %v2730_v34  ;;  %v2699_v28 = vmul.f32 %v7072_v54, %v9650_v21  ;;  %v2783_v21 = vpack.c.bf16 %v2761_v0, %v2760_v20  ;;  %v10264_v34 = vpop.f32.mrf.mxu0 }
 0x316   :  { %v2569_v57 = vpop.xlane.xlu1 %2568 }
 0x317   :  { %7083 = vrsqrt.f32 %v2639_v19  ;;  %v2609_v45 = vmul.f32 0.03125, %v2569_v57  ;;  %4553 = vrot.lane.b32.xlu1 %v2781_v23, %s7288_s7  ;;  %6709 = vmatprep.mubr.msk.f32.mxu0 %vm66_vm0, %v2762_v11  ;;  %v2731_v33 = vmul.f32 %v10035_v56, %v2699_v28  ;;  %v10269_v28 = vpop.f32.mrf.mxu1 }
 0x318   :  { %v7074_v1 = vpop.eup %7073  ;;  %6765 = vmatprep.mubr.msk.f32.mxu1 %vm66_vm0, %v2762_v11  ;;  %7085 = vrsqrt.f32 %v2644_v7 }
 0x319   :  { %v2641_v52 = vadd.f32 1e-05, %v2609_v45  ;;  %v2763_v32 = vadd.f32 %v10022_v40, %v2731_v33  ;;  %v2700_v42 = vmul.f32 %v7074_v1, %v9656_v63  ;;  %v3613_v63 = vpop.xlane.xlu0 %3612 }
 0x31a   :  { %v2575_v31 = vpop.xlane.xlu1 %2574  ;;  %v3695_v49 = vmul.f32 0.03125, %v3613_v63 }
 0x31b   :  { %7087 = vrsqrt.f32 %v2641_v52  ;;  %v2611_v13 = vmul.f32 0.03125, %v2575_v31  ;;  %4557 = vrot.lane.b32.xlu1 %v2783_v21, %s7288_s7  ;;  %6710 = vmatmul.mubr.msk.f32.gmra.mxu0 %vm66_vm0, %v2763_v32  ;;  %v2784_v2 = vpack.c.bf16 %v2763_v32, %v2762_v11  ;;  %v2732_v44 = vmul.f32 %v10035_v56, %v2700_v42  ;;  %v11831_v21 = vld [vmem:[#allocation127_spill] sm:$0xff] }
 0x31c   :  { %v7076_v35 = vpop.eup %7075  ;;  %6766 = vmatmul.mubr.msk.f32.gmra.mxu1 %vm66_vm0, %v2763_v32  ;;  %7089 = vrsqrt.f32 %v3721_v22  ;;  %v3727_v33 = vadd.f32 1e-05, %v3695_v49  ;;  %v10276_v22 = vpop.f32.mrf.mxu0 }
 0x31d   :  { %v2643_v20 = vadd.f32 1e-05, %v2611_v13  ;;  %4559 = vrot.lane.b32.xlu0 %v2784_v2, %s7288_s7  ;;  %v2764_v9 = vadd.f32 %v10022_v40, %v2732_v44  ;;  %v2701_v62 = vmul.f32 %v7076_v35, %v9678_v15  ;;  %v7078_v39 = vpop.eup %7077  ;;  %v3619_v25 = vpop.xlane.xlu0 %3618 }
 0x31e   :  { %v2581_v55 = vpop.xlane.xlu1 %2580  ;;  %v2704_v50 = vmul.f32 %v7078_v39, %v11829_v14  ;;  %v10281_v35 = vpop.f32.mrf.mxu1  ;;  %v11832_v39 = vld [vmem:[#allocation130_spill] sm:$0xff]  ;;  %v11833_v14 = vld [vmem:[#allocation141_spill] sm:$0xff] }
 0x31f   :  { %7091 = vrsqrt.f32 %v2643_v20  ;;  %v2613_v47 = vmul.f32 0.03125, %v2581_v55  ;;  %6712 = vmatprep.mubr.msk.f32.mxu0 %vm66_vm0, %v2764_v9  ;;  %6768 = vmatprep.mubr.msk.f32.mxu1 %vm66_vm0, %v2764_v9  ;;  %v2733_v5 = vmul.f32 %v10035_v56, %v2701_v62 }
 0x320   :  { %v7080_v27 = vpop.eup %7079  ;;  %7093 = vrsqrt.f32 %v3723_v26  ;;  %v2736_v52 = vmul.f32 %v10035_v56, %v2704_v50 }
 0x321   :  { %v2645_v0 = vadd.f32 1e-05, %v2613_v47  ;;  %v2765_v15 = vadd.f32 %v10022_v40, %v2733_v5  ;;  %v2702_v18 = vmul.f32 %v7080_v27, %v9684_v60  ;;  %v7082_v29 = vpop.eup %7081  ;;  %v3697_v60 = vmul.f32 0.03125, %v3619_v25  ;;  %v3625_v7 = vpop.xlane.xlu0 %3624 }
 0x322   :  { %v3598_v58 = vpop.xlane.xlu1 %3597  ;;  %v2706_v32 = vmul.f32 %v7082_v29, %v11831_v21  ;;  %v3699_v44 = vmul.f32 0.03125, %v3625_v7  ;;  %v2768_v26 = vadd.f32 %v10022_v40, %v2736_v52  ;;  %v10288_v27 = vpop.f32.mrf.mxu0 }
 0x323   :  { %7095 = vrsqrt.f32 %v2645_v0  ;;  %v3690_v54 = vmul.f32 0.03125, %v3598_v58  ;;  %6713 = vmatmul.mubr.msk.f32.gmra.mxu0 %vm66_vm0, %v2765_v15  ;;  %6769 = vmatmul.mubr.msk.f32.gmra.mxu1 %vm66_vm0, %v2765_v15  ;;  %v2785_v19 = vpack.c.bf16 %v2765_v15, %v2764_v9  ;;  %v2734_v23 = vmul.f32 %v10035_v56, %v2702_v18  ;;  %v10295_v18 = vpop.f32.mrf.mxu1 }
 0x324   :  { %v7084_v11 = vpop.eup %7083  ;;  %7097 = vrsqrt.f32 %v3725_v10  ;;  %v3729_v2 = vadd.f32 1e-05, %v3697_v60  ;;  %v2738_v55 = vmul.f32 %v10035_v56, %v2706_v32  ;;  %v3731_v15 = vadd.f32 1e-05, %v3699_v44  ;;  %v11834_v60 = vld [vmem:[#allocation131_spill] sm:$0xff] }
 0x325   :  { %v3722_v53 = vadd.f32 1e-05, %v3690_v54  ;;  %4561 = vrot.lane.b32.xlu1 %v2785_v19, %s7288_s7  ;;  %v2766_v57 = vadd.f32 %v10022_v40, %v2734_v23  ;;  %v2703_v45 = vmul.f32 %v7084_v11, %v11830_v4  ;;  %v7086_v42 = vpop.eup %7085  ;;  %v3631_v9 = vpop.xlane.xlu0 %3630 }
 0x326   :  { %v3604_v1 = vpop.xlane.xlu1 %3603  ;;  %v2708_v47 = vmul.f32 %v7086_v42, %v11832_v39  ;;  %v3701_v29 = vmul.f32 0.03125, %v3631_v9  ;;  %v2770_v23 = vadd.f32 %v10022_v40, %v2738_v55 }
 0x327   :  { %7099 = vrsqrt.f32 %v3722_v53  ;;  %v3692_v46 = vmul.f32 0.03125, %v3604_v1  ;;  %6715 = vmatprep.mubr.msk.f32.mxu0 %vm66_vm0, %v2766_v57  ;;  %6771 = vmatprep.mubr.msk.f32.mxu1 %vm66_vm0, %v2766_v57  ;;  %v2735_v31 = vmul.f32 %v10035_v56, %v2703_v45 }
 0x328   :  { %v7088_v13 = vpop.eup %7087  ;;  %7101 = vrsqrt.f32 %v3727_v33  ;;  %v2740_v11 = vmul.f32 %v10035_v56, %v2708_v47  ;;  %v11836_v47 = vld [vmem:[#allocation135_spill] sm:$0xff] }
 0x329   :  { %v3724_v48 = vadd.f32 1e-05, %v3692_v46  ;;  %v2767_v63 = vadd.f32 %v10022_v40, %v2735_v31  ;;  %v2705_v20 = vmul.f32 %v7088_v13, %v9727_v30  ;;  %v7090_v5 = vpop.eup %7089  ;;  %v3637_v54 = vpop.xlane.xlu0 %3636  ;;  %v3733_v13 = vadd.f32 1e-05, %v3701_v29 }
 0x32a   :  { %v3610_v62 = vpop.xlane.xlu1 %3609  ;;  %v3785_v7 = vmul.f32 %v7090_v5, %v11834_v60  ;;  %v3703_v21 = vmul.f32 0.03125, %v3637_v54  ;;  %v10313_v31 = vpop.f32.mrf.mxu1  ;;  %v2772_v44 = vadd.f32 %v10022_v40, %v2740_v11 }
 0x32b   :  { %7103 = vrsqrt.f32 %v3724_v48  ;;  %v3694_v10 = vmul.f32 0.03125, %v3610_v62  ;;  %6716 = vmatmul.mubr.msk.f32.gmra.mxu0 %vm66_vm0, %v2767_v63  ;;  %6772 = vmatmul.mubr.msk.f32.gmra.mxu1 %vm66_vm0, %v2767_v63  ;;  %v2786_v25 = vpack.c.bf16 %v2767_v63, %v2766_v57  ;;  %v2737_v30 = vmul.f32 %v10035_v56, %v2705_v20  ;;  %v10303_v57 = vpop.f32.mrf.mxu0  ;;  %v11835_v63 = vld [vmem:[#allocation134_spill] sm:$0xff] }
 0x32c   :  { %v7092_v0 = vpop.eup %7091  ;;  %7105 = vrsqrt.f32 %v3729_v2  ;;  %6718 = vmatprep.mubr.msk.f32.mxu0 %vm66_vm0, %v2768_v26  ;;  %6774 = vmatprep.mubr.msk.f32.mxu1 %vm66_vm0, %v2768_v26  ;;  %v3817_v48 = vmul.f32 %v10035_v56, %v3785_v7 }
 0x32d   :  { %v3726_v49 = vadd.f32 1e-05, %v3694_v10  ;;  %4563 = vrot.lane.b32.xlu0 %v2786_v25, %s7288_s7  ;;  %v2769_v58 = vadd.f32 %v10022_v40, %v2737_v30  ;;  %v2707_v50 = vmul.f32 %v7092_v0, %v11833_v14  ;;  %v7094_v53 = vpop.eup %7093  ;;  %v10318_v9 = vpop.f32.mrf.mxu0  ;;  %v3735_v10 = vadd.f32 1e-05, %v3703_v21  ;;  %v11837_v25 = vld [vmem:[#allocation143_spill] sm:$0xff]  ;;  %v11838_v21 = vld [vmem:[#allocation145_spill] sm:$0xff] }
 0x32e   :  { %v3616_v19 = vpop.xlane.xlu1 %3615  ;;  %v3787_v20 = vmul.f32 %v7094_v53, %v11835_v63  ;;  %v3643_v62 = vpop.xlane.xlu0 %3642 }
 0x32f   :  { %7107 = vrsqrt.f32 %v3726_v49  ;;  %v3696_v4 = vmul.f32 0.03125, %v3616_v19  ;;  %6719 = vmatmul.mubr.msk.f32.gmra.mxu0 %vm66_vm0, %v2769_v58  ;;  %6775 = vmatmul.mubr.msk.f32.gmra.mxu1 %vm66_vm0, %v2769_v58  ;;  %v2787_v45 = vpack.c.bf16 %v2769_v58, %v2768_v26  ;;  %v2739_v33 = vmul.f32 %v10035_v56, %v2707_v50  ;;  %v10329_v49 = vpop.f32.mrf.mxu1  ;;  %v10333_v19 = vpop.f32.mrf.mxu0 }
 0x330   :  { %v7096_v1 = vpop.eup %7095  ;;  %7109 = vrsqrt.f32 %v3731_v15  ;;  %6721 = vmatprep.mubr.msk.f32.mxu0 %vm66_vm0, %v2770_v23  ;;  %6777 = vmatprep.mubr.msk.f32.mxu1 %vm66_vm0, %v2770_v23  ;;  %v3705_v58 = vmul.f32 0.03125, %v3643_v62  ;;  %v3849_v50 = vadd.f32 %v10022_v40, %v3817_v48  ;;  %v3819_v29 = vmul.f32 %v10035_v56, %v3787_v20 }
 0x331   :  { %v7098_v52 = vpop.eup %7097  ;;  %v3728_v32 = vadd.f32 1e-05, %v3696_v4  ;;  %4565 = vrot.lane.b32.xlu1 %v2787_v45, %s7288_s7  ;;  %v2771_v42 = vadd.f32 %v10022_v40, %v2739_v33  ;;  %v2709_v46 = vmul.f32 %v7096_v1, %v9754_v59  ;;  %v10341_v33 = vpop.f32.mrf.mxu0 }
 0x332   :  { %v3622_v2 = vpop.xlane.xlu1 %3621  ;;  %v3789_v5 = vmul.f32 %v7098_v52, %v11836_v47  ;;  %v3649_v11 = vpop.xlane.xlu0 %3648 }
 0x333   :  { %7111 = vrsqrt.f32 %v3728_v32  ;;  %v3698_v26 = vmul.f32 0.03125, %v3622_v2  ;;  %6722 = vmatmul.mubr.msk.f32.gmra.mxu0 %vm66_vm0, %v2771_v42  ;;  %6778 = vmatmul.mubr.msk.f32.gmra.mxu1 %vm66_vm0, %v2771_v42  ;;  %v2788_v59 = vpack.c.bf16 %v2771_v42, %v2770_v23  ;;  %v2741_v55 = vmul.f32 %v10035_v56, %v2709_v46  ;;  %v10348_v63 = vpop.f32.mrf.mxu1 }
 0x334   :  { %v7100_v39 = vpop.eup %7099  ;;  %6724 = vmatprep.mubr.msk.f32.mxu0 %vm66_vm0, %v2772_v44  ;;  %6780 = vmatprep.mubr.msk.f32.mxu1 %vm66_vm0, %v2772_v44  ;;  %7113 = vrsqrt.f32 %v3733_v13  ;;  %v3821_v4 = vmul.f32 %v10035_v56, %v3789_v5  ;;  %v3737_v42 = vadd.f32 1e-05, %v3705_v58  ;;  %v3707_v46 = vmul.f32 0.03125, %v3649_v11 }
 0x335   :  { %v3786_v30 = vmul.f32 %v7100_v39, %v11837_v25  ;;  %v3730_v0 = vadd.f32 1e-05, %v3698_v26  ;;  %4567 = vrot.lane.b32.xlu0 %v2788_v59, %s7288_s7  ;;  %v2773_v15 = vadd.f32 %v10022_v40, %v2741_v55  ;;  %v7102_v54 = vpop.eup %7101  ;;  %v3851_v2 = vadd.f32 %v10022_v40, %v3819_v29  ;;  %v11840_v39 = vld [vmem:[#allocation137_spill] sm:$0xff] }
 0x336   :  { %v3628_v14 = vpop.xlane.xlu1 %3627  ;;  %v3655_v20 = vpop.xlane.xlu0 %3654 }
 0x337   :  { %v3818_v23 = vmul.f32 %v10035_v56, %v3786_v30  ;;  %7115 = vrsqrt.f32 %v3730_v0  ;;  %v3700_v60 = vmul.f32 0.03125, %v3628_v14  ;;  %6725 = vmatmul.mubr.msk.f32.gmra.mxu0 %vm66_vm0, %v2773_v15  ;;  %6781 = vmatmul.mubr.msk.f32.gmra.mxu1 %vm66_vm0, %v2773_v15  ;;  %v2789_v7 = vpack.c.bf16 %v2773_v15, %v2772_v44  ;;  %v11839_v44 = vld [vmem:[#allocation136_spill] sm:$0xff]  ;;  %v11841_v15 = vld [vmem:[#allocation146_spill] sm:$0xff] }
 0x338   :  { %v7104_v53 = vpop.eup %7103  ;;  %6791 = vmatprep.mubr.msk.f32.mxu0 %vm66_vm0, %v3849_v50  ;;  %6847 = vmatprep.mubr.msk.f32.mxu1 %vm66_vm0, %v3849_v50  ;;  %7117 = vrsqrt.f32 %v3735_v10  ;;  %v3791_v48 = vmul.f32 %v7102_v54, %v11839_v44  ;;  %v10356_v10 = vpop.f32.mrf.mxu0  ;;  %v3853_v0 = vadd.f32 %v10022_v40, %v3821_v4  ;;  %v3739_v14 = vadd.f32 1e-05, %v3707_v46 }
 0x339   :  { %v7106_v45 = vpop.eup %7105  ;;  %v3732_v1 = vadd.f32 1e-05, %v3700_v60  ;;  %4569 = vrot.lane.b32.xlu1 %v2789_v7, %s7288_s7  ;;  %v3850_v52 = vadd.f32 %v10022_v40, %v3818_v23  ;;  %v3788_v32 = vmul.f32 %v7104_v53, %v11838_v21  ;;  %v10363_v23 = vpop.f32.mrf.mxu1 }
 0x33a   :  { %v3634_v13 = vpop.xlane.xlu1 %3633  ;;  %v3793_v47 = vmul.f32 %v7106_v45, %v11840_v39  ;;  %v3823_v54 = vmul.f32 %v10035_v56, %v3791_v48 }
 0x33b   :  { %7119 = vrsqrt.f32 %v3732_v1  ;;  %v3702_v62 = vmul.f32 0.03125, %v3634_v13  ;;  %6792 = vmatmul.mubr.msk.f32.vlgmr.msra.gmra.mxu0 %vm66_vm0, %v3850_v52  ;;  %6848 = vmatmul.mubr.msk.f32.vlgmr.msra.gmra.mxu1 %vm66_vm0, %v3850_v52  ;;  %v3881_v26 = vpack.c.bf16 %v3850_v52, %v3849_v50  ;;  %v3820_v59 = vmul.f32 %v10035_v56, %v3788_v32  ;;  %v3661_v11 = vpop.xlane.xlu0 %3660  ;;  %v10371_v1 = vpop.f32.mrf.mxu0 }
 0x33c   :  { %v7108_v55 = vpop.eup %7107  ;;  %6794 = vmatprep.mubr.msk.f32.mxu0 %vm66_vm0, %v3851_v2  ;;  %6850 = vmatprep.mubr.msk.f32.mxu1 %vm66_vm0, %v3851_v2  ;;  %7121 = vrsqrt.f32 %v3737_v42  ;;  %v3709_v50 = vmul.f32 0.03125, %v3655_v20  ;;  %v3825_v45 = vmul.f32 %v10035_v56, %v3793_v47  ;;  %v11842_v42 = vld [vmem:[#allocation138_spill] sm:$0xff]  ;;  %v3855_v48 = vadd.f32 %v10022_v40, %v3823_v54 }
 0x33d   :  { %v7110_v5 = vpop.eup %7109  ;;  %v3734_v25 = vadd.f32 1e-05, %v3702_v62  ;;  %4587 = vrot.lane.b32.xlu0 %v3881_v26, %s7289_s8  ;;  %v3852_v30 = vadd.f32 %v10022_v40, %v3820_v59  ;;  %v3790_v58 = vmul.f32 %v7108_v55, %v11841_v15  ;;  %v10378_v62 = vpop.f32.mrf.mxu1  ;;  %v11843_v15 = vld [vmem:[#allocation148_spill] sm:$0xff] }
 0x33e   :  { %v3640_v29 = vpop.xlane.xlu1 %3639  ;;  %v3795_v46 = vmul.f32 %v7110_v5, %v11842_v42  ;;  %v3741_v13 = vadd.f32 1e-05, %v3709_v50  ;;  %v3857_v47 = vadd.f32 %v10022_v40, %v3825_v45  ;;  %v10386_v5 = vpop.f32.mrf.mxu0 }
 0x33f   :  { %7123 = vrsqrt.f32 %v3734_v25  ;;  %v3704_v60 = vmul.f32 0.03125, %v3640_v29  ;;  %6795 = vmatmul.mubr.msk.f32.gmra.mxu0 %vm66_vm0, %v3852_v30  ;;  %6851 = vmatmul.mubr.msk.f32.gmra.mxu1 %vm66_vm0, %v3852_v30  ;;  %v3882_v7 = vpack.c.bf16 %v3852_v30, %v3851_v2  ;;  %v3822_v53 = vmul.f32 %v10035_v56, %v3790_v58 }
 0x340   :  { %v7112_v4 = vpop.eup %7111  ;;  %6797 = vmatprep.mubr.msk.f32.mxu0 %vm66_vm0, %v3853_v0  ;;  %6853 = vmatprep.mubr.msk.f32.mxu1 %vm66_vm0, %v3853_v0  ;;  %7125 = vrsqrt.f32 %v3739_v14  ;;  %v3711_v2 = vmul.f32 0.03125, %v3661_v11  ;;  %v11844_v11 = vld [vmem:[#allocation140_spill] sm:$0xff] }
 0x341   :  { %v3736_v52 = vadd.f32 1e-05, %v3704_v60  ;;  %4589 = vrot.lane.b32.xlu1 %v3882_v7, %s7289_s8  ;;  %v3854_v21 = vadd.f32 %v10022_v40, %v3822_v53  ;;  %v3792_v32 = vmul.f32 %v7112_v4, %v9808_v3  ;;  %v7114_v20 = vpop.eup %7113  ;;  %v10393_v7 = vpop.f32.mrf.mxu1 }
 0x342   :  { %v3646_v44 = vpop.xlane.xlu1 %3645  ;;  %v3743_v50 = vadd.f32 1e-05, %v3711_v2  ;;  %v3797_v60 = vmul.f32 %v7114_v20, %v11844_v11  ;;  %v11846_v2 = vld [vmem:[#allocation142_spill] sm:$0xff] }
 0x343   :  { %7127 = vrsqrt.f32 %v3736_v52  ;;  %v3706_v26 = vmul.f32 0.03125, %v3646_v44  ;;  %v3667_v59 = vpop.xlane.xlu0 %3666  ;;  %6798 = vmatmul.mubr.msk.f32.gmra.mxu0 %vm66_vm0, %v3854_v21  ;;  %6854 = vmatmul.mubr.msk.f32.gmra.mxu1 %vm66_vm0, %v3854_v21  ;;  %v3883_v55 = vpack.c.bf16 %v3854_v21, %v3853_v0  ;;  %v3824_v3 = vmul.f32 %v10035_v56, %v3792_v32  ;;  %v10400_v21 = vpop.f32.mrf.mxu0 }
 0x344   :  { %v7116_v39 = vpop.eup %7115  ;;  %6800 = vmatprep.mubr.msk.f32.mxu0 %vm66_vm0, %v3855_v48  ;;  %6856 = vmatprep.mubr.msk.f32.mxu1 %vm66_vm0, %v3855_v48  ;;  %v3827_v0 = vmul.f32 %v10035_v56, %v3795_v46  ;;  %7129 = vrsqrt.f32 %v3741_v13  ;;  %v3713_v29 = vmul.f32 0.03125, %v3667_v59  ;;  %v11845_v46 = vld [vmem:[#allocation150_spill] sm:$0xff] }
 0x345   :  { %v3738_v25 = vadd.f32 1e-05, %v3706_v26  ;;  %4591 = vrot.lane.b32.xlu0 %v3883_v55, %s7289_s8  ;;  %v3856_v30 = vadd.f32 %v10022_v40, %v3824_v3  ;;  %v3794_v58 = vmul.f32 %v7116_v39, %v11843_v15  ;;  %v7118_v14 = vpop.eup %7117  ;;  %v3829_v55 = vmul.f32 %v10035_v56, %v3797_v60  ;;  %v10408_v39 = vpop.f32.mrf.mxu1 }
 0x346   :  { %v3652_v54 = vpop.xlane.xlu1 %3651  ;;  %v3799_v44 = vmul.f32 %v7118_v14, %v11846_v2  ;;  %v3859_v59 = vadd.f32 %v10022_v40, %v3827_v0  ;;  %v10420_v60 = vpop.f32.mrf.mxu0 }
 0x347   :  { %7131 = vrsqrt.f32 %v3738_v25  ;;  %v3708_v53 = vmul.f32 0.03125, %v3652_v54  ;;  %6801 = vmatmul.mubr.msk.f32.gmra.mxu0 %vm66_vm0, %v3856_v30  ;;  %6857 = vmatmul.mubr.msk.f32.gmra.mxu1 %vm66_vm0, %v3856_v30  ;;  %v3884_v4 = vpack.c.bf16 %v3856_v30, %v3855_v48  ;;  %v3826_v45 = vmul.f32 %v10035_v56, %v3794_v58  ;;  %v10415_v14 = vpop.f32.mrf.mxu1 }
 0x348   :  { %v7120_v52 = vpop.eup %7119  ;;  %6803 = vmatprep.mubr.msk.f32.mxu0 %vm66_vm0, %v3857_v47  ;;  %6859 = vmatprep.mubr.msk.f32.mxu1 %vm66_vm0, %v3857_v47  ;;  %7133 = vrsqrt.f32 %v3743_v50  ;;  %v3745_v48 = vadd.f32 1e-05, %v3713_v29  ;;  %v11847_v29 = vld [vmem:[#allocation151_spill] sm:$0xff]  ;;  %v3831_v11 = vmul.f32 %v10035_v56, %v3799_v44 }
 0x349   :  { %v3740_v32 = vadd.f32 1e-05, %v3708_v53  ;;  %4593 = vrot.lane.b32.xlu1 %v3884_v4, %s7289_s8  ;;  %v3858_v42 = vadd.f32 %v10022_v40, %v3826_v45  ;;  %v3796_v13 = vmul.f32 %v7120_v52, %v11845_v46  ;;  %v7122_v3 = vpop.eup %7121  ;;  %v11848_v45 = vld [vmem:[#allocation144_spill] sm:$0xff] }
 0x34a   :  { %v3658_v20 = vpop.xlane.xlu1 %3657  ;;  %v3801_v52 = vmul.f32 %v7122_v3, %v11848_v45  ;;  %v10427_v46 = vld [vmem:[%s11469_s2] ss:$0 sm:$0xff] }
 0x34b   :  { %v3673_v26 = vpop.xlane.xlu0 %3672  ;;  %7135 = vrsqrt.f32 %v3740_v32  ;;  %v3710_v25 = vmul.f32 0.03125, %v3658_v20  ;;  %6804 = vmatmul.mubr.msk.f32.gmra.mxu0 %vm66_vm0, %v3858_v42  ;;  %6860 = vmatmul.mubr.msk.f32.gmra.mxu1 %vm66_vm0, %v3858_v42  ;;  %v3885_v15 = vpack.c.bf16 %v3858_v42, %v3857_v47  ;;  %v3828_v0 = vmul.f32 %v10035_v56, %v3796_v13 }
 0x34c   :  { %v3715_v30 = vmul.f32 0.03125, %v3673_v26  ;;  %v7124_v58 = vpop.eup %7123  ;;  %6806 = vmatprep.mubr.msk.f32.mxu0 %vm66_vm0, %v3859_v59  ;;  %6862 = vmatprep.mubr.msk.f32.mxu1 %vm66_vm0, %v3859_v59  ;;  %7137 = vrsqrt.f32 %v3745_v48  ;;  %v3861_v13 = vadd.f32 %v10427_v46, %v3829_v55  ;;  %v10433_v48 = vpop.f32.mrf.mxu1 }
 0x34d   :  { %v3742_v50 = vadd.f32 1e-05, %v3710_v25  ;;  %4595 = vrot.lane.b32.xlu0 %v3885_v15, %s7289_s8  ;;  %v3798_v54 = vmul.f32 %v7124_v58, %v11847_v29  ;;  %v3860_v4 = vadd.f32 %v10022_v40, %v3828_v0  ;;  %v7126_v32 = vpop.eup %7125  ;;  %v10439_v55 = vpop.f32.mrf.mxu0  ;;  %v3863_v25 = vadd.f32 %v10427_v46, %v3831_v11  ;;  %v11849_v15 = vld [vmem:[#allocation147_spill] sm:$0xff] }
 0x34e   :  { %v3747_v47 = vadd.f32 1e-05, %v3715_v30  ;;  %v3664_v53 = vpop.xlane.xlu1 %3663  ;;  %v3803_v58 = vmul.f32 %v7126_v32, %v11849_v15  ;;  %v10453_v11 = vpop.f32.mrf.mxu1 }
 0x34f   :  { %7139 = vrsqrt.f32 %v3742_v50  ;;  %v3712_v42 = vmul.f32 0.03125, %v3664_v53  ;;  %v3830_v2 = vmul.f32 %v10035_v56, %v3798_v54  ;;  %6807 = vmatmul.mubr.msk.f32.gmra.mxu0 %vm66_vm0, %v3860_v4  ;;  %6863 = vmatmul.mubr.msk.f32.gmra.mxu1 %vm66_vm0, %v3860_v4  ;;  %v3886_v40 = vpack.c.bf16 %v3860_v4, %v3859_v59  ;;  %v10446_v59 = vld [vmem:[%s11468_s1] ss:$0 sm:$0xff]  ;;  %s7290_s1 = smov [#allocation2]  }
 0x350   :  { %v7128_v44 = vpop.eup %7127  ;;  %6809 = vmatprep.mubr.msk.f32.mxu0 %vm66_vm0, %v3861_v13  ;;  %6865 = vmatprep.mubr.msk.f32.mxu1 %vm66_vm0, %v3861_v13  ;;  %7141 = vrsqrt.f32 %v3747_v47  ;;  %v3833_v30 = vmul.f32 %v10446_v59, %v3801_v52  ;;  %v11850_v52 = vld [vmem:[#allocation153_spill] sm:$0xff]  ;;  %s5682_s12 = sshll.u32 %s7290_s1, 4  ;;  %s5683_s12 = int_to_ptr.vmem [resolvable:$true] %s5682_s12 }
 0x351   :  { %v3744_v20 = vadd.f32 1e-05, %v3712_v42  ;;  %v3862_v26 = vadd.f32 %v10427_v46, %v3830_v2  ;;  %v3800_v3 = vmul.f32 %v7128_v44, %v9860_v51  ;;  %4597 = vrot.lane.b32.xlu1 %v3886_v40, %s7289_s8  ;;  %v7130_v0 = vpop.eup %7129  ;;  %v10459_v42 = vpop.f32.mrf.mxu0  ;;  %v3835_v40 = vmul.f32 %v10446_v59, %v3803_v58  ;;  %s7243_s0 = scalar_lea.vmem %s5683_s12, 2048  ;;  %p7248_p1 = scmp.lt.s32.totalorder %s5683_s12, %s5683_s12 }
 0x352   :  { %v3670_v56 = vpop.xlane.xlu1 %3669  ;;  %v3865_v44 = vadd.f32 %v10427_v46, %v3833_v30  ;;  %p7244_p0 = scmp.ne.s32.totalorder %s5683_s12, %s7243_s0  ;;  %p7249_p2 = scmp.lt.s32.totalorder %s7243_s0, %s7243_s0 }
 0x353   :  { %7143 = vrsqrt.f32 %v3744_v20  ;;  %v3714_v51 = vmul.f32 0.03125, %v3670_v56  ;;  %v3887_v29 = vpack.c.bf16 %v3862_v26, %v3861_v13  ;;  %v3832_v54 = vmul.f32 %v10446_v59, %v3800_v3  ;;  %6810 = vmatmul.mubr.msk.f32.gmra.mxu0 %vm66_vm0, %v3862_v26  ;;  %6866 = vmatmul.mubr.msk.f32.gmra.mxu1 %vm66_vm0, %v3862_v26  ;;  %v11851_v20 = vld [vmem:[#allocation149_spill] sm:$0xff] }
 0x354   :  { %v3679_v50 = vpop.xlane.xlu0 %3678  ;;  %v7132_v47 = vpop.eup %7131  ;;  %6812 = vmatprep.mubr.msk.f32.mxu0 %vm66_vm0, %v3863_v25  ;;  %6868 = vmatprep.mubr.msk.f32.mxu1 %vm66_vm0, %v3863_v25  ;;  %v3805_v26 = vmul.f32 %v7130_v0, %v11851_v20  ;;  %p7250_p3 = por %p7249_p2, %p7248_p1 }
 0x355   :  { %v3717_v53 = vmul.f32 0.03125, %v3679_v50  ;;  %v3746_v4 = vadd.f32 1e-05, %v3714_v51  ;;  %v3864_v45 = vadd.f32 %v10427_v46, %v3832_v54  ;;  %v3802_v32 = vmul.f32 %v7132_v47, %v11850_v52  ;;  %4599 = vrot.lane.b32.xlu0 %v3887_v29, %s7289_s8  ;;  %v7134_v3 = vpop.eup %7133  ;;  %v10468_v29 = vpop.f32.mrf.mxu1 }
 0x356   :  { %v3867_v47 = vadd.f32 %v10427_v46, %v3835_v40  ;;  %p7251_p4 = pnand %p7250_p3, %p7244_p0 }
 0x357   :  { %v3749_v13 = vadd.f32 1e-05, %v3717_v53  ;;  %v3676_v2 = vpop.xlane.xlu1 %3675  ;;  %7145 = vrsqrt.f32 %v3746_v4  ;;  %v3888_v15 = vpack.c.bf16 %v3864_v45, %v3863_v25  ;;  %v3834_v51 = vmul.f32 %v10446_v59, %v3802_v32  ;;  %6813 = vmatmul.mubr.msk.f32.gmra.mxu0 %vm66_vm0, %v3864_v45  ;;  %6869 = vmatmul.mubr.msk.f32.gmra.mxu1 %vm66_vm0, %v3864_v45  ;;  %v10474_v25 = vpop.f32.mrf.mxu0  ;;  %v11852_v4 = vld [vmem:[#allocation152_spill] sm:$0xff] }
 0x358   :  { %v3716_v56 = vmul.f32 0.03125, %v3676_v2  ;;  %v7136_v50 = vpop.eup %7135  ;;  %6815 = vmatprep.mubr.msk.f32.mxu0 %vm66_vm0, %v3865_v44  ;;  %6871 = vmatprep.mubr.msk.f32.mxu1 %vm66_vm0, %v3865_v44  ;;  %v3837_v53 = vmul.f32 %v10446_v59, %v3805_v26  ;;  %v3807_v45 = vmul.f32 %v7134_v3, %v11852_v4  ;;  %v10487_v3 = vpop.f32.mrf.mxu1 }
 0x359   :  { %7147 = vrsqrt.f32 %v3749_v13  ;;  %v3866_v30 = vadd.f32 %v10427_v46, %v3834_v51  ;;  %v3804_v58 = vmul.f32 %v7136_v50, %v9880_v41  ;;  %4601 = vrot.lane.b32.xlu1 %v3888_v15, %s7289_s8  ;;  %v7138_v52 = vpop.eup %7137  ;;  %11853 = vst [vmem:[#allocation123_spill] sm:$0xff] %v10487_v3 }
 0x35a   :  { %v3748_v54 = vadd.f32 1e-05, %v3716_v56  ;;  %v3869_v50 = vadd.f32 %v10427_v46, %v3837_v53 }
 0x35b   :  { %v3682_v0 = vpop.xlane.xlu1 %3681  ;;  %v3889_v2 = vpack.c.bf16 %v3866_v30, %v3865_v44  ;;  %v3836_v20 = vmul.f32 %v10446_v59, %v3804_v58  ;;  %6816 = vmatmul.mubr.msk.f32.gmra.mxu0 %vm66_vm0, %v3866_v30  ;;  %6872 = vmatmul.mubr.msk.f32.gmra.mxu1 %vm66_vm0, %v3866_v30  ;;  %v10489_v44 = vpop.f32.mrf.mxu0 }
 0x35c   :  { %7149 = vrsqrt.f32 %v3748_v54  ;;  %v3718_v32 = vmul.f32 0.03125, %v3682_v0  ;;  %v3685_v13 = vpop.xlane.xlu0 %3684  ;;  %v7140_v56 = vpop.eup %7139  ;;  %6818 = vmatprep.mubr.msk.f32.mxu0 %vm66_vm0, %v3867_v47  ;;  %6874 = vmatprep.mubr.msk.f32.mxu1 %vm66_vm0, %v3867_v47  ;;  %v11854_v54 = vld [vmem:[#allocation154_spill] sm:$0xff] }
 0x35d   :  { %v3719_v41 = vmul.f32 0.03125, %v3685_v13  ;;  %v3868_v40 = vadd.f32 %v10427_v46, %v3836_v20  ;;  %v3806_v26 = vmul.f32 %v7140_v56, %v9890_v36  ;;  %4603 = vrot.lane.b32.xlu0 %v3889_v2, %s7289_s8  ;;  %v3809_v30 = vmul.f32 %v7138_v52, %v11854_v54  ;;  %v7142_v58 = vpop.eup %7141  ;;  %v11855_v52 = vld [vmem:[#allocation155_spill] sm:$0xff] }
 0x35e   :  { %v3750_v15 = vadd.f32 1e-05, %v3718_v32  ;;  %v3839_v36 = vmul.f32 %v10446_v59, %v3807_v45 }
 0x35f   :  { %v3751_v51 = vadd.f32 1e-05, %v3719_v41  ;;  %v3688_v0 = vpop.xlane.xlu1 %3687  ;;  %v3890_v32 = vpack.c.bf16 %v3868_v40, %v3867_v47  ;;  %v3838_v13 = vmul.f32 %v10446_v59, %v3806_v26  ;;  %6819 = vmatmul.mubr.msk.f32.gmra.mxu0 %vm66_vm0, %v3868_v40  ;;  %6875 = vmatmul.mubr.msk.f32.gmra.mxu1 %vm66_vm0, %v3868_v40  ;;  %v10504_v47 = vpop.f32.mrf.mxu1 }
 0x360   :  { %7151 = vrsqrt.f32 %v3750_v15  ;;  %v10494_v4 = vpop.permute.xlu0 %4491  ;;  %v7144_v20 = vpop.eup %7143  ;;  %v3720_v56 = vmul.f32 0.03125, %v3688_v0  ;;  %6821 = vmatprep.mubr.msk.f32.mxu0 %vm66_vm0, %v3869_v50  ;;  %6877 = vmatprep.mubr.msk.f32.mxu1 %vm66_vm0, %v3869_v50  ;;  %11856 = vst [vmem:[#allocation59_spill] sm:$0xff] %v10504_v47  ;;  %v3841_v15 = vmul.f32 %v10446_v59, %v3809_v30 }
 0x361   :  { %7153 = vrsqrt.f32 %v3751_v51  ;;  %v3870_v53 = vadd.f32 %v10427_v46, %v3838_v13  ;;  %v3808_v2 = vmul.f32 %v7144_v20, %v11855_v52  ;;  %v10506_v41 = vpop.f32.mrf.mxu0  ;;  %4605 = vrot.lane.b32.xlu1 %v3890_v32, %s7289_s8  ;;  %v3871_v51 = vadd.f32 %v10427_v46, %v3839_v36  ;;  %v11857_v13 = vld [vmem:[#allocation156_spill] sm:$0xff] }
 0x362   :  { %v3752_v45 = vadd.f32 1e-05, %v3720_v56  ;;  %v3811_v20 = vmul.f32 %v7142_v58, %v11857_v13  ;;  %v3873_v58 = vadd.f32 %v10427_v46, %v3841_v15 }
 0x363   :  { %v10510_v26 = vpop.permute.xlu1 %4493  ;;  %v3891_v54 = vpack.c.bf16 %v3870_v53, %v3869_v50  ;;  %v3840_v0 = vmul.f32 %v10446_v59, %v3808_v2  ;;  %6822 = vmatmul.mubr.msk.f32.gmra.mxu0 %vm66_vm0, %v3870_v53  ;;  %6878 = vmatmul.mubr.msk.f32.gmra.mxu1 %vm66_vm0, %v3870_v53  ;;  %v10523_v50 = vpop.f32.mrf.mxu1 }
 0x364   :  { %v10512_v40 = vpop.permute.xlu0 %4499  ;;  %v7146_v52 = vpop.eup %7145  ;;  %7155 = vrsqrt.f32 %v3752_v45  ;;  %6824 = vmatprep.mubr.msk.f32.mxu0 %vm66_vm0, %v3871_v51  ;;  %6880 = vmatprep.mubr.msk.f32.mxu1 %vm66_vm0, %v3871_v51  ;;  %11858 = vst [vmem:[#allocation52_spill] sm:$0xff] %v10523_v50  ;;  %v3843_v3 = vmul.f32 %v10446_v59, %v3811_v20 }
 0x365   :  { %v3872_v30 = vadd.f32 %v10427_v46, %v3840_v0  ;;  %v3810_v36 = vmul.f32 %v7146_v52, %v9911_v12  ;;  %v10525_v56 = vpop.f32.mrf.mxu0  ;;  %4607 = vrot.lane.b32.xlu0 %v3891_v54, %s7289_s8 }
 0x366   :  { %v7148_v32 = vpop.eup %7147  ;;  %v3875_v20 = vadd.f32 %v10427_v46, %v3843_v3 }
 0x367   :  { %v10529_v2 = vpop.permute.xlu1 %4495  ;;  %v3892_v45 = vpack.c.bf16 %v3872_v30, %v3871_v51  ;;  %v3842_v13 = vmul.f32 %v10446_v59, %v3810_v36  ;;  %v3813_v0 = vmul.f32 %v7148_v32, %v9927_v61  ;;  %6825 = vmatmul.mubr.msk.f32.gmra.mxu0 %vm66_vm0, %v3872_v30  ;;  %6881 = vmatmul.mubr.msk.f32.gmra.mxu1 %vm66_vm0, %v3872_v30  ;;  %v10542_v51 = vpop.f32.mrf.mxu1 }
 0x368   :  { %v10531_v53 = vpop.permute.xlu0 %4503  ;;  %6827 = vmatprep.mubr.msk.f32.mxu0 %vm66_vm0, %v3873_v58  ;;  %6883 = vmatprep.mubr.msk.f32.mxu1 %vm66_vm0, %v3873_v58  ;;  %11859 = vst [vmem:[#allocation75_spill] sm:$0xff] %v10542_v51  ;;  %v10544_v52 = vpop.f32.mrf.mxu0 }
 0x369   :  { %v7150_v12 = vpop.eup %7149  ;;  %v3874_v15 = vadd.f32 %v10427_v46, %v3842_v13  ;;  %4609 = vrot.lane.b32.xlu1 %v3892_v45, %s7289_s8  ;;  %v3845_v36 = vmul.f32 %v10446_v59, %v3813_v0 }
 0x36a   :  { %v3812_v54 = vmul.f32 %v7150_v12, %v9919_v43  ;;  %v10562_v12 = vpop.f32.mrf.mxu0 }
 0x36b   :  { %v10547_v61 = vpop.permute.xlu1 %4497  ;;  %v3893_v32 = vpack.c.bf16 %v3874_v15, %v3873_v58  ;;  %6828 = vmatmul.mubr.msk.f32.gmra.mxu0 %vm66_vm0, %v3874_v15  ;;  %6884 = vmatmul.mubr.msk.f32.gmra.mxu1 %vm66_vm0, %v3874_v15  ;;  %v10560_v58 = vpop.f32.mrf.mxu1 }
 0x36c   :  { %v3844_v30 = vmul.f32 %v10446_v59, %v3812_v54  ;;  %v10554_v13 = vpop.permute.xlu0 %4507  ;;  %6830 = vmatprep.mubr.msk.f32.mxu0 %vm66_vm0, %v3875_v20  ;;  %6886 = vmatprep.mubr.msk.f32.mxu1 %vm66_vm0, %v3875_v20  ;;  %v3877_v54 = vadd.f32 %v10427_v46, %v3845_v36 }
 0x36d   :  { %v7152_v50 = vpop.eup %7151  ;;  %4611 = vrot.lane.b32.xlu0 %v3893_v32, %s7289_s8  ;;  %v10576_v32 = vpop.f32.mrf.mxu1 }
 0x36e   :  { %v7154_v43 = vpop.eup %7153  ;;  %v3876_v45 = vadd.f32 %v10427_v46, %v3844_v30  ;;  %v3814_v3 = vmul.f32 %v7152_v50, %v9944_v24  ;;  %v10578_v30 = vpop.f32.mrf.mxu0 }
 0x36f   :  { %v3815_v0 = vmul.f32 %v7154_v43, %v9969_v8  ;;  %v10566_v15 = vpop.permute.xlu1 %4501 }
 0x370   :  { %v3894_v51 = vpack.c.bf16 %v3876_v45, %v3875_v20  ;;  %v3846_v47 = vmul.f32 %v10446_v59, %v3814_v3  ;;  %6831 = vmatmul.mubr.msk.f32.gmra.mxu0 %vm66_vm0, %v3876_v45  ;;  %6887 = vmatmul.mubr.msk.f32.gmra.mxu1 %vm66_vm0, %v3876_v45  ;;  %v10583_v43 = vpop.permute.xlu0 %4511 }
 0x371   :  { %v3847_v24 = vmul.f32 %v10446_v59, %v3815_v0  ;;  %v7156_v50 = vpop.eup %7155  ;;  %6833 = vmatprep.mubr.msk.f32.mxu0 %vm66_vm0, %v3877_v54  ;;  %6889 = vmatprep.mubr.msk.f32.mxu1 %vm66_vm0, %v3877_v54  ;;  %v1965_v0 = vpop.f32.mrf.mxu0 }
 0x372   :  { %v3878_v8 = vadd.f32 %v10427_v46, %v3846_v47  ;;  %4613 = vrot.lane.b32.xlu1 %v3894_v51, %s7289_s8  ;;  %v3816_v36 = vmul.f32 %v7156_v50, %v9989_v37  ;;  %v10592_v51 = vpop.f32.mrf.mxu1 }
 0x373   :  { %v3879_v20 = vadd.f32 %v10427_v46, %v3847_v24  ;;  %v10585_v45 = vpop.permute.xlu1 %4505 }
 0x374   :  { %v3895_v3 = vpack.c.bf16 %v3878_v8, %v3877_v54  ;;  %6834 = vmatmul.mubr.msk.f32.gmra.mxu0 %vm66_vm0, %v3878_v8  ;;  %6890 = vmatmul.mubr.msk.f32.gmra.mxu1 %vm66_vm0, %v3878_v8  ;;  %v3848_v47 = vmul.f32 %v10446_v59, %v3816_v36  ;;  %v2004_v54 = vpack.c.bf16 %v10228_v16, %v10239_v17  ;;  %v10602_v50 = vpop.permute.xlu0 %4515  ;;  %v10604_v8 = vpop.f32.mrf.mxu1 }
 0x375   :  { %6836 = vmatprep.mubr.msk.f32.mxu0 %vm66_vm0, %v3879_v20  ;;  %6892 = vmatprep.mubr.msk.f32.mxu1 %vm66_vm0, %v3879_v20  ;;  %v6608_v36 = vpop.f32.mrf.mxu0  ;;  %v2006_v16 = vpack.c.bf16 %v10264_v34, %v10276_v22 }
 0x376   :  { %4615 = vrot.lane.b32.xlu0 %v3895_v3, %s7289_s8  ;;  %v3880_v37 = vadd.f32 %v10427_v46, %v3848_v47  ;;  %v2005_v3 = vpack.c.bf16 %v10247_v6, %v10256_v38  ;;  %v10614_v17 = vpop.f32.mrf.mxu1  ;;  %v2008_v6 = vpack.c.bf16 %v10318_v9, %v10333_v19  ;;  %v2011_v9 = vpack.c.bf16 %v10400_v21, %v10420_v60 }
 0x377   :  { %v10596_v24 = vpop.permute.xlu1 %4509  ;;  %11860 = vst [vmem:[#allocation70_spill] sm:$0xff] %v10614_v17  ;;  %v2012_v19 = vpack.c.bf16 %v10439_v55, %v10459_v42  ;;  %v2014_v21 = vpack.c.bf16 %v10506_v41, %v10525_v56 }
 0x378   :  { %6837 = vmatmul.mubr.msk.f32.gmra.mxu0 %vm66_vm0, %v3880_v37  ;;  %6893 = vmatmul.mubr.msk.f32.gmra.mxu1 %vm66_vm0, %v3880_v37  ;;  %v3896_v59 = vpack.c.bf16 %v3880_v37, %v3879_v20  ;;  %v1975_v20 = vpop.f32.mrf.mxu0  ;;  %v10618_v47 = vpop.permute.xlu0 %4519 }
 0x379   :  { %v10626_v38 = vpop.f32.mrf.mxu1  ;;  %v2017_v41 = vpack.c.bf16 %v6608_v36, %v1975_v20 }
 0x37a   :  { %4617 = vrot.lane.b32.xlu1 %v3896_v59, %s7289_s8  ;;  %4893 = vrot.lane.b32.xlu0 %v2004_v54, %s7287_s30  ;;  %v2007_v54 = vpack.c.bf16 %v10288_v27, %v10303_v57  ;;  %11861 = vst [vmem:[#allocation124_spill] sm:$0xff] %v10626_v38  ;;  %v6611_v34 = vpop.f32.mrf.mxu0  ;;  %v2009_v59 = vpack.c.bf16 %v10341_v33, %v10356_v10  ;;  %v11878_v38 = vld [vmem:[#allocation27_spill] sm:$0xff] }
 0x37b   :  { %v10608_v46 = vpop.permute.xlu1 %4513  ;;  %v10638_v27 = vpop.f32.mrf.mxu1 }
 0x37c   :  { %11862 = vst [vmem:[#allocation69_spill] sm:$0xff] %v10638_v27  ;;  %v1985_v57 = vpop.f32.mrf.mxu0 }
 0x37d   :  { %v10648_v10 = vpop.f32.mrf.mxu1  ;;  %v2018_v56 = vpack.c.bf16 %v6611_v34, %v1985_v57 }
 0x37e   :  { %4895 = vrot.lane.b32.xlu1 %v2005_v3, %s7287_s30  ;;  %4897 = vrot.lane.b32.xlu0 %v2006_v16, %s7287_s30  ;;  %v2010_v3 = vpack.c.bf16 %v10371_v1, %v10386_v5  ;;  %v10636_v16 = vpop.permute.xlu0 %4539  ;;  %v6614_v33 = vpop.f32.mrf.mxu0  ;;  %11863 = vst [vmem:[#allocation64_spill] sm:$0xff] %v10648_v10  ;;  %v2013_v5 = vpack.c.bf16 %v10474_v25, %v10489_v44 }
 0x37f   :  { %v10620_v37 = vpop.permute.xlu1 %4517 }
 0x380   :  { %v1995_v60 = vpop.f32.mrf.mxu0 }
 0x382   :  { %4899 = vrot.lane.b32.xlu1 %v2007_v54, %s7287_s30  ;;  %4901 = vrot.lane.b32.xlu0 %v2008_v6, %s7287_s30  ;;  %v10652_v1 = vpop.permute.xlu0 %4543  ;;  %v10658_v6 = vpop.f32.mrf.mxu1 }
 0x383   :  { %v10630_v22 = vpop.permute.xlu1 %4521  ;;  %11864 = vst [vmem:[#allocation87_spill] sm:$0xff] %v10658_v6 }
 0x384   :  { %v10669_v25 = vpop.f32.mrf.mxu1 }
 0x385   :  { %11865 = vst [vmem:[#allocation82_spill] sm:$0xff] %v10669_v25 }
 0x386   :  { %4903 = vrot.lane.b32.xlu1 %v2009_v59, %s7287_s30  ;;  %4905 = vrot.lane.b32.xlu0 %v2010_v3, %s7287_s30  ;;  %v2015_v59 = vpack.c.bf16 %v10544_v52, %v10562_v12  ;;  %v2016_v3 = vpack.c.bf16 %v10578_v30, %v1965_v0  ;;  %v2019_v12 = vpack.c.bf16 %v6614_v33, %v1995_v60 }
 0x387   :  { %v10646_v54 = vpop.permute.xlu1 %4541 }
 0x38a   :  { %4907 = vrot.lane.b32.xlu1 %v2011_v9, %s7287_s30  ;;  %4909 = vrot.lane.b32.xlu0 %v2012_v19, %s7287_s30  ;;  %v10667_v9 = vpop.permute.xlu0 %4547 }
 0x38b   :  { %v10660_v55 = vpop.permute.xlu1 %4545  ;;  %v6681_v42 = vpop.f32.mrf.mxu0 }
 0x38d   :  { %v2952_v44 = vpop.f32.mrf.mxu0 }
 0x38e   :  { %4911 = vrot.lane.b32.xlu1 %v2013_v5, %s7287_s30  ;;  %4913 = vrot.lane.b32.xlu0 %v2014_v21, %s7287_s30  ;;  %v10675_v21 = vpop.f32.mrf.mxu1  ;;  %v10679_v52 = vpop.permute.xlu0 %4551  ;;  %v3111_v30 = vpack.c.bf16 %v6681_v42, %v2952_v44 }
 0x38f   :  { %v10673_v19 = vpop.permute.xlu1 %4549  ;;  %11866 = vst [vmem:[#allocation125_spill] sm:$0xff] %v10675_v21 }
 0x392   :  { %4915 = vrot.lane.b32.xlu1 %v2015_v59, %s7287_s30  ;;  %4917 = vrot.lane.b32.xlu0 %v2016_v3, %s7287_s30  ;;  %v10681_v59 = vpop.f32.mrf.mxu1  ;;  %v10689_v57 = vpop.permute.xlu0 %4555 }
 0x393   :  { %v6684_v5 = vpop.f32.mrf.mxu0  ;;  %11867 = vst [vmem:[#allocation81_spill] sm:$0xff] %v10681_v59  ;;  %v10683_v3 = vpop.permute.xlu1 %4553  ;;  %v11875_v59 = vld [vmem:[#allocation24_spill] sm:$0xff] }
 0x394   :  { %v10687_v20 = vpop.f32.mrf.mxu1 }
 0x395   :  { %v2962_v0 = vpop.f32.mrf.mxu0  ;;  %11868 = vst [vmem:[#allocation76_spill] sm:$0xff] %v10687_v20 }
 0x396   :  { %4919 = vrot.lane.b32.xlu1 %v2017_v41, %s7287_s30  ;;  %4921 = vrot.lane.b32.xlu0 %v2018_v56, %s7287_s30  ;;  %v3112_v34 = vpack.c.bf16 %v6684_v5, %v2962_v0  ;;  %v10692_v33 = vpop.f32.mrf.mxu1  ;;  %v10699_v44 = vpop.permute.xlu0 %4559 }
 0x397   :  { %11869 = vst [vmem:[#allocation97_spill] sm:$0xff] %v10692_v33  ;;  %v10694_v60 = vpop.permute.xlu1 %4557 }
 0x398   :  { %v10697_v42 = vpop.f32.mrf.mxu1 }
 0x399   :  { %11870 = vst [vmem:[#allocation94_spill] sm:$0xff] %v10697_v42 }
 0x39a   :  { %4941 = vrot.lane.b32.xlu0 %v3111_v30, %s7288_s7  ;;  %4923 = vrot.lane.b32.xlu1 %v2019_v12, %s7287_s30  ;;  %v10701_v20 = vpop.f32.mrf.mxu1 }
 0x39b   :  { %v6687_v36 = vpop.f32.mrf.mxu0  ;;  %11871 = vst [vmem:[#allocation128_spill] sm:$0xff] %v10701_v20  ;;  %v10703_v5 = vpop.permute.xlu1 %4561  ;;  %v11874_v20 = vld [vmem:[#allocation25_spill] sm:$0xff] }
 0x39d   :  { %v2972_v41 = vpop.f32.mrf.mxu0 }
 0x39e   :  { %v3113_v56 = vpack.c.bf16 %v6687_v36, %v2972_v41  ;;  %4943 = vrot.lane.b32.xlu1 %v3112_v34, %s7288_s7  ;;  %v10707_v34 = vpop.f32.mrf.mxu1 }
 0x39f   :  { %v10705_v36 = vpop.permute.xlu0 %4563  ;;  %11872 = vst [vmem:[#allocation93_spill] sm:$0xff] %v10707_v34 }
 0x3a0   :  { %4945 = vrot.lane.b32.xlu0 %v3113_v56, %s7288_s7  ;;  %v10714_v33 = vpop.f32.mrf.mxu1 }
 0x3a1   :  { %11873 = vst [vmem:[#allocation88_spill] sm:$0xff] %v10714_v33 }
 0x3a2   :  { %v10721_v6 = vpop.f32.mrf.mxu1 }
 0x3a3   :  { %v6690_v12 = vpop.f32.mrf.mxu0  ;;  %v10710_v41 = vpop.permute.xlu1 %4565  ;;  %11877 = vst [vmem:[#allocation109_spill] sm:$0xff] %v10721_v6 }
 0x3a5   :  { %v2982_v30 = vpop.f32.mrf.mxu0 }
 0x3a6   :  { %v3114_v0 = vpack.c.bf16 %v6690_v12, %v2982_v30  ;;  %v11876_v12 = vpack.c.bf16 %v11874_v20, %v11875_v59  ;;  %v11879_v59 = vld [vmem:[#allocation26_spill] sm:$0xff] }
 0x3a7   :  { %v10712_v56 = vpop.permute.xlu0 %4567  ;;  %v11880_v20 = vpack.c.bf16 %v11878_v38, %v11879_v59  ;;  %v11881_v38 = vld [vmem:[#allocation29_spill] sm:$0xff]  ;;  %v11882_v59 = vld [vmem:[#allocation28_spill] sm:$0xff] }
 0x3a8   :  { %4947 = vrot.lane.b32.xlu1 %v3114_v0, %s7288_s7  ;;  %v4621_v30 = vsel %vm66_vm0, %v11876_v12, %v10494_v4  ;;  %v10734_v12 = vpop.f32.mrf.mxu1 }
 0x3a9   :  { %v4669_v0 = vsel %vm4667_vm1, %v4621_v30, %v10636_v16  ;;  %v4624_v4 = vsel %vm66_vm0, %v11880_v20, %v10510_v26  ;;  %v11883_v26 = vpack.c.bf16 %v11881_v38, %v11882_v59  ;;  %v11885_v38 = vld [vmem:[#allocation30_spill] sm:$0xff] }
 0x3aa   :  { %v4671_v16 = vsel %vm4667_vm1, %v4624_v4, %v10646_v54 }
 0x3ab   :  { %v6693_v42 = vpop.f32.mrf.mxu0  ;;  %v10725_v25 = vpop.permute.xlu1 %4569  ;;  %v4627_v20 = vsel %vm66_vm0, %v11883_v26, %v10529_v2 }
 0x3ac   :  { %v4673_v54 = vsel %vm4667_vm1, %v4627_v20, %v10652_v1 }
 0x3ad   :  { %v2992_v21 = vpop.f32.mrf.mxu0 }
 0x3ae   :  { %v3115_v34 = vpack.c.bf16 %v6693_v42, %v2992_v21 }
 0x3af   :  { %v4588_v27 = vpop.permute.xlu0 %4587 }
 0x3b0   :  { %v4702_v10 = vsel %vm4700_vm2, %v4669_v0, %v4588_v27  ;;  %4949 = vrot.lane.b32.xlu0 %v3115_v34, %s7288_s7  ;;  %v10738_v27 = vpop.f32.mrf.mxu1 }
 0x3b1   :  { %v6063_v33 = vcombine.low %v4702_v10, %v4702_v10  ;;  %v6064_v17 = vcombine.high %v4702_v10, %v4702_v10 }
 0x3b3   :  { %4845 = vst [vmem:[#allocation2] sm:$0xf] %v6063_v33  ;;  %4846 = vst [vmem:[#allocation2 + $0x4] sm:$0xf] %v6064_v17  ;;  %v4590_v21 = vpop.permute.xlu1 %4589  ;;  %v6696_v42 = vpop.f32.mrf.mxu0 }
 0x3b4   :  { %v4704_v34 = vsel %vm4700_vm2, %v4671_v16, %v4590_v21  ;;  %v10748_v33 = vpop.f32.mrf.mxu1 }
 0x3b5   :  { %v6065_v10 = vcombine.low %v4704_v34, %v4704_v34  ;;  %v6066_v30 = vcombine.high %v4704_v34, %v4704_v34  ;;  %v3002_v0 = vpop.f32.mrf.mxu0  ;;  %v11884_v34 = vld [vmem:[#allocation31_spill] sm:$0xff] }
 0x3b6   :  { %v3116_v6 = vpack.c.bf16 %v6696_v42, %v3002_v0  ;;  %v11886_v59 = vpack.c.bf16 %v11884_v34, %v11885_v38  ;;  %v10757_v42 = vpop.f32.mrf.mxu1 }
 0x3b7   :  { %4847 = vst [vmem:[#allocation2 + $0x8] sm:$0xf] %v6065_v10  ;;  %4848 = vst [vmem:[#allocation2 + $0xc] sm:$0xf] %v6066_v30  ;;  %v4592_v17 = vpop.permute.xlu0 %4591 }
 0x3b8   :  { %v4706_v4 = vsel %vm4700_vm2, %v4673_v54, %v4592_v17  ;;  %4951 = vrot.lane.b32.xlu1 %v3116_v6, %s7288_s7  ;;  %v4630_v2 = vsel %vm66_vm0, %v11886_v59, %v10547_v61  ;;  %v11887_v54 = vld [vmem:[#allocation33_spill] sm:$0xff]  ;;  %v11888_v17 = vld [vmem:[#allocation32_spill] sm:$0xff] }
 0x3b9   :  { %v6067_v16 = vcombine.low %v4706_v4, %v4706_v4  ;;  %v6068_v21 = vcombine.high %v4706_v4, %v4706_v4  ;;  %v4675_v1 = vsel %vm4667_vm1, %v4630_v2, %v10660_v55  ;;  %v11889_v4 = vpack.c.bf16 %v11887_v54, %v11888_v17  ;;  %v10769_v55 = vpop.f32.mrf.mxu1 }
 0x3bb   :  { %4849 = vst [vmem:[#allocation2 + $0x10] sm:$0xf] %v6067_v16  ;;  %4850 = vst [vmem:[#allocation2 + $0x14] sm:$0xf] %v6068_v21  ;;  %v4594_v10 = vpop.permute.xlu1 %4593  ;;  %v6699_v30 = vpop.f32.mrf.mxu0  ;;  %v4633_v61 = vsel %vm66_vm0, %v11889_v4, %v10512_v40  ;;  %v11891_v40 = vld [vmem:[#allocation34_spill] sm:$0xff] }
 0x3bc   :  { %v4708_v0 = vsel %vm4700_vm2, %v4675_v1, %v4594_v10  ;;  %v4677_v38 = vsel %vm4667_vm1, %v4633_v61, %v10667_v9  ;;  %v10773_v59 = vpop.f32.mrf.mxu1  ;;  %v11890_v10 = vld [vmem:[#allocation35_spill] sm:$0xff] }
 0x3bd   :  { %v6069_v6 = vcombine.low %v4708_v0, %v4708_v0  ;;  %v6070_v26 = vcombine.high %v4708_v0, %v4708_v0  ;;  %v3012_v20 = vpop.f32.mrf.mxu0 }
 0x3be   :  { %v3117_v34 = vpack.c.bf16 %v6699_v30, %v3012_v20  ;;  %v11892_v30 = vpack.c.bf16 %v11890_v10, %v11891_v40  ;;  %v10782_v20 = vpop.f32.mrf.mxu1 }
 0x3bf   :  { %4851 = vst [vmem:[#allocation2 + $0x18] sm:$0xf] %v6069_v6  ;;  %4852 = vst [vmem:[#allocation2 + $0x1c] sm:$0xf] %v6070_v26  ;;  %v4596_v16 = vpop.permute.xlu0 %4595 }
 0x3c0   :  { %v4710_v21 = vsel %vm4700_vm2, %v4677_v38, %v4596_v16  ;;  %4953 = vrot.lane.b32.xlu0 %v3117_v34, %s7288_s7  ;;  %v4636_v0 = vsel %vm66_vm0, %v11892_v30, %v10566_v15  ;;  %v11893_v38 = vld [vmem:[#allocation37_spill] sm:$0xff]  ;;  %v11894_v16 = vld [vmem:[#allocation36_spill] sm:$0xff] }
 0x3c1   :  { %v6071_v2 = vcombine.low %v4710_v21, %v4710_v21  ;;  %v6072_v1 = vcombine.high %v4710_v21, %v4710_v21  ;;  %v4679_v6 = vsel %vm4667_vm1, %v4636_v0, %v10673_v19  ;;  %v11895_v21 = vpack.c.bf16 %v11893_v38, %v11894_v16  ;;  %v11896_v0 = vld [vmem:[#allocation39_spill] sm:$0xff] }
 0x3c3   :  { %4853 = vst [vmem:[#allocation2 + $0x20] sm:$0xf] %v6071_v2  ;;  %4854 = vst [vmem:[#allocation2 + $0x24] sm:$0xf] %v6072_v1  ;;  %v6702_v9 = vpop.f32.mrf.mxu0  ;;  %v4598_v26 = vpop.permute.xlu1 %4597  ;;  %v4639_v15 = vsel %vm66_vm0, %v11895_v21, %v10531_v53 }
 0x3c4   :  { %v4712_v54 = vsel %vm4700_vm2, %v4679_v6, %v4598_v26  ;;  %v10790_v2 = vpop.f32.mrf.mxu1  ;;  %v4681_v19 = vsel %vm4667_vm1, %v4639_v15, %v10679_v52  ;;  %v11899_v15 = vld [vmem:[#allocation41_spill] sm:$0xff] }
 0x3c5   :  { %v3022_v17 = vpop.f32.mrf.mxu0  ;;  %v6073_v4 = vcombine.low %v4712_v54, %v4712_v54  ;;  %v6074_v61 = vcombine.high %v4712_v54, %v4712_v54 }
 0x3c6   :  { %v3118_v34 = vpack.c.bf16 %v6702_v9, %v3022_v17  ;;  %v11897_v9 = vld [vmem:[#allocation38_spill] sm:$0xff]  ;;  %v10801_v26 = vpop.f32.mrf.mxu1 }
 0x3c7   :  { %4855 = vst [vmem:[#allocation2 + $0x28] sm:$0xf] %v6073_v4  ;;  %4856 = vst [vmem:[#allocation2 + $0x2c] sm:$0xf] %v6074_v61  ;;  %v4600_v1 = vpop.permute.xlu0 %4599  ;;  %v11898_v6 = vpack.c.bf16 %v11896_v0, %v11897_v9 }
 0x3c8   :  { %4955 = vrot.lane.b32.xlu1 %v3118_v34, %s7288_s7  ;;  %v4714_v10 = vsel %vm4700_vm2, %v4681_v19, %v4600_v1  ;;  %v10805_v4 = vpop.f32.mrf.mxu1 }
 0x3c9   :  { %v6075_v40 = vcombine.low %v4714_v10, %v4714_v10  ;;  %v6076_v30 = vcombine.high %v4714_v10, %v4714_v10  ;;  %v4642_v53 = vsel %vm66_vm0, %v11898_v6, %v10585_v45  ;;  %v11900_v45 = vld [vmem:[#allocation40_spill] sm:$0xff]  ;;  %v11902_v6 = vld [vmem:[#allocation43_spill] sm:$0xff] }
 0x3ca   :  { %v4683_v52 = vsel %vm4667_vm1, %v4642_v53, %v10683_v3  ;;  %v11901_v19 = vpack.c.bf16 %v11899_v15, %v11900_v45  ;;  %v11903_v53 = vld [vmem:[#allocation42_spill] sm:$0xff]  ;;  %v11905_v45 = vld [vmem:[#allocation45_spill] sm:$0xff] }
 0x3cb   :  { %v6705_v54 = vpop.f32.mrf.mxu0  ;;  %4857 = vst [vmem:[#allocation2 + $0x30] sm:$0xf] %v6075_v40  ;;  %4858 = vst [vmem:[#allocation2 + $0x34] sm:$0xf] %v6076_v30  ;;  %v4602_v17 = vpop.permute.xlu1 %4601 }
 0x3cc   :  { %v4716_v61 = vsel %vm4700_vm2, %v4683_v52, %v4602_v17  ;;  %v4645_v1 = vsel %vm66_vm0, %v11901_v19, %v10554_v13  ;;  %v10816_v40 = vpop.f32.mrf.mxu1  ;;  %v11906_v19 = vld [vmem:[#allocation44_spill] sm:$0xff] }
 0x3cd   :  { %v3032_v34 = vpop.f32.mrf.mxu0  ;;  %v6077_v38 = vcombine.low %v4716_v61, %v4716_v61  ;;  %v6078_v16 = vcombine.high %v4716_v61, %v4716_v61  ;;  %v4685_v3 = vsel %vm4667_vm1, %v4645_v1, %v10689_v57  ;;  %v11907_v1 = vpack.c.bf16 %v11905_v45, %v11906_v19  ;;  %v11911_v45 = vld [vmem:[#allocation8_spill] sm:$0xff] }
 0x3ce   :  { %v3119_v21 = vpack.c.bf16 %v6705_v54, %v3032_v34  ;;  %v11904_v54 = vpack.c.bf16 %v11902_v6, %v11903_v53  ;;  %v10824_v52 = vpop.f32.mrf.mxu1  ;;  %v11908_v53 = vld [vmem:[#allocation47_spill] sm:$0xff]  ;;  %v11912_v19 = vld [vmem:[#allocation48_spill] sm:$0xff] }
 0x3cf   :  { %4859 = vst [vmem:[#allocation2 + $0x38] sm:$0xf] %v6077_v38  ;;  %4860 = vst [vmem:[#allocation2 + $0x3c] sm:$0xf] %v6078_v16  ;;  %v4604_v10 = vpop.permute.xlu0 %4603 }
 0x3d0   :  { %4957 = vrot.lane.b32.xlu0 %v3119_v21, %s7288_s7  ;;  %v4718_v30 = vsel %vm4700_vm2, %v4685_v3, %v4604_v10  ;;  %v4648_v13 = vsel %vm66_vm0, %v11904_v54, %v10596_v24  ;;  %v4651_v24 = vsel %vm66_vm0, %v11907_v1, %v10583_v43  ;;  %v10834_v3 = vpop.f32.mrf.mxu1  ;;  %v11909_v54 = vld [vmem:[#allocation46_spill] sm:$0xff]  ;;  %v11913_v1 = vpack.c.bf16 %v11911_v45, %v11912_v19 }
 0x3d1   :  { %v6079_v0 = vcombine.low %v4718_v30, %v4718_v30  ;;  %v6080_v9 = vcombine.high %v4718_v30, %v4718_v30  ;;  %v4687_v17 = vsel %vm4667_vm1, %v4648_v13, %v10694_v60  ;;  %v4689_v60 = vsel %vm4667_vm1, %v4651_v24, %v10699_v44 }
 0x3d2   :  { %v11910_v43 = vpack.c.bf16 %v11908_v53, %v11909_v54  ;;  %v11914_v53 = vld [vmem:[#allocation15_spill] sm:$0xff] }
 0x3d3   :  { %v6708_v57 = vpop.f32.mrf.mxu0  ;;  %4861 = vst [vmem:[#allocation2 + $0x40] sm:$0xf] %v6079_v0  ;;  %4862 = vst [vmem:[#allocation2 + $0x44] sm:$0xf] %v6080_v9  ;;  %v4606_v61 = vpop.permute.xlu1 %4605 }
 0x3d4   :  { %v4720_v34 = vsel %vm4700_vm2, %v4687_v17, %v4606_v61  ;;  %v10839_v30 = vpop.f32.mrf.mxu1  ;;  %v4654_v13 = vsel %vm66_vm0, %v11910_v43, %v10608_v46  ;;  %v4657_v46 = vsel %vm66_vm0, %v11913_v1, %v10602_v50  ;;  %v11915_v50 = vld [vmem:[#allocation14_spill] sm:$0xff] }
 0x3d5   :  { %v3042_v38 = vpop.f32.mrf.mxu0  ;;  %v6081_v16 = vcombine.low %v4720_v34, %v4720_v34  ;;  %v6082_v21 = vcombine.high %v4720_v34, %v4720_v34  ;;  %v4691_v44 = vsel %vm4667_vm1, %v4654_v13, %v10703_v5  ;;  %v4693_v5 = vsel %vm4667_vm1, %v4657_v46, %v10705_v36 }
 0x3d6   :  { %v3120_v15 = vpack.c.bf16 %v6708_v57, %v3042_v38  ;;  %v10849_v61 = vpop.f32.mrf.mxu1  ;;  %v11916_v54 = vpack.c.bf16 %v11914_v53, %v11915_v50 }
 0x3d7   :  { %4863 = vst [vmem:[#allocation2 + $0x48] sm:$0xf] %v6081_v16  ;;  %4864 = vst [vmem:[#allocation2 + $0x4c] sm:$0xf] %v6082_v21  ;;  %v4608_v10 = vpop.permute.xlu0 %4607 }
 0x3d8   :  { %4959 = vrot.lane.b32.xlu1 %v3120_v15, %s7288_s7  ;;  %v4722_v0 = vsel %vm4700_vm2, %v4689_v60, %v4608_v10  ;;  %v4660_v43 = vsel %vm66_vm0, %v11916_v54, %v10620_v37  ;;  %v11917_v37 = vld [vmem:[#allocation10_spill] sm:$0xff] }
 0x3d9   :  { %v6083_v9 = vcombine.low %v4722_v0, %v4722_v0  ;;  %v6084_v6 = vcombine.high %v4722_v0, %v4722_v0  ;;  %v2245_v0 = vpack.c.bf16 %v10269_v28, %v10281_v35 }
 0x3db   :  { %v6711_v57 = vpop.f32.mrf.mxu0  ;;  %4865 = vst [vmem:[#allocation2 + $0x50] sm:$0xf] %v6083_v9  ;;  %4866 = vst [vmem:[#allocation2 + $0x54] sm:$0xf] %v6084_v6  ;;  %v4610_v17 = vpop.permute.xlu1 %4609 }
 0x3dc   :  { %v4724_v34 = vsel %vm4700_vm2, %v4691_v44, %v4610_v17  ;;  %v10857_v24 = vpop.f32.mrf.mxu1 }
 0x3dd   :  { %v3052_v38 = vpop.f32.mrf.mxu0  ;;  %v6085_v16 = vcombine.low %v4724_v34, %v4724_v34  ;;  %v6086_v21 = vcombine.high %v4724_v34, %v4724_v34 }
 0x3de   :  { %v3121_v15 = vpack.c.bf16 %v6711_v57, %v3052_v38  ;;  %v10870_v13 = vpop.f32.mrf.mxu1  ;;  %v4695_v57 = vsel %vm4667_vm1, %v4660_v43, %v10710_v41 }
 0x3df   :  { %4867 = vst [vmem:[#allocation2 + $0x58] sm:$0xf] %v6085_v16  ;;  %4868 = vst [vmem:[#allocation2 + $0x5c] sm:$0xf] %v6086_v21  ;;  %v4612_v60 = vpop.permute.xlu0 %4611  ;;  %v11918_v21 = vld [vmem:[#allocation9_spill] sm:$0xff] }
 0x3e0   :  { %4961 = vrot.lane.b32.xlu0 %v3121_v15, %s7288_s7  ;;  %v4726_v10 = vsel %vm4700_vm2, %v4693_v5, %v4612_v60  ;;  %v11919_v15 = vpack.c.bf16 %v11917_v37, %v11918_v21  ;;  %v2246_v5 = vpack.c.bf16 %v10295_v18, %v10313_v31  ;;  %v11926_v37 = vld [vmem:[#allocation13_spill] sm:$0xff]  ;;  %v11927_v21 = vld [vmem:[#allocation50_spill] sm:$0xff] }
 0x3e1   :  { %v6087_v9 = vcombine.low %v4726_v10, %v4726_v10  ;;  %v6088_v6 = vcombine.high %v4726_v10, %v4726_v10 }
 0x3e2   :  { %v4663_v45 = vsel %vm66_vm0, %v11919_v15, %v10618_v47  ;;  %v11928_v15 = vld [vmem:[#allocation23_spill] sm:$0xff] }
 0x3e3   :  { %v6714_v36 = vpop.f32.mrf.mxu0  ;;  %4869 = vst [vmem:[#allocation2 + $0x60] sm:$0xf] %v6087_v9  ;;  %4870 = vst [vmem:[#allocation2 + $0x64] sm:$0xf] %v6088_v6  ;;  %v10876_v35 = vpop.f32.mrf.mxu1  ;;  %v4697_v41 = vsel %vm4667_vm1, %v4663_v45, %v10712_v56  ;;  %v11921_v9 = vld [vmem:[#allocation11_spill] sm:$0xff]  ;;  %v11922_v6 = vld [vmem:[#allocation17_spill] sm:$0xff]  ;;  %v899_v45 = vpack.c.bf16 %v11928_v15, %v11927_v21 }
 0x3e4   :  { %v4614_v44 = vpop.permute.xlu1 %4613  ;;  %5293 = vrot.lane.b32.xlu0 %v2245_v0, %s7287_s30  ;;  %v11920_v0 = vld [vmem:[#allocation18_spill] sm:$0xff]  ;;  %v11923_v56 = vld [vmem:[#allocation16_spill] sm:$0xff] }
 0x3e5   :  { %v4728_v28 = vsel %vm4700_vm2, %v4695_v57, %v4614_v44  ;;  %v3062_v17 = vpop.f32.mrf.mxu0  ;;  %v10886_v1 = vpop.f32.mrf.mxu1  ;;  %v897_v47 = vpack.c.bf16 %v11921_v9, %v11920_v0  ;;  %v11924_v53 = vpack.c.bf16 %v11922_v6, %v11923_v56  ;;  %v11930_v56 = vld [vmem:[#allocation55_spill] sm:$0xff]  ;;  %v11937_v21 = vld [vmem:[#allocation62_spill] sm:$0xff] }
 0x3e6   :  { %v6089_v34 = vcombine.low %v4728_v28, %v4728_v28  ;;  %v6090_v38 = vcombine.high %v4728_v28, %v4728_v28  ;;  %v3122_v16 = vpack.c.bf16 %v6714_v36, %v3062_v17 }
 0x3e7   :  { %v4666_v50 = vsel %vm66_vm0, %v11924_v53, %v10630_v22  ;;  %v11931_v53 = vld [vmem:[#allocation53_spill] sm:$0xff] }
 0x3e8   :  { %4871 = vst [vmem:[#allocation2 + $0x68] sm:$0xf] %v6089_v34  ;;  %4872 = vst [vmem:[#allocation2 + $0x6c] sm:$0xf] %v6090_v38  ;;  %v4616_v19 = vpop.permute.xlu0 %4615  ;;  %4963 = vrot.lane.b32.xlu1 %v3122_v16, %s7288_s7  ;;  %v4699_v36 = vsel %vm4667_vm1, %v4666_v50, %v10725_v25  ;;  %v11925_v16 = vld [vmem:[#allocation21_spill] sm:$0xff]  ;;  %v900_v50 = vpack.c.bf16 %v11931_v53, %v11930_v56 }
 0x3e9   :  { %v4730_v46 = vsel %vm4700_vm2, %v4697_v41, %v4616_v19  ;;  %v898_v25 = vpack.c.bf16 %v11926_v37, %v11925_v16  ;;  %v2248_v16 = vpack.c.bf16 %v10363_v23, %v10378_v62 }
 0x3ea   :  { %v6091_v60 = vcombine.low %v4730_v46, %v4730_v46  ;;  %v6092_v10 = vcombine.high %v4730_v46, %v4730_v46 }
 0x3eb   :  { %v10898_v54 = vpop.f32.mrf.mxu1  ;;  %v6717_v43 = vpop.f32.mrf.mxu0 }
 0x3ec   :  { %4873 = vst [vmem:[#allocation2 + $0x70] sm:$0xf] %v6091_v60  ;;  %4874 = vst [vmem:[#allocation2 + $0x74] sm:$0xf] %v6092_v10  ;;  %v4618_v18 = vpop.permute.xlu1 %4617  ;;  %v4894_v31 = vpop.permute.xlu0 %4893  ;;  %5295 = vrot.lane.b32.xlu1 %v2246_v5, %s7287_s30 }
 0x3ed   :  { %v4732_v57 = vsel %vm4700_vm2, %v4699_v36, %v4618_v18  ;;  %v10905_v44 = vsel %vm66_vm0, %v897_v47, %v4894_v31  ;;  %v3072_v28 = vpop.f32.mrf.mxu0  ;;  %v10907_v17 = vpop.f32.mrf.mxu1  ;;  %v2247_v47 = vpack.c.bf16 %v10329_v49, %v10348_v63  ;;  %v11933_v36 = vld [vmem:[#allocation57_spill] sm:$0xff] }
 0x3ee   :  { %v6093_v22 = vcombine.low %v4732_v57, %v4732_v57  ;;  %v6094_v34 = vcombine.high %v4732_v57, %v4732_v57  ;;  %v3123_v38 = vpack.c.bf16 %v6717_v43, %v3072_v28  ;;  %v11932_v43 = vld [vmem:[#allocation60_spill] sm:$0xff] }
 0x3ef   :  { %v10913_v41 = vpop.f32.mrf.mxu1  ;;  %v6720_v19 = vpop.f32.mrf.mxu0  ;;  %v901_v18 = vpack.c.bf16 %v11933_v36, %v11932_v43  ;;  %v11942_v36 = vld [vmem:[#allocation77_spill] sm:$0xff] }
 0x3f0   :  { %4875 = vst [vmem:[#allocation2 + $0x78] sm:$0xf] %v6093_v22  ;;  %4876 = vst [vmem:[#allocation2 + $0x7c] sm:$0xf] %v6094_v34  ;;  %v4896_v46 = vpop.permute.xlu1 %4895  ;;  %v4898_v5 = vpop.permute.xlu0 %4897  ;;  %4965 = vrot.lane.b32.xlu0 %v3123_v38, %s7288_s7 }
 0x3f1   :  { %v10917_v60 = vsel %vm66_vm0, %v898_v25, %v4896_v46  ;;  %v10920_v10 = vsel %vm66_vm0, %v899_v45, %v4898_v5  ;;  %v3082_v0 = vpop.f32.mrf.mxu0  ;;  %v10922_v9 = vpop.f32.mrf.mxu1  ;;  %v11936_v25 = vld [vmem:[#allocation65_spill] sm:$0xff]  ;;  %v11938_v45 = vld [vmem:[#allocation71_spill] sm:$0xff] }
 0x3f2   :  { %11929 = vst [vmem:[#allocation106_spill] sm:$0xff] %v10920_v10  ;;  %v3124_v6 = vpack.c.bf16 %v6720_v19, %v3082_v0  ;;  %v902_v15 = vpack.c.bf16 %v11937_v21, %v11936_v25  ;;  %v11939_v19 = vld [vmem:[#allocation67_spill] sm:$0xff] }
 0x3f3   :  { %v10930_v31 = vpop.f32.mrf.mxu1  ;;  %v6723_v57 = vpop.f32.mrf.mxu0  ;;  %v903_v46 = vpack.c.bf16 %v11939_v19, %v11938_v45  ;;  %v11945_v25 = vld [vmem:[#allocation79_spill] sm:$0xff]  ;;  %v2250_v19 = vpack.c.bf16 %v10415_v14, %v10433_v48 }
 0x3f4   :  { %v4900_v28 = vpop.permute.xlu1 %4899  ;;  %v4902_v22 = vpop.permute.xlu0 %4901  ;;  %5297 = vrot.lane.b32.xlu0 %v2247_v47, %s7287_s30  ;;  %4967 = vrot.lane.b32.xlu1 %v3124_v6, %s7288_s7  ;;  %v11946_v21 = vld [vmem:[#allocation83_spill] sm:$0xff] }
 0x3f5   :  { %v10935_v34 = vsel %vm66_vm0, %v900_v50, %v4900_v28  ;;  %v10938_v49 = vsel %vm66_vm0, %v901_v18, %v4902_v22  ;;  %v3092_v63 = vpop.f32.mrf.mxu0  ;;  %v10940_v38 = vpop.f32.mrf.mxu1  ;;  %v2249_v50 = vpack.c.bf16 %v10393_v7, %v10408_v39  ;;  %v11943_v18 = vld [vmem:[#allocation73_spill] sm:$0xff] }
 0x3f6   :  { %11934 = vst [vmem:[#allocation129_spill] sm:$0xff] %v10935_v34  ;;  %11935 = vst [vmem:[#allocation103_spill] sm:$0xff] %v10938_v49  ;;  %v3125_v37 = vpack.c.bf16 %v6723_v57, %v3092_v63  ;;  %v904_v57 = vpack.c.bf16 %v11943_v18, %v11942_v36 }
 0x3f7   :  { %v10948_v5 = vpop.f32.mrf.mxu1  ;;  %v6726_v0 = vpop.f32.mrf.mxu0 }
 0x3f8   :  { %v4904_v47 = vpop.permute.xlu1 %4903  ;;  %v4906_v6 = vpop.permute.xlu0 %4905  ;;  %4969 = vrot.lane.b32.xlu0 %v3125_v37, %s7288_s7  ;;  %5299 = vrot.lane.b32.xlu1 %v2248_v16, %s7287_s30 }
 0x3f9   :  { %v10953_v56 = vsel %vm66_vm0, %v902_v15, %v4904_v47  ;;  %v10956_v23 = vsel %vm66_vm0, %v903_v46, %v4906_v6  ;;  %v3102_v62 = vpop.f32.mrf.mxu0  ;;  %v10958_v53 = vpop.f32.mrf.mxu1  ;;  %v11947_v15 = vpack.c.bf16 %v11945_v25, %v11946_v21  ;;  %v2251_v25 = vpack.c.bf16 %v10453_v11, %v10468_v29 }
 0x3fa   :  { %11940 = vst [vmem:[#allocation100_spill] sm:$0xff] %v10953_v56  ;;  %11941 = vst [vmem:[#allocation112_spill] sm:$0xff] %v10956_v23  ;;  %v3126_v43 = vpack.c.bf16 %v6726_v0, %v3102_v62 }
 0x3fb   :  { %v10964_v28 = vpop.f32.mrf.mxu1  ;;  %v6793_v22 = vpop.f32.mrf.mxu0 }
 0x3fc   :  { %v4908_v63 = vpop.permute.xlu1 %4907  ;;  %v4910_v16 = vpop.permute.xlu0 %4909  ;;  %5301 = vrot.lane.b32.xlu0 %v2249_v50, %s7287_s30  ;;  %4971 = vrot.lane.b32.xlu1 %v3126_v43, %s7288_s7  ;;  %v11949_v50 = vld [vmem:[#allocation85_spill] sm:$0xff] }
 0x3fd   :  { %v10969_v37 = vsel %vm66_vm0, %v904_v57, %v4908_v63  ;;  %v10975_v7 = vsel %vm66_vm0, %v11947_v15, %v4910_v16  ;;  %v4059_v39 = vpop.f32.mrf.mxu0  ;;  %v10977_v45 = vpop.f32.mrf.mxu1  ;;  %v11950_v43 = vld [vmem:[#allocation89_spill] sm:$0xff]  ;;  %v11953_v57 = vld [vmem:[#allocation91_spill] sm:$0xff] }
 0x3fe   :  { %11944 = vst [vmem:[#allocation132_spill] sm:$0xff] %v10969_v37  ;;  %11948 = vst [vmem:[#allocation133_spill] sm:$0xff] %v10975_v7  ;;  %v4218_v46 = vpack.c.bf16 %v6793_v22, %v4059_v39  ;;  %v11951_v36 = vpack.c.bf16 %v11949_v50, %v11950_v43  ;;  %v11954_v63 = vld [vmem:[#allocation95_spill] sm:$0xff]  ;;  %v11957_v50 = vld [vmem:[#allocation101_spill] sm:$0xff] }
 0x3ff   :  { %v10981_v0 = vpop.f32.mrf.mxu1  ;;  %v6796_v47 = vpop.f32.mrf.mxu0  ;;  %v11955_v16 = vpack.c.bf16 %v11953_v57, %v11954_v63  ;;  %v11960_v57 = vld [vmem:[#allocation107_spill] sm:$0xff] }
 0x400   :  { %v4912_v6 = vpop.permute.xlu1 %4911  ;;  %v4914_v62 = vpop.permute.xlu0 %4913  ;;  %4989 = vrot.lane.b32.xlu0 %v4218_v46, %s7289_s8  ;;  %5303 = vrot.lane.b32.xlu1 %v2250_v19, %s7287_s30 }
 0x401   :  { %v10989_v18 = vsel %vm66_vm0, %v11951_v36, %v4912_v6  ;;  %v10995_v14 = vsel %vm66_vm0, %v11955_v16, %v4914_v62  ;;  %v4069_v48 = vpop.f32.mrf.mxu0  ;;  %v10997_v22 = vpop.f32.mrf.mxu1  ;;  %v11956_v6 = vld [vmem:[#allocation98_spill] sm:$0xff]  ;;  %v11959_v36 = vld [vmem:[#allocation104_spill] sm:$0xff]  ;;  %v11963_v16 = vld [vmem:[#allocation123_spill] sm:$0xff] }
 0x402   :  { %11952 = vst [vmem:[#allocation126_spill] sm:$0xff] %v10989_v18  ;;  %v4219_v21 = vpack.c.bf16 %v6796_v47, %v4069_v48  ;;  %v11958_v62 = vpack.c.bf16 %v11956_v6, %v11957_v50  ;;  %v11961_v63 = vpack.c.bf16 %v11959_v36, %v11960_v57  ;;  %v11962_v47 = vld [vmem:[#allocation59_spill] sm:$0xff]  ;;  %v11965_v6 = vld [vmem:[#allocation113_spill] sm:$0xff] }
 0x403   :  { %v11001_v15 = vpop.f32.mrf.mxu1  ;;  %v6799_v39 = vpop.f32.mrf.mxu0  ;;  %v2252_v48 = vpack.c.bf16 %v11963_v16, %v11962_v47  ;;  %v11968_v36 = vld [vmem:[#allocation117_spill] sm:$0xff]  ;;  %v11971_v47 = vld [vmem:[#allocation52_spill] sm:$0xff] }
 0x404   :  { %v4916_v19 = vpop.permute.xlu1 %4915  ;;  %v4918_v46 = vpop.permute.xlu0 %4917  ;;  %5305 = vrot.lane.b32.xlu0 %v2251_v25, %s7287_s30  ;;  %4991 = vrot.lane.b32.xlu1 %v4219_v21, %s7289_s8 }
 0x405   :  { %v11009_v43 = vsel %vm66_vm0, %v11958_v62, %v4916_v19  ;;  %v11015_v11 = vsel %vm66_vm0, %v11961_v63, %v4918_v46  ;;  %v4079_v29 = vpop.f32.mrf.mxu0  ;;  %v11019_v25 = vpop.f32.mrf.mxu1  ;;  %v11964_v19 = vld [vmem:[#allocation110_spill] sm:$0xff]  ;;  %v11967_v62 = vld [vmem:[#allocation115_spill] sm:$0xff] }
 0x406   :  { %v4220_v18 = vpack.c.bf16 %v6799_v39, %v4079_v29  ;;  %v11966_v50 = vpack.c.bf16 %v11964_v19, %v11965_v6  ;;  %v11969_v57 = vpack.c.bf16 %v11967_v62, %v11968_v36  ;;  %v11970_v29 = vld [vmem:[#allocation75_spill] sm:$0xff]  ;;  %v11973_v19 = vld [vmem:[#allocation121_spill] sm:$0xff]  ;;  %v2254_v62 = vpack.c.bf16 %v10560_v58, %v10576_v32  ;;  %v11975_v32 = vld [vmem:[#allocation124_spill] sm:$0xff] }
 0x407   :  { %v6802_v21 = vpop.f32.mrf.mxu0  ;;  %v2253_v16 = vpack.c.bf16 %v11971_v47, %v11970_v29  ;;  %v11037_v56 = vpop.f32.mrf.mxu1 }
 0x408   :  { %v4920_v7 = vpop.permute.xlu1 %4919  ;;  %v4922_v37 = vpop.permute.xlu0 %4921  ;;  %4993 = vrot.lane.b32.xlu0 %v4220_v18, %s7289_s8  ;;  %5307 = vrot.lane.b32.xlu1 %v2252_v48, %s7287_s30 }
 0x409   :  { %v11027_v46 = vsel %vm66_vm0, %v11966_v50, %v4920_v7  ;;  %v11033_v39 = vsel %vm66_vm0, %v11969_v57, %v4922_v37  ;;  %v4089_v63 = vpop.f32.mrf.mxu0  ;;  %v11972_v7 = vld [vmem:[#allocation119_spill] sm:$0xff] }
 0x40a   :  { %v4221_v23 = vpack.c.bf16 %v6802_v21, %v4089_v63  ;;  %v11974_v6 = vpack.c.bf16 %v11972_v7, %v11973_v19  ;;  %v11049_v21 = vpop.f32.mrf.mxu1 }
 0x40b   :  { %v6805_v18 = vpop.f32.mrf.mxu0 }
 0x40c   :  { %v4924_v48 = vpop.permute.xlu1 %4923  ;;  %5309 = vrot.lane.b32.xlu0 %v2253_v16, %s7287_s30  ;;  %4995 = vrot.lane.b32.xlu1 %v4221_v23, %s7289_s8  ;;  %v2255_v23 = vpack.c.bf16 %v10592_v51, %v10604_v8  ;;  %v11055_v47 = vpop.f32.mrf.mxu1  ;;  %v11977_v8 = vld [vmem:[#allocation64_spill] sm:$0xff] }
 0x40d   :  { %v11045_v50 = vsel %vm66_vm0, %v11974_v6, %v4924_v48  ;;  %v4099_v37 = vpop.f32.mrf.mxu0 }
 0x40e   :  { %v4222_v36 = vpack.c.bf16 %v6805_v18, %v4099_v37  ;;  %v11976_v18 = vld [vmem:[#allocation70_spill] sm:$0xff]  ;;  %v11061_v19 = vpop.f32.mrf.mxu1  ;;  %v11978_v37 = vld [vmem:[#allocation69_spill] sm:$0xff] }
 0x40f   :  { %v6808_v57 = vpop.f32.mrf.mxu0  ;;  %v2256_v48 = vpack.c.bf16 %v11976_v18, %v11975_v32 }
 0x410   :  { %4997 = vrot.lane.b32.xlu0 %v4222_v36, %s7289_s8  ;;  %5311 = vrot.lane.b32.xlu1 %v2254_v62, %s7287_s30  ;;  %v2257_v62 = vpack.c.bf16 %v11978_v37, %v11977_v8 }
 0x411   :  { %v4109_v63 = vpop.f32.mrf.mxu0 }
 0x412   :  { %v4223_v29 = vpack.c.bf16 %v6808_v57, %v4109_v63  ;;  %v11067_v57 = vpop.f32.mrf.mxu1 }
 0x413   :  { %v6811_v16 = vpop.f32.mrf.mxu0 }
 0x414   :  { %5313 = vrot.lane.b32.xlu0 %v2255_v23, %s7287_s30  ;;  %4999 = vrot.lane.b32.xlu1 %v4223_v29, %s7289_s8  ;;  %v11979_v29 = vld [vmem:[#allocation82_spill] sm:$0xff]  ;;  %v11073_v18 = vpop.f32.mrf.mxu1 }
 0x415   :  { %v4119_v58 = vpop.f32.mrf.mxu0 }
 0x416   :  { %v4224_v7 = vpack.c.bf16 %v6811_v16, %v4119_v58  ;;  %v11980_v16 = vld [vmem:[#allocation87_spill] sm:$0xff] }
 0x417   :  { %v6814_v6 = vpop.f32.mrf.mxu0  ;;  %v2258_v58 = vpack.c.bf16 %v11980_v16, %v11979_v29  ;;  %v11984_v29 = vld [vmem:[#allocation76_spill] sm:$0xff] }
 0x418   :  { %5001 = vrot.lane.b32.xlu0 %v4224_v7, %s7289_s8  ;;  %5315 = vrot.lane.b32.xlu1 %v2256_v48, %s7287_s30 }
 0x419   :  { %v4129_v51 = vpop.f32.mrf.mxu0 }
 0x41a   :  { %v4225_v36 = vpack.c.bf16 %v6814_v6, %v4129_v51  ;;  %v11981_v6 = vld [vmem:[#allocation81_spill] sm:$0xff] }
 0x41b   :  { %v6817_v23 = vpop.f32.mrf.mxu0  ;;  %v11982_v51 = vld [vmem:[#allocation125_spill] sm:$0xff] }
 0x41c   :  { %5317 = vrot.lane.b32.xlu0 %v2257_v62, %s7287_s30  ;;  %5003 = vrot.lane.b32.xlu1 %v4225_v36, %s7289_s8  ;;  %v2259_v8 = vpack.c.bf16 %v11982_v51, %v11981_v6  ;;  %v11079_v62 = vpop.f32.mrf.mxu1  ;;  %v11986_v6 = vld [vmem:[#allocation94_spill] sm:$0xff] }
 0x41d   :  { %v4139_v63 = vpop.f32.mrf.mxu0 }
 0x41e   :  { %v4226_v32 = vpack.c.bf16 %v6817_v23, %v4139_v63  ;;  %v11983_v63 = vld [vmem:[#allocation97_spill] sm:$0xff] }
 0x41f   :  { %v6820_v48 = vpop.f32.mrf.mxu0  ;;  %v2260_v16 = vpack.c.bf16 %v11984_v29, %v11983_v63  ;;  %v11988_v63 = vld [vmem:[#allocation93_spill] sm:$0xff] }
 0x420   :  { %5005 = vrot.lane.b32.xlu0 %v4226_v32, %s7289_s8  ;;  %5319 = vrot.lane.b32.xlu1 %v2258_v58, %s7287_s30  ;;  %v11085_v32 = vpop.f32.mrf.mxu1 }
 0x421   :  { %v4149_v7 = vpop.f32.mrf.mxu0 }
 0x422   :  { %v4227_v37 = vpack.c.bf16 %v6820_v48, %v4149_v7  ;;  %v11985_v7 = vld [vmem:[#allocation128_spill] sm:$0xff] }
 0x423   :  { %v6823_v36 = vpop.f32.mrf.mxu0  ;;  %v3352_v51 = vpack.c.bf16 %v11986_v6, %v11985_v7 }
 0x424   :  { %5321 = vrot.lane.b32.xlu0 %v2259_v8, %s7287_s30  ;;  %5007 = vrot.lane.b32.xlu1 %v4227_v37, %s7289_s8  ;;  %v11091_v8 = vpop.f32.mrf.mxu1 }
 0x425   :  { %v4159_v23 = vpop.f32.mrf.mxu0 }
 0x426   :  { %v4228_v49 = vpack.c.bf16 %v6823_v36, %v4159_v23  ;;  %v11987_v23 = vld [vmem:[#allocation88_spill] sm:$0xff] }
 0x427   :  { %v6826_v58 = vpop.f32.mrf.mxu0  ;;  %v3353_v29 = vpack.c.bf16 %v11988_v63, %v11987_v23 }
 0x428   :  { %5009 = vrot.lane.b32.xlu0 %v4228_v49, %s7289_s8  ;;  %5323 = vrot.lane.b32.xlu1 %v2260_v16, %s7287_s30  ;;  %v11097_v49 = vpop.f32.mrf.mxu1 }
 0x429   :  { %v4169_v48 = vpop.f32.mrf.mxu0 }
 0x42a   :  { %v4229_v34 = vpack.c.bf16 %v6826_v58, %v4169_v48  ;;  %v11989_v48 = vld [vmem:[#allocation109_spill] sm:$0xff] }
 0x42b   :  { %v6829_v37 = vpop.f32.mrf.mxu0  ;;  %v3354_v7 = vpack.c.bf16 %v11989_v48, %v10734_v12  ;;  %v3358_v48 = vpack.c.bf16 %v10790_v2, %v10801_v26  ;;  %v3361_v2 = vpack.c.bf16 %v10839_v30, %v10849_v61  ;;  %v3362_v26 = vpack.c.bf16 %v10857_v24, %v10870_v13 }
 0x42c   :  { %5341 = vrot.lane.b32.xlu0 %v3352_v51, %s7288_s7  ;;  %5011 = vrot.lane.b32.xlu1 %v4229_v34, %s7289_s8  ;;  %v11103_v51 = vpop.f32.mrf.mxu1  ;;  %v3365_v13 = vpack.c.bf16 %v10913_v41, %v10922_v9 }
 0x42d   :  { %v4179_v36 = vpop.f32.mrf.mxu0 }
 0x42e   :  { %v4230_v10 = vpack.c.bf16 %v6829_v37, %v4179_v36  ;;  %v3355_v36 = vpack.c.bf16 %v10738_v27, %v10748_v33  ;;  %v11119_v27 = vpop.permute.xlu0 %4941  ;;  %v3357_v33 = vpack.c.bf16 %v10773_v59, %v10782_v20  ;;  %v11139_v59 = vpop.permute.xlu1 %4943 }
 0x430   :  { %v6832_v16 = vpop.f32.mrf.mxu0  ;;  %5013 = vrot.lane.b32.xlu0 %v4230_v10, %s7289_s8  ;;  %5343 = vrot.lane.b32.xlu1 %v3353_v29, %s7288_s7  ;;  %v11109_v10 = vpop.f32.mrf.mxu1  ;;  %v3356_v29 = vpack.c.bf16 %v10757_v42, %v10769_v55  ;;  %v3359_v55 = vpack.c.bf16 %v10805_v4, %v10816_v40 }
 0x432   :  { %v4189_v58 = vpop.f32.mrf.mxu0  ;;  %v11129_v42 = vpop.permute.xlu0 %4945 }
 0x433   :  { %v4231_v6 = vpack.c.bf16 %v6832_v16, %v4189_v58  ;;  %v11115_v58 = vpop.f32.mrf.mxu1  ;;  %v11151_v40 = vpop.permute.xlu1 %4947 }
 0x434   :  { %v6835_v34 = vpop.f32.mrf.mxu0  ;;  %5345 = vrot.lane.b32.xlu0 %v3354_v7, %s7288_s7 }
 0x435   :  { %5015 = vrot.lane.b32.xlu1 %v4231_v6, %s7289_s8  ;;  %v11125_v7 = vpop.f32.mrf.mxu1  ;;  %v3360_v6 = vpack.c.bf16 %v10824_v52, %v10834_v3  ;;  %v3363_v3 = vpack.c.bf16 %v10876_v35, %v10886_v1 }
 0x436   :  { %v4199_v37 = vpop.f32.mrf.mxu0  ;;  %v11141_v20 = vpop.permute.xlu0 %4949 }
 0x437   :  { %v4232_v23 = vpack.c.bf16 %v6835_v34, %v4199_v37  ;;  %v11135_v34 = vpop.f32.mrf.mxu1  ;;  %v3364_v37 = vpack.c.bf16 %v10898_v54, %v10907_v17  ;;  %v11163_v61 = vpop.permute.xlu1 %4951  ;;  %v3367_v17 = vpack.c.bf16 %v10948_v5, %v10958_v53  ;;  %v4460_v5 = vpack.c.bf16 %v10981_v0, %v10997_v22 }
 0x438   :  { %v6838_v63 = vpop.f32.mrf.mxu0  ;;  %v4461_v53 = vpack.c.bf16 %v11001_v15, %v11019_v25  ;;  %v11992_v15 = vld [vmem:[#allocation22_spill] sm:$0xff]  ;;  %v11993_v25 = vld [vmem:[#allocation20_spill] sm:$0xff] }
 0x439   :  { %5017 = vrot.lane.b32.xlu0 %v4232_v23, %s7289_s8  ;;  %5347 = vrot.lane.b32.xlu1 %v3355_v36, %s7288_s7  ;;  %v11147_v4 = vpop.f32.mrf.mxu1  ;;  %v3366_v36 = vpack.c.bf16 %v10930_v31, %v10940_v38  ;;  %v4459_v23 = vpack.c.bf16 %v10964_v28, %v10977_v45  ;;  %v11990_v31 = vld [vmem:[#allocation19_spill] sm:$0xff]  ;;  %v11991_v38 = vld [vmem:[#allocation12_spill] sm:$0xff] }
 0x43a   :  { %v4209_v12 = vpop.f32.mrf.mxu0  ;;  %v11153_v52 = vpop.permute.xlu0 %4953 }
 0x43b   :  { %v4233_v16 = vpack.c.bf16 %v6838_v63, %v4209_v12  ;;  %v11159_v30 = vpop.f32.mrf.mxu1  ;;  %v11175_v1 = vpop.permute.xlu1 %4955  ;;  %v1138_v63 = vpack.c.bf16 %v11991_v38, %v11990_v31  ;;  %v11998_v31 = vld [vmem:[#allocation61_spill] sm:$0xff]  ;;  %v11999_v38 = vld [vmem:[#allocation58_spill] sm:$0xff] }
 0x43d   :  { %5349 = vrot.lane.b32.xlu0 %v3356_v29, %s7288_s7  ;;  %5019 = vrot.lane.b32.xlu1 %v4233_v16, %s7289_s8  ;;  %v11171_v35 = vpop.f32.mrf.mxu1  ;;  %v4462_v16 = vpack.c.bf16 %v11037_v56, %v11049_v21  ;;  %v4465_v56 = vpack.c.bf16 %v11079_v62, %v11085_v32  ;;  %v11994_v62 = vld [vmem:[#allocation51_spill] sm:$0xff]  ;;  %v11995_v32 = vld [vmem:[#allocation49_spill] sm:$0xff] }
 0x43f   :  { %v6885_v9 = vpop.f32.mrf.mxu1 }
 0x441   :  { %5353 = vrot.lane.b32.xlu0 %v3358_v48, %s7288_s7  ;;  %5351 = vrot.lane.b32.xlu1 %v3357_v33, %s7288_s7  ;;  %v4420_v45 = vpop.f32.mrf.mxu1  ;;  %v4463_v33 = vpack.c.bf16 %v11055_v47, %v11061_v19  ;;  %v1139_v48 = vpack.c.bf16 %v11993_v25, %v11992_v15  ;;  %v4466_v19 = vpack.c.bf16 %v11091_v8, %v11097_v49 }
 0x442   :  { %v11165_v24 = vpop.permute.xlu0 %4957  ;;  %v4468_v8 = vpack.c.bf16 %v11115_v58, %v11125_v7  ;;  %v4469_v49 = vpack.c.bf16 %v11135_v34, %v11147_v4  ;;  %v4470_v7 = vpack.c.bf16 %v11159_v30, %v11171_v35  ;;  %v4471_v34 = vpack.c.bf16 %v6885_v9, %v4420_v45 }
 0x443   :  { %v6888_v22 = vpop.f32.mrf.mxu1 }
 0x445   :  { %5357 = vrot.lane.b32.xlu0 %v3360_v6, %s7288_s7  ;;  %5355 = vrot.lane.b32.xlu1 %v3359_v55, %s7288_s7  ;;  %v4464_v6 = vpack.c.bf16 %v11067_v57, %v11073_v18 }
 0x449   :  { %5361 = vrot.lane.b32.xlu0 %v3362_v26, %s7288_s7  ;;  %5359 = vrot.lane.b32.xlu1 %v3361_v2, %s7288_s7  ;;  %v4467_v2 = vpack.c.bf16 %v11103_v51, %v11109_v10  ;;  %v1140_v26 = vpack.c.bf16 %v11995_v32, %v11994_v62 }
 0x44a   :  { %v11189_v12 = vpop.permute.xlu1 %4959 }
 0x44d   :  { %5365 = vrot.lane.b32.xlu0 %v3364_v37, %s7288_s7  ;;  %5363 = vrot.lane.b32.xlu1 %v3363_v3, %s7288_s7 }
 0x451   :  { %5369 = vrot.lane.b32.xlu0 %v3366_v36, %s7288_s7  ;;  %5367 = vrot.lane.b32.xlu1 %v3365_v13, %s7288_s7  ;;  %v11996_v13 = vld [vmem:[#allocation56_spill] sm:$0xff]  ;;  %v11997_v36 = vld [vmem:[#allocation54_spill] sm:$0xff] }
 0x452   :  { %v4962_v54 = vpop.permute.xlu0 %4961 }
 0x453   :  { %v11183_v41 = vsel %vm4667_vm1, %v10995_v14, %v4962_v54  ;;  %v1141_v54 = vpack.c.bf16 %v11997_v36, %v11996_v13 }
 0x455   :  { %5389 = vrot.lane.b32.xlu0 %v4459_v23, %s7289_s8  ;;  %5371 = vrot.lane.b32.xlu1 %v3367_v17, %s7288_s7 }
 0x456   :  { %v5294_v29 = vpop.permute.xlu0 %5293 }
 0x457   :  { %v11196_v28 = vsel %vm66_vm0, %v1138_v63, %v5294_v29  ;;  %v1142_v63 = vpack.c.bf16 %v11999_v38, %v11998_v31 }
 0x459   :  { %5393 = vrot.lane.b32.xlu0 %v4461_v53, %s7289_s8  ;;  %5391 = vrot.lane.b32.xlu1 %v4460_v5, %s7289_s8 }
 0x45a   :  { %v4964_v14 = vpop.permute.xlu1 %4963 }
 0x45b   :  { %v11206_v0 = vsel %vm4667_vm1, %v11009_v43, %v4964_v14  ;;  %v4430_v43 = vpop.f32.mrf.mxu1 }
 0x45d   :  { %5397 = vrot.lane.b32.xlu0 %v4463_v33, %s7289_s8  ;;  %5395 = vrot.lane.b32.xlu1 %v4462_v16, %s7289_s8  ;;  %v6891_v18 = vpop.f32.mrf.mxu1 }
 0x45e   :  { %v5296_v55 = vpop.permute.xlu1 %5295 }
 0x45f   :  { %v11217_v21 = vsel %vm66_vm0, %v1139_v48, %v5296_v55  ;;  %v4440_v10 = vpop.f32.mrf.mxu1 }
 0x461   :  { %5401 = vrot.lane.b32.xlu0 %v4465_v56, %s7289_s8  ;;  %5399 = vrot.lane.b32.xlu1 %v4464_v6, %s7289_s8  ;;  %v6894_v23 = vpop.f32.mrf.mxu1 }
 0x462   :  { %v4966_v47 = vpop.permute.xlu0 %4965 }
 0x463   :  { %v11227_v57 = vsel %vm4667_vm1, %v11015_v11, %v4966_v47 }
 0x465   :  { %5405 = vrot.lane.b32.xlu0 %v4467_v2, %s7289_s8  ;;  %5403 = vrot.lane.b32.xlu1 %v4466_v19, %s7289_s8 }
 0x466   :  { %v5298_v3 = vpop.permute.xlu0 %5297  ;;  %v4968_v37 = vpop.permute.xlu1 %4967 }
 0x467   :  { %v11238_v51 = vsel %vm66_vm0, %v1140_v26, %v5298_v3  ;;  %v11242_v11 = vsel %vm4667_vm1, %v11027_v46, %v4968_v37 }
 0x469   :  { %5409 = vrot.lane.b32.xlu0 %v4469_v49, %s7289_s8  ;;  %5407 = vrot.lane.b32.xlu1 %v4468_v8, %s7289_s8 }
 0x46a   :  { %v4970_v17 = vpop.permute.xlu0 %4969  ;;  %v5300_v58 = vpop.permute.xlu1 %5299 }
 0x46b   :  { %v11252_v4 = vsel %vm4667_vm1, %v11033_v39, %v4970_v17  ;;  %v11255_v46 = vsel %vm66_vm0, %v1141_v54, %v5300_v58 }
 0x46d   :  { %5413 = vrot.lane.b32.xlu0 %v4471_v34, %s7289_s8  ;;  %5411 = vrot.lane.b32.xlu1 %v4470_v7, %s7289_s8 }
 0x46e   :  { %v5302_v30 = vpop.permute.xlu0 %5301  ;;  %v4972_v35 = vpop.permute.xlu1 %4971 }
 0x46f   :  { %7254 = shalt.err (!%p7251_p4)
}
 0x470   :  { %s7291_s13 = smov 4   ;;  %v4472_v39 = vpack.c.bf16 %v6888_v22, %v4430_v43  ;;  %v4473_v9 = vpack.c.bf16 %v6891_v18, %v4440_v10  ;;  %v11268_v29 = vsel %vm66_vm0, %v1142_v63, %v5302_v30  ;;  %v11272_v5 = vsel %vm4667_vm1, %v11045_v50, %v4972_v35  ;;  %v4450_v53 = vpop.f32.mrf.mxu1  ;;  %v12000_v45 = vld [vmem:[#allocation66_spill] sm:$0xff]  ;;  %v12001_v14 = vld [vmem:[#allocation63_spill] sm:$0xff]  ;;  %v12002_v56 = vld [vmem:[#allocation72_spill] sm:$0xff] }
 0x471   :  { %5688 = dma.vmem_to_hbm [thread:$0]  %s5683_s12, 2048, %s11472_s5, [#allocation3], %s7288_s7, %s7288_s7, %s7291_s13   ;;  %v1143_v16 = vpack.c.bf16 %v12001_v14, %v12000_v45  ;;  %v5070_v33 = vsel %vm4667_vm1, %v10905_v44, %v11119_v27  ;;  %v4474_v25 = vpack.c.bf16 %v6894_v23, %v4450_v53  ;;  %v12003_v43 = vld [vmem:[#allocation68_spill] sm:$0xff]  ;;  %v5072_v19 = vsel %vm4667_vm1, %v10917_v60, %v11139_v59  ;;  %v12004_v26 = vld [vmem:[#allocation78_spill] sm:$0xff]  ;;  %v12007_v17 = vld [vmem:[#allocation129_spill] sm:$0xff] }
 0x472   :  { %5417 = vrot.lane.b32.xlu0 %v4473_v9, %s7289_s8  ;;  %5415 = vrot.lane.b32.xlu1 %v4472_v39, %s7289_s8  ;;  %v4990_v22 = vpop.permute.xlu0 %4989  ;;  %v5304_v15 = vpop.permute.xlu1 %5303  ;;  %v1144_v47 = vpack.c.bf16 %v12003_v43, %v12002_v56  ;;  %v12005_v3 = vld [vmem:[#allocation74_spill] sm:$0xff]  ;;  %v5076_v58 = vsel %vm4667_vm1, %v12007_v17, %v11151_v40  ;;  %v12009_v23 = vld [vmem:[#allocation84_spill] sm:$0xff]  ;;  %v12011_v39 = vld [vmem:[#allocation103_spill] sm:$0xff]  ;;  %s7292_s5 = smov [#allocation4]  }
 0x473   :  { %v5102_v48 = vsel %vm4700_vm2, %v5070_v33, %v4990_v22  ;;  %v11283_v50 = vsel %vm66_vm0, %v1143_v16, %v5304_v15  ;;  %v1145_v37 = vpack.c.bf16 %v12005_v3, %v12004_v26  ;;  %v12006_v8 = vld [vmem:[#allocation106_spill] sm:$0xff]  ;;  %v5078_v9 = vsel %vm4667_vm1, %v12011_v39, %v11141_v20  ;;  %v12017_v56 = vld [vmem:[#allocation96_spill] sm:$0xff]  ;;  %s5694_s16 = sshll.u32 %s7292_s5, 4  ;;  %s5695_s16 = int_to_ptr.vmem [resolvable:$true] %s5694_s16 }
 0x474   :  { %v6095_v55 = vcombine.low %v5102_v48, %v5102_v48  ;;  %v6096_v6 = vcombine.high %v5102_v48, %v5102_v48  ;;  %v5074_v49 = vsel %vm4667_vm1, %v12006_v8, %v11129_v42  ;;  %v12008_v42 = vld [vmem:[#allocation80_spill] sm:$0xff]  ;;  %v12012_v14 = vld [vmem:[#allocation86_spill] sm:$0xff]  ;;  %s7263_s17 = scalar_lea.vmem %s5695_s16, 4096  ;;  %p7268_p6 = scmp.lt.s32.totalorder %s5695_s16, %s5695_s16 }
 0x475   :  { %v12010_v31 = vpack.c.bf16 %v12008_v42, %v12009_v23  ;;  %v12013_v16 = vld [vmem:[#allocation90_spill] sm:$0xff]  ;;  %p7264_p5 = scmp.ne.s32.totalorder %s5695_s16, %s7263_s17  ;;  %p7269_p7 = scmp.lt.s32.totalorder %s7263_s17, %s7263_s17 }
 0x476   :  { %5419 = vrot.lane.b32.xlu1 %v4474_v25, %s7289_s8  ;;  %5245 = vst [vmem:[#allocation4] sm:$0xf] %v6095_v55  ;;  %5246 = vst [vmem:[#allocation4 + $0x4] sm:$0xf] %v6096_v6  ;;  %v5306_v44 = vpop.permute.xlu0 %5305  ;;  %v4992_v27 = vpop.permute.xlu1 %4991  ;;  %v12014_v33 = vpack.c.bf16 %v12012_v14, %v12013_v16  ;;  %v12015_v55 = vld [vmem:[#allocation100_spill] sm:$0xff]  ;;  %v12021_v8 = vld [vmem:[#allocation102_spill] sm:$0xff] }
 0x477   :  { %v11292_v2 = vsel %vm66_vm0, %v1144_v47, %v5306_v44  ;;  %v5104_v18 = vsel %vm4700_vm2, %v5072_v19, %v4992_v27  ;;  %v5080_v20 = vsel %vm4667_vm1, %v12015_v55, %v11163_v61  ;;  %v12016_v6 = vld [vmem:[#allocation92_spill] sm:$0xff]  ;;  %p7270_p8 = por %p7269_p7, %p7268_p6 }
 0x478   :  { %v6097_v62 = vcombine.low %v5104_v18, %v5104_v18  ;;  %v6098_v32 = vcombine.high %v5104_v18, %v5104_v18  ;;  %v12018_v43 = vpack.c.bf16 %v12016_v6, %v12017_v56  ;;  %v12032_v55 = vld [vmem:[#allocation116_spill] sm:$0xff] }
 0x479   :  { %p7271_p9 = pnand %p7270_p8, %p7264_p5 }
 0x47a   :  { %5247 = vst [vmem:[#allocation4 + $0x8] sm:$0xf] %v6097_v62  ;;  %5248 = vst [vmem:[#allocation4 + $0xc] sm:$0xf] %v6098_v32  ;;  %v4994_v60 = vpop.permute.xlu0 %4993  ;;  %v5308_v59 = vpop.permute.xlu1 %5307  ;;  %v12019_v62 = vld [vmem:[#allocation112_spill] sm:$0xff] }
 0x47b   :  { %v5106_v10 = vsel %vm4700_vm2, %v5074_v49, %v4994_v60  ;;  %v11302_v13 = vsel %vm66_vm0, %v1145_v37, %v5308_v59  ;;  %v5082_v32 = vsel %vm4667_vm1, %v12019_v62, %v11153_v52  ;;  %v12020_v37 = vld [vmem:[#allocation99_spill] sm:$0xff]  ;;  %v12035_v62 = vld [vmem:[#allocation120_spill] sm:$0xff] }
 0x47c   :  { %v6099_v36 = vcombine.low %v5106_v10, %v5106_v10  ;;  %v6100_v54 = vcombine.high %v5106_v10, %v5106_v10  ;;  %v12022_v49 = vpack.c.bf16 %v12020_v37, %v12021_v8 }
 0x47e   :  { %5249 = vst [vmem:[#allocation4 + $0x10] sm:$0xf] %v6099_v36  ;;  %5250 = vst [vmem:[#allocation4 + $0x14] sm:$0xf] %v6100_v54  ;;  %v5310_v7 = vpop.permute.xlu0 %5309  ;;  %v4996_v34 = vpop.permute.xlu1 %4995  ;;  %v12023_v36 = vld [vmem:[#allocation132_spill] sm:$0xff] }
 0x47f   :  { %v11311_v38 = vsel %vm66_vm0, %v12010_v31, %v5310_v7  ;;  %v5108_v63 = vsel %vm4700_vm2, %v5076_v58, %v4996_v34  ;;  %v5084_v54 = vsel %vm4667_vm1, %v12023_v36, %v11175_v1  ;;  %v12024_v58 = vld [vmem:[#allocation105_spill] sm:$0xff]  ;;  %v12025_v7 = vld [vmem:[#allocation108_spill] sm:$0xff] }
 0x480   :  { %v6101_v30 = vcombine.low %v5108_v63, %v5108_v63  ;;  %v6102_v35 = vcombine.high %v5108_v63, %v5108_v63  ;;  %v12026_v34 = vpack.c.bf16 %v12024_v58, %v12025_v7 }
 0x482   :  { %5251 = vst [vmem:[#allocation4 + $0x18] sm:$0xf] %v6101_v30  ;;  %5252 = vst [vmem:[#allocation4 + $0x1c] sm:$0xf] %v6102_v35  ;;  %v4998_v40 = vpop.permute.xlu0 %4997  ;;  %v5312_v53 = vpop.permute.xlu1 %5311  ;;  %v12027_v30 = vld [vmem:[#allocation133_spill] sm:$0xff] }
 0x483   :  { %v5110_v45 = vsel %vm4700_vm2, %v5078_v9, %v4998_v40  ;;  %v11322_v22 = vsel %vm66_vm0, %v12014_v33, %v5312_v53  ;;  %v5086_v35 = vsel %vm4667_vm1, %v12027_v30, %v11165_v24  ;;  %v12028_v40 = vld [vmem:[#allocation111_spill] sm:$0xff]  ;;  %v12029_v53 = vld [vmem:[#allocation114_spill] sm:$0xff] }
 0x484   :  { %v6103_v15 = vcombine.low %v5110_v45, %v5110_v45  ;;  %v6104_v25 = vcombine.high %v5110_v45, %v5110_v45  ;;  %v12030_v45 = vpack.c.bf16 %v12028_v40, %v12029_v53 }
 0x486   :  { %5253 = vst [vmem:[#allocation4 + $0x20] sm:$0xf] %v6103_v15  ;;  %5254 = vst [vmem:[#allocation4 + $0x24] sm:$0xf] %v6104_v25  ;;  %v5314_v48 = vpop.permute.xlu0 %5313  ;;  %v5000_v19 = vpop.permute.xlu1 %4999  ;;  %v12031_v15 = vld [vmem:[#allocation126_spill] sm:$0xff] }
 0x487   :  { %v11331_v47 = vsel %vm66_vm0, %v12018_v43, %v5314_v48  ;;  %v5112_v44 = vsel %vm4700_vm2, %v5080_v20, %v5000_v19  ;;  %v5088_v25 = vsel %vm4667_vm1, %v12031_v15, %v11189_v12  ;;  %v12033_v20 = vld [vmem:[#allocation118_spill] sm:$0xff] }
 0x488   :  { %v6105_v27 = vcombine.low %v5112_v44, %v5112_v44  ;;  %v6106_v18 = vcombine.high %v5112_v44, %v5112_v44  ;;  %v12034_v6 = vpack.c.bf16 %v12032_v55, %v12033_v20 }
 0x48a   :  { %5255 = vst [vmem:[#allocation4 + $0x28] sm:$0xf] %v6105_v27  ;;  %5256 = vst [vmem:[#allocation4 + $0x2c] sm:$0xf] %v6106_v18  ;;  %v5002_v26 = vpop.permute.xlu0 %5001  ;;  %v5316_v3 = vpop.permute.xlu1 %5315 }
 0x48b   :  { %v5114_v61 = vsel %vm4700_vm2, %v5082_v32, %v5002_v26  ;;  %v11342_v60 = vsel %vm66_vm0, %v12022_v49, %v5316_v3  ;;  %v12036_v32 = vld [vmem:[#allocation122_spill] sm:$0xff] }
 0x48c   :  { %v6107_v59 = vcombine.low %v5114_v61, %v5114_v61  ;;  %v6108_v10 = vcombine.high %v5114_v61, %v5114_v61  ;;  %v12037_v26 = vpack.c.bf16 %v12035_v62, %v12036_v32 }
 0x48e   :  { %5257 = vst [vmem:[#allocation4 + $0x30] sm:$0xf] %v6107_v59  ;;  %5258 = vst [vmem:[#allocation4 + $0x34] sm:$0xf] %v6108_v10  ;;  %v5318_v52 = vpop.permute.xlu0 %5317  ;;  %v5004_v17 = vpop.permute.xlu1 %5003 }
 0x48f   :  { %v11351_v42 = vsel %vm66_vm0, %v12026_v34, %v5318_v52  ;;  %v5116_v23 = vsel %vm4700_vm2, %v5084_v54, %v5004_v17 }
 0x490   :  { %v6109_v31 = vcombine.low %v5116_v23, %v5116_v23  ;;  %v6110_v63 = vcombine.high %v5116_v23, %v5116_v23 }
 0x492   :  { %5259 = vst [vmem:[#allocation4 + $0x38] sm:$0xf] %v6109_v31  ;;  %5260 = vst [vmem:[#allocation4 + $0x3c] sm:$0xf] %v6110_v63  ;;  %v5006_v1 = vpop.permute.xlu0 %5005  ;;  %v5320_v39 = vpop.permute.xlu1 %5319 }
 0x493   :  { %v5118_v9 = vsel %vm4700_vm2, %v5086_v35, %v5006_v1  ;;  %v11362_v14 = vsel %vm66_vm0, %v12030_v45, %v5320_v39 }
 0x494   :  { %v6111_v16 = vcombine.low %v5118_v9, %v5118_v9  ;;  %v6112_v33 = vcombine.high %v5118_v9, %v5118_v9 }
 0x496   :  { %5261 = vst [vmem:[#allocation4 + $0x40] sm:$0xf] %v6111_v16  ;;  %5262 = vst [vmem:[#allocation4 + $0x44] sm:$0xf] %v6112_v33  ;;  %v5322_v24 = vpop.permute.xlu0 %5321  ;;  %v5008_v48 = vpop.permute.xlu1 %5007 }
 0x497   :  { %v11371_v56 = vsel %vm66_vm0, %v12034_v6, %v5322_v24  ;;  %v5120_v43 = vsel %vm4700_vm2, %v5088_v25, %v5008_v48 }
 0x498   :  { %v6113_v19 = vcombine.low %v5120_v43, %v5120_v43  ;;  %v6114_v44 = vcombine.high %v5120_v43, %v5120_v43 }
 0x49a   :  { %5263 = vst [vmem:[#allocation4 + $0x48] sm:$0xf] %v6113_v19  ;;  %5264 = vst [vmem:[#allocation4 + $0x4c] sm:$0xf] %v6114_v44  ;;  %v5010_v27 = vpop.permute.xlu0 %5009  ;;  %v5324_v18 = vpop.permute.xlu1 %5323 }
 0x49b   :  { %v5122_v12 = vsel %vm4700_vm2, %v11183_v41, %v5010_v27  ;;  %v11380_v3 = vsel %vm66_vm0, %v12037_v26, %v5324_v18 }
 0x49c   :  { %v6115_v61 = vcombine.low %v5122_v12, %v5122_v12  ;;  %v6116_v37 = vcombine.high %v5122_v12, %v5122_v12 }
 0x49e   :  { %5265 = vst [vmem:[#allocation4 + $0x50] sm:$0xf] %v6115_v61  ;;  %5266 = vst [vmem:[#allocation4 + $0x54] sm:$0xf] %v6116_v37  ;;  %v5342_v8 = vpop.permute.xlu0 %5341  ;;  %v5012_v49 = vpop.permute.xlu1 %5011 }
 0x49f   :  { %v5124_v59 = vsel %vm4700_vm2, %v11206_v0, %v5012_v49 }
 0x4a0   :  { %v6117_v10 = vcombine.low %v5124_v59, %v5124_v59  ;;  %v6118_v36 = vcombine.high %v5124_v59, %v5124_v59 }
 0x4a2   :  { %5267 = vst [vmem:[#allocation4 + $0x58] sm:$0xf] %v6117_v10  ;;  %5268 = vst [vmem:[#allocation4 + $0x5c] sm:$0xf] %v6118_v36  ;;  %v5014_v41 = vpop.permute.xlu0 %5013  ;;  %v5344_v54 = vpop.permute.xlu1 %5343 }
 0x4a3   :  { %v5126_v52 = vsel %vm4700_vm2, %v11227_v57, %v5014_v41  ;;  %v5472_v18 = vsel %vm4667_vm1, %v11217_v21, %v5344_v54 }
 0x4a4   :  { %v6119_v17 = vcombine.low %v5126_v52, %v5126_v52  ;;  %v6120_v58 = vcombine.high %v5126_v52, %v5126_v52 }
 0x4a6   :  { %5269 = vst [vmem:[#allocation4 + $0x60] sm:$0xf] %v6119_v17  ;;  %5270 = vst [vmem:[#allocation4 + $0x64] sm:$0xf] %v6120_v58  ;;  %v5346_v7 = vpop.permute.xlu0 %5345 }
 0x4a7   :  { %v5016_v34 = vpop.permute.xlu1 %5015  ;;  %v5474_v12 = vsel %vm4667_vm1, %v11238_v51, %v5346_v7 }
 0x4a8   :  { %v5128_v23 = vsel %vm4700_vm2, %v11242_v11, %v5016_v34 }
 0x4a9   :  { %v6121_v31 = vcombine.low %v5128_v23, %v5128_v23  ;;  %v6122_v0 = vcombine.high %v5128_v23, %v5128_v23 }
 0x4ab   :  { %5271 = vst [vmem:[#allocation4 + $0x68] sm:$0xf] %v6121_v31  ;;  %5272 = vst [vmem:[#allocation4 + $0x6c] sm:$0xf] %v6122_v0  ;;  %v5018_v63 = vpop.permute.xlu0 %5017  ;;  %v5348_v30 = vpop.permute.xlu1 %5347 }
 0x4ac   :  { %v5130_v35 = vsel %vm4700_vm2, %v11252_v4, %v5018_v63  ;;  %v5476_v59 = vsel %vm4667_vm1, %v11255_v46, %v5348_v30 }
 0x4ad   :  { %v6123_v1 = vcombine.low %v5130_v35, %v5130_v35  ;;  %v6124_v57 = vcombine.high %v5130_v35, %v5130_v35 }
 0x4af   :  { %5273 = vst [vmem:[#allocation4 + $0x70] sm:$0xf] %v6123_v1  ;;  %5274 = vst [vmem:[#allocation4 + $0x74] sm:$0xf] %v6124_v57  ;;  %v5350_v39 = vpop.permute.xlu0 %5349  ;;  %v5020_v9 = vpop.permute.xlu1 %5019 }
 0x4b0   :  { %v5132_v40 = vsel %vm4700_vm2, %v11272_v5, %v5020_v9  ;;  %v5470_v5 = vsel %vm4667_vm1, %v11196_v28, %v5342_v8  ;;  %v5478_v21 = vsel %vm4667_vm1, %v11268_v29, %v5350_v39 }
 0x4b1   :  { %v6125_v53 = vcombine.low %v5132_v40, %v5132_v40  ;;  %v6126_v11 = vcombine.high %v5132_v40, %v5132_v40 }
 0x4b3   :  { %5275 = vst [vmem:[#allocation4 + $0x78] sm:$0xf] %v6125_v53  ;;  %5276 = vst [vmem:[#allocation4 + $0x7c] sm:$0xf] %v6126_v11  ;;  %v5354_v45 = vpop.permute.xlu0 %5353  ;;  %v5352_v16 = vpop.permute.xlu1 %5351 }
 0x4b4   :  { %v5482_v46 = vsel %vm4667_vm1, %v11292_v2, %v5354_v45  ;;  %v5480_v29 = vsel %vm4667_vm1, %v11283_v50, %v5352_v16 }
 0x4b7   :  { %v5358_v33 = vpop.permute.xlu0 %5357  ;;  %v5356_v15 = vpop.permute.xlu1 %5355 }
 0x4b8   :  { %v5486_v2 = vsel %vm4667_vm1, %v11311_v38, %v5358_v33  ;;  %v5484_v50 = vsel %vm4667_vm1, %v11302_v13, %v5356_v15 }
 0x4bb   :  { %v11392_v25 = vpop.permute.xlu0 %5361  ;;  %v11394_v4 = vpop.permute.xlu1 %5359 }
 0x4bc   :  { %v5490_v38 = vsel %vm4667_vm1, %v11331_v47, %v11392_v25  ;;  %v5488_v13 = vsel %vm4667_vm1, %v11322_v22, %v11394_v4 }
 0x4bf   :  { %v11396_v24 = vpop.permute.xlu0 %5365  ;;  %v11398_v48 = vpop.permute.xlu1 %5363 }
 0x4c0   :  { %v5494_v47 = vsel %vm4667_vm1, %v11351_v42, %v11396_v24  ;;  %v5492_v22 = vsel %vm4667_vm1, %v11342_v60, %v11398_v48 }
 0x4c3   :  { %v11400_v55 = vpop.permute.xlu0 %5369  ;;  %v11402_v20 = vpop.permute.xlu1 %5367 }
 0x4c4   :  { %v5498_v42 = vsel %vm4667_vm1, %v11371_v56, %v11400_v55  ;;  %v5496_v60 = vsel %vm4667_vm1, %v11362_v14, %v11402_v20 }
 0x4c7   :  { %v5390_v6 = vpop.permute.xlu0 %5389  ;;  %v11406_v43 = vpop.permute.xlu1 %5371 }
 0x4c8   :  { %v5502_v19 = vsel %vm4700_vm2, %v5470_v5, %v5390_v6  ;;  %v5500_v14 = vsel %vm4667_vm1, %v11380_v3, %v11406_v43 }
 0x4c9   :  { %v6127_v44 = vcombine.low %v5502_v19, %v5502_v19  ;;  %v6128_v27 = vcombine.high %v5502_v19, %v5502_v19 }
 0x4cb   :  { %5645 = vst [vmem:[#allocation4 + $0x80] sm:$0xf] %v6127_v44  ;;  %5646 = vst [vmem:[#allocation4 + $0x84] sm:$0xf] %v6128_v27  ;;  %v5394_v62 = vpop.permute.xlu0 %5393  ;;  %v5392_v32 = vpop.permute.xlu1 %5391 }
 0x4cc   :  { %v5506_v26 = vsel %vm4700_vm2, %v5474_v12, %v5394_v62  ;;  %v5504_v28 = vsel %vm4700_vm2, %v5472_v18, %v5392_v32 }
 0x4cd   :  { %v6131_v61 = vcombine.low %v5506_v26, %v5506_v26  ;;  %v6132_v37 = vcombine.high %v5506_v26, %v5506_v26  ;;  %v6129_v8 = vcombine.low %v5504_v28, %v5504_v28  ;;  %v6130_v49 = vcombine.high %v5504_v28, %v5504_v28 }
 0x4cf   :  { %5649 = vst [vmem:[#allocation4 + $0x90] sm:$0xf] %v6131_v61  ;;  %5650 = vst [vmem:[#allocation4 + $0x94] sm:$0xf] %v6132_v37  ;;  %v5398_v51 = vpop.permute.xlu0 %5397  ;;  %v5396_v10 = vpop.permute.xlu1 %5395 }
 0x4d0   :  { %5647 = vst [vmem:[#allocation4 + $0x88] sm:$0xf] %v6129_v8  ;;  %5648 = vst [vmem:[#allocation4 + $0x8c] sm:$0xf] %v6130_v49  ;;  %v5510_v36 = vsel %vm4700_vm2, %v5478_v21, %v5398_v51  ;;  %v5508_v41 = vsel %vm4700_vm2, %v5476_v59, %v5396_v10 }
 0x4d1   :  { %v6135_v54 = vcombine.low %v5510_v36, %v5510_v36  ;;  %v6136_v52 = vcombine.high %v5510_v36, %v5510_v36  ;;  %v6133_v17 = vcombine.low %v5508_v41, %v5508_v41  ;;  %v6134_v58 = vcombine.high %v5508_v41, %v5508_v41 }
 0x4d3   :  { %5653 = vst [vmem:[#allocation4 + $0xa0] sm:$0xf] %v6135_v54  ;;  %5654 = vst [vmem:[#allocation4 + $0xa4] sm:$0xf] %v6136_v52  ;;  %v5402_v7 = vpop.permute.xlu0 %5401  ;;  %v5400_v34 = vpop.permute.xlu1 %5399 }
 0x4d4   :  { %5651 = vst [vmem:[#allocation4 + $0x98] sm:$0xf] %v6133_v17  ;;  %5652 = vst [vmem:[#allocation4 + $0x9c] sm:$0xf] %v6134_v58  ;;  %v5514_v23 = vsel %vm4700_vm2, %v5482_v46, %v5402_v7  ;;  %v5512_v31 = vsel %vm4700_vm2, %v5480_v29, %v5400_v34 }
 0x4d5   :  { %v6139_v0 = vcombine.low %v5514_v23, %v5514_v23  ;;  %v6140_v63 = vcombine.high %v5514_v23, %v5514_v23  ;;  %v6137_v30 = vcombine.low %v5512_v31, %v5512_v31  ;;  %v6138_v35 = vcombine.high %v5512_v31, %v5512_v31 }
 0x4d7   :  { %5657 = vst [vmem:[#allocation4 + $0xb0] sm:$0xf] %v6139_v0  ;;  %5658 = vst [vmem:[#allocation4 + $0xb4] sm:$0xf] %v6140_v63  ;;  %v5406_v1 = vpop.permute.xlu0 %5405  ;;  %v5404_v57 = vpop.permute.xlu1 %5403 }
 0x4d8   :  { %5655 = vst [vmem:[#allocation4 + $0xa8] sm:$0xf] %v6137_v30  ;;  %5656 = vst [vmem:[#allocation4 + $0xac] sm:$0xf] %v6138_v35  ;;  %v5518_v39 = vsel %vm4700_vm2, %v5486_v2, %v5406_v1  ;;  %v5516_v9 = vsel %vm4700_vm2, %v5484_v50, %v5404_v57 }
 0x4d9   :  { %v6143_v40 = vcombine.low %v5518_v39, %v5518_v39  ;;  %v6144_v53 = vcombine.high %v5518_v39, %v5518_v39  ;;  %v6141_v11 = vcombine.low %v5516_v9, %v5516_v9  ;;  %v6142_v45 = vcombine.high %v5516_v9, %v5516_v9 }
 0x4db   :  { %5661 = vst [vmem:[#allocation4 + $0xc0] sm:$0xf] %v6143_v40  ;;  %5662 = vst [vmem:[#allocation4 + $0xc4] sm:$0xf] %v6144_v53  ;;  %v5410_v16 = vpop.permute.xlu0 %5409  ;;  %v5408_v33 = vpop.permute.xlu1 %5407 }
 0x4dc   :  { %5659 = vst [vmem:[#allocation4 + $0xb8] sm:$0xf] %v6141_v11  ;;  %5660 = vst [vmem:[#allocation4 + $0xbc] sm:$0xf] %v6142_v45  ;;  %v5522_v15 = vsel %vm4700_vm2, %v5490_v38, %v5410_v16  ;;  %v5520_v5 = vsel %vm4700_vm2, %v5488_v13, %v5408_v33 }
 0x4dd   :  { %v6147_v6 = vcombine.low %v5522_v15, %v5522_v15  ;;  %v6148_v19 = vcombine.high %v5522_v15, %v5522_v15  ;;  %v6145_v44 = vcombine.low %v5520_v5, %v5520_v5  ;;  %v6146_v27 = vcombine.high %v5520_v5, %v5520_v5 }
 0x4df   :  { %5665 = vst [vmem:[#allocation4 + $0xd0] sm:$0xf] %v6147_v6  ;;  %5666 = vst [vmem:[#allocation4 + $0xd4] sm:$0xf] %v6148_v19  ;;  %v5414_v25 = vpop.permute.xlu0 %5413  ;;  %v5412_v4 = vpop.permute.xlu1 %5411 }
 0x4e0   :  { %5663 = vst [vmem:[#allocation4 + $0xc8] sm:$0xf] %v6145_v44  ;;  %5664 = vst [vmem:[#allocation4 + $0xcc] sm:$0xf] %v6146_v27  ;;  %v5526_v18 = vsel %vm4700_vm2, %v5494_v47, %v5414_v25  ;;  %v5524_v12 = vsel %vm4700_vm2, %v5492_v22, %v5412_v4 }
 0x4e1   :  { %v6151_v62 = vcombine.low %v5526_v18, %v5526_v18  ;;  %v6152_v32 = vcombine.high %v5526_v18, %v5526_v18  ;;  %v6149_v26 = vcombine.low %v5524_v12, %v5524_v12  ;;  %v6150_v28 = vcombine.high %v5524_v12, %v5524_v12 }
 0x4e3   :  { %5669 = vst [vmem:[#allocation4 + $0xe0] sm:$0xf] %v6151_v62  ;;  %5670 = vst [vmem:[#allocation4 + $0xe4] sm:$0xf] %v6152_v32 }
 0x4e4   :  { %5667 = vst [vmem:[#allocation4 + $0xd8] sm:$0xf] %v6149_v26  ;;  %5668 = vst [vmem:[#allocation4 + $0xdc] sm:$0xf] %v6150_v28  ;;  %v5418_v24 = vpop.permute.xlu0 %5417  ;;  %v5416_v48 = vpop.permute.xlu1 %5415 }
 0x4e5   :  { %v5530_v61 = vsel %vm4700_vm2, %v5498_v42, %v5418_v24  ;;  %v5528_v37 = vsel %vm4700_vm2, %v5496_v60, %v5416_v48 }
 0x4e6   :  { %v6155_v8 = vcombine.low %v5530_v61, %v5530_v61  ;;  %v6156_v49 = vcombine.high %v5530_v61, %v5530_v61  ;;  %v6153_v59 = vcombine.low %v5528_v37, %v5528_v37  ;;  %v6154_v21 = vcombine.high %v5528_v37, %v5528_v37 }
 0x4e8   :  { %5673 = vst [vmem:[#allocation4 + $0xf0] sm:$0xf] %v6155_v8  ;;  %5674 = vst [vmem:[#allocation4 + $0xf4] sm:$0xf] %v6156_v49  ;;  %v5420_v56 = vpop.permute.xlu1 %5419 }
 0x4e9   :  { %5671 = vst [vmem:[#allocation4 + $0xe8] sm:$0xf] %v6153_v59  ;;  %5672 = vst [vmem:[#allocation4 + $0xec] sm:$0xf] %v6154_v21  ;;  %v5532_v55 = vsel %vm4700_vm2, %v5500_v14, %v5420_v56 }
 0x4ea   :  { %v6157_v20 = vcombine.low %v5532_v55, %v5532_v55  ;;  %v6158_v51 = vcombine.high %v5532_v55, %v5532_v55 }
 0x4ec   :  { %5675 = vst [vmem:[#allocation4 + $0xf8] sm:$0xf] %v6157_v20  ;;  %5676 = vst [vmem:[#allocation4 + $0xfc] sm:$0xf] %v6158_v51 }
 0x4ed   :  { %7274 = shalt.err (!%p7271_p9)
}
 0x4ee   :  { %5700 = dma.vmem_to_hbm [thread:$0]  %s5695_s16, 4096, %s11473_s6, [#allocation5], %s7288_s7, %s7288_s7, %s7291_s13  }
 0x4ef   :  { %7283 = dma.done.wait [#allocation3], 2048  }
 0x4f0   :  { %7284 = vsyncadd [#allocation3], 4294965248 }
 0x4f1   :  { %7285 = dma.done.wait [#allocation5], 4096  }
 0x4f2   :  { %7286 = vsyncadd [#allocation5], 4294963200 }
 0x4f3   :  { %5707 = vsyncpa [#allocation3], 1 }
 0x4f4   :  { %5708 = vsyncpa [#allocation5], 1 }

</bundles_post_ra>
